<compile_context>
chip_gen: v7x
topology: tpu7x:2x2x1
jax: 0.10.0
libtpu: 0.0.40
codegen_flags: <defaults>
</compile_context>

<pallas_src>
import jax
import jax.numpy as jnp
import numpy as np
from jax.experimental import pallas as pl
from jax.experimental.pallas import tpu as pltpu

_EPS = 1e-5  # PyTorch InstanceNorm2d default eps


# ------------------------------ kernel helpers -------------------------------

def _instance_norm_affine(t, gamma, beta):
    """InstanceNorm over (H, W), folded into ONE scale+shift pass over the tile.

    t: (H, W, C) f32.  Single-pass f32 stats (sum + sum-of-squares), biased
    variance (PyTorch semantics).  gamma/beta are (C,) or None (affine=False).
    """
    inv_n = 1.0 / float(t.shape[0] * t.shape[1])
    s1 = jnp.sum(t, axis=(0, 1), keepdims=True)          # (1,1,C)
    s2 = jnp.sum(t * t, axis=(0, 1), keepdims=True)      # (1,1,C)
    m = s1 * inv_n
    v = jnp.maximum(s2 * inv_n - m * m, 0.0)
    scale = jax.lax.rsqrt(v + _EPS)
    if gamma is not None:
        scale = scale * gamma
    shift = (-m) * scale
    if beta is not None:
        shift = shift + beta
    return t * scale + shift


def _conv3x3_reflect(t, w_ref, H, W):
    """3x3 conv with reflect padding, bias-free (bias cancels under InstanceNorm).

    t:      (H, W, Cin) value (requires H >= 2, W >= 2, as PyTorch does)
    w_ref:  (9, Cin, Cout) ref, index di*3+dj == weight[di, dj]  (HWIO order)
    Returns (H, W, Cout) f32.
    """
    cin = t.shape[-1]
    cout = w_ref.shape[-1]

    # MXU operand dtype follows the (pre-cast) weights: bf16 at production
    # channel counts, f32 otherwise.  Accumulation is always f32.
    t = t.astype(w_ref.dtype)

    # Reflect pad along H only (outer axis -> cheap).
    tp = jnp.concatenate([t[1:2], t, t[H - 2:H - 1]], axis=0)            # (H+2, W, Cin)

    # W-shifted taps: two 2-piece sublane concats of the aligned tile, instead
    # of an unaligned (H+2, W+2, C) pad + 3 realigning slices.
    col_l = jnp.concatenate([tp[:, 1:2], tp[:, 0:W - 1]], axis=1)        # value at w-1 (reflect at 0)
    col_r = jnp.concatenate([tp[:, 1:W], tp[:, W - 2:W - 1]], axis=1)    # value at w+1 (reflect at W-1)
    cols = (col_l, tp, col_r)

    acc = None
    for di in range(3):
        for dj in range(3):
            tap = cols[dj][di:di + H].reshape(H * W, cin)                # layout no-op (W % 8 == 0)
            d = jnp.dot(tap, w_ref[di * 3 + dj],
                        preferred_element_type=jnp.float32)
            acc = d if acc is None else acc + d                          # init from first dot
    return acc.reshape(H, W, cout)


def _residual_block_kernel(x_ref, w1_ref, aff1_ref, w2_ref, o_ref):
    H, W = x_ref.shape[1], x_ref.shape[2]

    # conv1 (Cin -> Cmid, no bias) + InstanceNorm(affine=True, folded) + ReLU
    h = _conv3x3_reflect(x_ref[0], w1_ref, H, W)
    h = _instance_norm_affine(h, aff1_ref[0, :], aff1_ref[1, :])
    h = jnp.maximum(h, 0.0)

    # conv2 (Cmid -> Cin, no bias) + InstanceNorm(affine=False)
    h = _conv3x3_reflect(h, w2_ref, H, W)
    h = _instance_norm_affine(h, None, None)

    # Residual add: re-read x here (its live range does not span the convs).
    o_ref[0] = (x_ref[0].astype(jnp.float32) + h).astype(o_ref.dtype)


# ------------------------------ pallas wrapper --------------------------------

def residual_block(x_nhwc, p):
    """Forward of ResidualBlock (eval semantics), NHWC layout."""
    N, H, W, cin = x_nhwc.shape
    cmid = p['w1'].shape[-1]
    if cmid == 0:
        # mid_features <= 0 -> conv_block is an empty nn.Sequential (identity).
        return x_nhwc + x_nhwc

    # bf16 matmul operands at production channel counts (full-rate MXU on
    # v6e/v7x); exact f32 at small/test channel counts.
    wdt = jnp.bfloat16 if min(cin, cmid) >= 128 else jnp.float32

    # Packed params: weights in (tap, Cin, Cout) order; affine (gamma, beta).
    # Conv biases are intentionally NOT passed: bias-before-InstanceNorm cancels.
    w1 = p['w1'].reshape(9, cin, cmid).astype(wdt)
    w2 = p['w2'].reshape(9, cmid, cin).astype(wdt)
    aff1 = jnp.stack([p['g1'], p['be1']], axis=0).astype(jnp.float32)    # (2, Cmid)

    # Explicit VMEM budget (v5e default scoped limit is only 16 MiB).
    bpe_w = jnp.dtype(wdt).itemsize
    io_bytes = 2 * 2 * H * W * cin * x_nhwc.dtype.itemsize               # in+out, double-buffered
    param_bytes = (w1.size + w2.size) * bpe_w + aff1.size * 4
    work_bytes = 10 * H * W * max(cin, cmid) * 4                         # taps / acc / IN working set
    vmem_limit = int(min(max(io_bytes + 2 * param_bytes + work_bytes,
                             32 * 1024 * 1024), 100 * 1024 * 1024))

    return pl.pallas_call(
        _residual_block_kernel,
        out_shape=jax.ShapeDtypeStruct((N, H, W, cin), x_nhwc.dtype),
        grid_spec=pltpu.PrefetchScalarGridSpec(
            num_scalar_prefetch=0,
            grid=(N,),
            in_specs=[
                pl.BlockSpec((1, H, W, cin), lambda n: (n, 0, 0, 0)),
                pl.BlockSpec((9, cin, cmid), lambda n: (0, 0, 0)),
                pl.BlockSpec((2, cmid), lambda n: (0, 0)),
                pl.BlockSpec((9, cmid, cin), lambda n: (0, 0, 0)),
            ],
            out_specs=pl.BlockSpec((1, H, W, cin), lambda n: (n, 0, 0, 0)),
        ),
        compiler_params=pltpu.CompilerParams(
            dimension_semantics=("parallel",),      # batch samples are independent
            vmem_limit_bytes=vmem_limit),
    )(x_nhwc, w1, aff1, w2)


# ------------------------------ parameter setup -------------------------------

def init_params(key, in_features, mid_features):
    ks = jax.random.split(key, 6)

    def nrm(k, shape, scale=0.2):
        return (scale * jax.random.normal(k, shape)).astype(jnp.float32)

    return dict(
        w1=nrm(ks[0], (3, 3, in_features, mid_features)),    # HWIO
        b1=nrm(ks[1], (mid_features,)),                      # used only by the reference
        g1=1.0 + nrm(ks[2], (mid_features,)),                 # InstanceNorm affine=True
        be1=nrm(ks[3], (mid_features,)),
        w2=nrm(ks[4], (3, 3, mid_features, in_features)),    # HWIO
        b2=nrm(ks[5], (in_features,)),                        # used only by the reference
        # second InstanceNorm2d has affine=False -> no gamma/beta
    )


# ------------------------- pure-JAX reference (check) -------------------------

def _ref_conv3x3_reflect(t, w, b):
    tp = jnp.pad(t, ((0, 0), (1, 1), (1, 1), (0, 0)), mode='reflect')
    y = jax.lax.conv_general_dilated(
        tp, w, (1, 1), 'VALID',
        dimension_numbers=('NHWC', 'HWIO', 'NHWC'),
        precision=jax.lax.Precision.HIGHEST)
    return y + b.reshape(1, 1, 1, -1)


def _ref_in(t):
    m = jnp.mean(t, axis=(1, 2), keepdims=True)
    v = jnp.mean((t - m) ** 2, axis=(1, 2), keepdims=True)
    return (t - m) / jnp.sqrt(v + _EPS)


def residual_block_ref(x, p):
    h = _ref_conv3x3_reflect(x, p['w1'], p['b1'])
    h = _ref_in(h) * p['g1'].reshape(1, 1, 1, -1) + p['be1'].reshape(1, 1, 1, -1)
    h = jax.nn.relu(h)
    h = _ref_conv3x3_reflect(h, p['w2'], p['b2'])
    h = _ref_in(h)
    return x + h


# ----------------------------------- main --------------------------------------

if __name__ == "__main__":
    # ResidualBlock(in_features=4, mid_features=8) at small spatial size.
    N, IC, MC, H, W = 2, 4, 8, 16, 16

    key = jax.random.PRNGKey(0)
    kx, kp = jax.random.split(key)
    x_nchw = jax.random.normal(kx, (N, IC, H, W), dtype=jnp.float32)  # PyTorch NCHW
    params = init_params(kp, IC, MC)

    x_nhwc = jnp.transpose(x_nchw, (0, 2, 3, 1))
    out_nhwc = residual_block(x_nhwc, params)
    out_nchw = jnp.transpose(out_nhwc, (0, 3, 1, 2))
    jax.block_until_ready(out_nchw)

    ref_nchw = jnp.transpose(residual_block_ref(x_nhwc, params), (0, 3, 1, 2))
    assert out_nchw.shape == (N, IC, H, W)
    np.testing.assert_allclose(np.asarray(out_nchw), np.asarray(ref_nchw),
                               atol=1e-4, rtol=1e-3)
    print("KERNEL_OK")
</pallas_src>

<mosaic_0001>
module attributes {stable_mosaic.version = 11 : i64} {
  func.func @_residual_block_kernel(%arg0: i32, %arg1: memref<1x16x16x4xf32, #tpu.memory_space<vmem>>, %arg2: memref<9x4x8xf32, #tpu.memory_space<vmem>>, %arg3: memref<2x8xf32, #tpu.memory_space<vmem>>, %arg4: memref<9x8x4xf32, #tpu.memory_space<vmem>>, %arg5: memref<1x16x16x4xf32, #tpu.memory_space<vmem>>) attributes {dimension_semantics = [#tpu.dimension_semantics<parallel>], iteration_bounds = array<i64: 2>, scalar_prefetch = 0 : i64, scratch_operands = 0 : i64, tpu.core_type = #tpu.core_type<tc>, window_params = [{transform_indices = @transform_0, window_bounds = array<i64: 1, 16, 16, 4>}, {pipeline_mode = #tpu.pipeline_mode<synchronous>, transform_indices = @transform_1, window_bounds = array<i64: 9, 4, 8>}, {pipeline_mode = #tpu.pipeline_mode<synchronous>, transform_indices = @transform_2, window_bounds = array<i64: 2, 8>}, {pipeline_mode = #tpu.pipeline_mode<synchronous>, transform_indices = @transform_3, window_bounds = array<i64: 9, 8, 4>}, {transform_indices = @transform_4, window_bounds = array<i64: 1, 16, 16, 4>}]} {
    %c0 = arith.constant 0 : index
    %c0_0 = arith.constant 0 : index
    %c0_1 = arith.constant 0 : index
    %c0_2 = arith.constant 0 : index
    %0 = vector.load %arg1[%c0, %c0_0, %c0_1, %c0_2] : memref<1x16x16x4xf32, #tpu.memory_space<vmem>>, vector<1x16x16x4xf32>
    %1 = vector.shape_cast %0 : vector<1x16x16x4xf32> to vector<16x16x4xf32>
    %2 = vector.extract_strided_slice %1 {offsets = [1, 0, 0], sizes = [1, 16, 4], strides = [1, 1, 1]} : vector<16x16x4xf32> to vector<1x16x4xf32>
    %3 = vector.extract_strided_slice %1 {offsets = [14, 0, 0], sizes = [1, 16, 4], strides = [1, 1, 1]} : vector<16x16x4xf32> to vector<1x16x4xf32>
    %4 = tpu.concatenate %2, %1, %3 in 0 : vector<1x16x4xf32>, vector<16x16x4xf32>, vector<1x16x4xf32> -> vector<18x16x4xf32>
    %5 = vector.extract_strided_slice %4 {offsets = [0, 1, 0], sizes = [18, 1, 4], strides = [1, 1, 1]} : vector<18x16x4xf32> to vector<18x1x4xf32>
    %6 = vector.extract_strided_slice %4 {offsets = [0, 0, 0], sizes = [18, 15, 4], strides = [1, 1, 1]} : vector<18x16x4xf32> to vector<18x15x4xf32>
    %7 = tpu.concatenate %5, %6 in 1 : vector<18x1x4xf32>, vector<18x15x4xf32> -> vector<18x16x4xf32>
    %8 = vector.extract_strided_slice %4 {offsets = [0, 1, 0], sizes = [18, 15, 4], strides = [1, 1, 1]} : vector<18x16x4xf32> to vector<18x15x4xf32>
    %9 = vector.extract_strided_slice %4 {offsets = [0, 14, 0], sizes = [18, 1, 4], strides = [1, 1, 1]} : vector<18x16x4xf32> to vector<18x1x4xf32>
    %10 = tpu.concatenate %8, %9 in 1 : vector<18x15x4xf32>, vector<18x1x4xf32> -> vector<18x16x4xf32>
    %11 = vector.extract_strided_slice %7 {offsets = [0, 0, 0], sizes = [16, 16, 4], strides = [1, 1, 1]} : vector<18x16x4xf32> to vector<16x16x4xf32>
    %12 = vector.shape_cast %11 : vector<16x16x4xf32> to vector<256x4xf32>
    %c0_3 = arith.constant 0 : index
    %c0_4 = arith.constant 0 : index
    %c0_5 = arith.constant 0 : index
    %13 = vector.load %arg2[%c0_3, %c0_4, %c0_5] : memref<9x4x8xf32, #tpu.memory_space<vmem>>, vector<1x4x8xf32>
    %14 = vector.shape_cast %13 : vector<1x4x8xf32> to vector<4x8xf32>
    %cst = arith.constant dense<0.000000e+00> : vector<256x8xf32>
    %15 = tpu.matmul %12, %14, %cst {dimension_numbers = #tpu.dot_dimension_numbers<[1], [0], [0], [1], [0, 0, 1, 1], [], []>} : vector<256x4xf32>, vector<4x8xf32>, vector<256x8xf32> -> vector<256x8xf32>
    %16 = vector.extract_strided_slice %4 {offsets = [0, 0, 0], sizes = [16, 16, 4], strides = [1, 1, 1]} : vector<18x16x4xf32> to vector<16x16x4xf32>
    %17 = vector.shape_cast %16 : vector<16x16x4xf32> to vector<256x4xf32>
    %c1 = arith.constant 1 : index
    %c0_6 = arith.constant 0 : index
    %c0_7 = arith.constant 0 : index
    %18 = vector.load %arg2[%c1, %c0_6, %c0_7] : memref<9x4x8xf32, #tpu.memory_space<vmem>>, vector<1x4x8xf32>
    %19 = vector.shape_cast %18 : vector<1x4x8xf32> to vector<4x8xf32>
    %cst_8 = arith.constant dense<0.000000e+00> : vector<256x8xf32>
    %20 = tpu.matmul %17, %19, %cst_8 {dimension_numbers = #tpu.dot_dimension_numbers<[1], [0], [0], [1], [0, 0, 1, 1], [], []>} : vector<256x4xf32>, vector<4x8xf32>, vector<256x8xf32> -> vector<256x8xf32>
    %21 = arith.addf %15, %20 : vector<256x8xf32>
    %22 = vector.extract_strided_slice %10 {offsets = [0, 0, 0], sizes = [16, 16, 4], strides = [1, 1, 1]} : vector<18x16x4xf32> to vector<16x16x4xf32>
    %23 = vector.shape_cast %22 : vector<16x16x4xf32> to vector<256x4xf32>
    %c2 = arith.constant 2 : index
    %c0_9 = arith.constant 0 : index
    %c0_10 = arith.constant 0 : index
    %24 = vector.load %arg2[%c2, %c0_9, %c0_10] : memref<9x4x8xf32, #tpu.memory_space<vmem>>, vector<1x4x8xf32>
    %25 = vector.shape_cast %24 : vector<1x4x8xf32> to vector<4x8xf32>
    %cst_11 = arith.constant dense<0.000000e+00> : vector<256x8xf32>
    %26 = tpu.matmul %23, %25, %cst_11 {dimension_numbers = #tpu.dot_dimension_numbers<[1], [0], [0], [1], [0, 0, 1, 1], [], []>} : vector<256x4xf32>, vector<4x8xf32>, vector<256x8xf32> -> vector<256x8xf32>
    %27 = arith.addf %21, %26 : vector<256x8xf32>
    %28 = vector.extract_strided_slice %7 {offsets = [1, 0, 0], sizes = [16, 16, 4], strides = [1, 1, 1]} : vector<18x16x4xf32> to vector<16x16x4xf32>
    %29 = vector.shape_cast %28 : vector<16x16x4xf32> to vector<256x4xf32>
    %c3 = arith.constant 3 : index
    %c0_12 = arith.constant 0 : index
    %c0_13 = arith.constant 0 : index
    %30 = vector.load %arg2[%c3, %c0_12, %c0_13] : memref<9x4x8xf32, #tpu.memory_space<vmem>>, vector<1x4x8xf32>
    %31 = vector.shape_cast %30 : vector<1x4x8xf32> to vector<4x8xf32>
    %cst_14 = arith.constant dense<0.000000e+00> : vector<256x8xf32>
    %32 = tpu.matmul %29, %31, %cst_14 {dimension_numbers = #tpu.dot_dimension_numbers<[1], [0], [0], [1], [0, 0, 1, 1], [], []>} : vector<256x4xf32>, vector<4x8xf32>, vector<256x8xf32> -> vector<256x8xf32>
    %33 = arith.addf %27, %32 : vector<256x8xf32>
    %34 = vector.extract_strided_slice %4 {offsets = [1, 0, 0], sizes = [16, 16, 4], strides = [1, 1, 1]} : vector<18x16x4xf32> to vector<16x16x4xf32>
    %35 = vector.shape_cast %34 : vector<16x16x4xf32> to vector<256x4xf32>
    %c4 = arith.constant 4 : index
    %c0_15 = arith.constant 0 : index
    %c0_16 = arith.constant 0 : index
    %36 = vector.load %arg2[%c4, %c0_15, %c0_16] : memref<9x4x8xf32, #tpu.memory_space<vmem>>, vector<1x4x8xf32>
    %37 = vector.shape_cast %36 : vector<1x4x8xf32> to vector<4x8xf32>
    %cst_17 = arith.constant dense<0.000000e+00> : vector<256x8xf32>
    %38 = tpu.matmul %35, %37, %cst_17 {dimension_numbers = #tpu.dot_dimension_numbers<[1], [0], [0], [1], [0, 0, 1, 1], [], []>} : vector<256x4xf32>, vector<4x8xf32>, vector<256x8xf32> -> vector<256x8xf32>
    %39 = arith.addf %33, %38 : vector<256x8xf32>
    %40 = vector.extract_strided_slice %10 {offsets = [1, 0, 0], sizes = [16, 16, 4], strides = [1, 1, 1]} : vector<18x16x4xf32> to vector<16x16x4xf32>
    %41 = vector.shape_cast %40 : vector<16x16x4xf32> to vector<256x4xf32>
    %c5 = arith.constant 5 : index
    %c0_18 = arith.constant 0 : index
    %c0_19 = arith.constant 0 : index
    %42 = vector.load %arg2[%c5, %c0_18, %c0_19] : memref<9x4x8xf32, #tpu.memory_space<vmem>>, vector<1x4x8xf32>
    %43 = vector.shape_cast %42 : vector<1x4x8xf32> to vector<4x8xf32>
    %cst_20 = arith.constant dense<0.000000e+00> : vector<256x8xf32>
    %44 = tpu.matmul %41, %43, %cst_20 {dimension_numbers = #tpu.dot_dimension_numbers<[1], [0], [0], [1], [0, 0, 1, 1], [], []>} : vector<256x4xf32>, vector<4x8xf32>, vector<256x8xf32> -> vector<256x8xf32>
    %45 = arith.addf %39, %44 : vector<256x8xf32>
    %46 = vector.extract_strided_slice %7 {offsets = [2, 0, 0], sizes = [16, 16, 4], strides = [1, 1, 1]} : vector<18x16x4xf32> to vector<16x16x4xf32>
    %47 = vector.shape_cast %46 : vector<16x16x4xf32> to vector<256x4xf32>
    %c6 = arith.constant 6 : index
    %c0_21 = arith.constant 0 : index
    %c0_22 = arith.constant 0 : index
    %48 = vector.load %arg2[%c6, %c0_21, %c0_22] : memref<9x4x8xf32, #tpu.memory_space<vmem>>, vector<1x4x8xf32>
    %49 = vector.shape_cast %48 : vector<1x4x8xf32> to vector<4x8xf32>
    %cst_23 = arith.constant dense<0.000000e+00> : vector<256x8xf32>
    %50 = tpu.matmul %47, %49, %cst_23 {dimension_numbers = #tpu.dot_dimension_numbers<[1], [0], [0], [1], [0, 0, 1, 1], [], []>} : vector<256x4xf32>, vector<4x8xf32>, vector<256x8xf32> -> vector<256x8xf32>
    %51 = arith.addf %45, %50 : vector<256x8xf32>
    %52 = vector.extract_strided_slice %4 {offsets = [2, 0, 0], sizes = [16, 16, 4], strides = [1, 1, 1]} : vector<18x16x4xf32> to vector<16x16x4xf32>
    %53 = vector.shape_cast %52 : vector<16x16x4xf32> to vector<256x4xf32>
    %c7 = arith.constant 7 : index
    %c0_24 = arith.constant 0 : index
    %c0_25 = arith.constant 0 : index
    %54 = vector.load %arg2[%c7, %c0_24, %c0_25] : memref<9x4x8xf32, #tpu.memory_space<vmem>>, vector<1x4x8xf32>
    %55 = vector.shape_cast %54 : vector<1x4x8xf32> to vector<4x8xf32>
    %cst_26 = arith.constant dense<0.000000e+00> : vector<256x8xf32>
    %56 = tpu.matmul %53, %55, %cst_26 {dimension_numbers = #tpu.dot_dimension_numbers<[1], [0], [0], [1], [0, 0, 1, 1], [], []>} : vector<256x4xf32>, vector<4x8xf32>, vector<256x8xf32> -> vector<256x8xf32>
    %57 = arith.addf %51, %56 : vector<256x8xf32>
    %58 = vector.extract_strided_slice %10 {offsets = [2, 0, 0], sizes = [16, 16, 4], strides = [1, 1, 1]} : vector<18x16x4xf32> to vector<16x16x4xf32>
    %59 = vector.shape_cast %58 : vector<16x16x4xf32> to vector<256x4xf32>
    %c8 = arith.constant 8 : index
    %c0_27 = arith.constant 0 : index
    %c0_28 = arith.constant 0 : index
    %60 = vector.load %arg2[%c8, %c0_27, %c0_28] : memref<9x4x8xf32, #tpu.memory_space<vmem>>, vector<1x4x8xf32>
    %61 = vector.shape_cast %60 : vector<1x4x8xf32> to vector<4x8xf32>
    %cst_29 = arith.constant dense<0.000000e+00> : vector<256x8xf32>
    %62 = tpu.matmul %59, %61, %cst_29 {dimension_numbers = #tpu.dot_dimension_numbers<[1], [0], [0], [1], [0, 0, 1, 1], [], []>} : vector<256x4xf32>, vector<4x8xf32>, vector<256x8xf32> -> vector<256x8xf32>
    %63 = arith.addf %57, %62 : vector<256x8xf32>
    %64 = vector.shape_cast %63 : vector<256x8xf32> to vector<16x16x8xf32>
    %c0_30 = arith.constant 0 : index
    %c0_31 = arith.constant 0 : index
    %65 = vector.load %arg3[%c0_30, %c0_31] : memref<2x8xf32, #tpu.memory_space<vmem>>, vector<1x8xf32>
    %66 = vector.shape_cast %65 : vector<1x8xf32> to vector<8xf32>
    %c1_32 = arith.constant 1 : index
    %c0_33 = arith.constant 0 : index
    %67 = vector.load %arg3[%c1_32, %c0_33] : memref<2x8xf32, #tpu.memory_space<vmem>>, vector<1x8xf32>
    %68 = vector.shape_cast %67 : vector<1x8xf32> to vector<8xf32>
    %cst_34 = arith.constant dense<0.000000e+00> : vector<8xf32>
    %69 = vector.multi_reduction <add>, %64, %cst_34 [0, 1] : vector<16x16x8xf32> to vector<8xf32>
    %70 = vector.shape_cast %69 : vector<8xf32> to vector<1x1x8xf32>
    %71 = arith.mulf %64, %64 : vector<16x16x8xf32>
    %cst_35 = arith.constant dense<0.000000e+00> : vector<8xf32>
    %72 = vector.multi_reduction <add>, %71, %cst_35 [0, 1] : vector<16x16x8xf32> to vector<8xf32>
    %73 = vector.shape_cast %72 : vector<8xf32> to vector<1x1x8xf32>
    %cst_36 = arith.constant 3.906250e-03 : f32
    %74 = vector.broadcast %cst_36 : f32 to vector<1x1x8xf32>
    %75 = arith.mulf %70, %74 : vector<1x1x8xf32>
    %cst_37 = arith.constant 3.906250e-03 : f32
    %76 = vector.broadcast %cst_37 : f32 to vector<1x1x8xf32>
    %77 = arith.mulf %73, %76 : vector<1x1x8xf32>
    %78 = arith.mulf %75, %75 : vector<1x1x8xf32>
    %79 = arith.subf %77, %78 : vector<1x1x8xf32>
    %cst_38 = arith.constant 0.000000e+00 : f32
    %80 = vector.broadcast %cst_38 : f32 to vector<1x1x8xf32>
    %81 = arith.maximumf %79, %80 : vector<1x1x8xf32>
    %cst_39 = arith.constant 9.99999974E-6 : f32
    %82 = vector.broadcast %cst_39 : f32 to vector<1x1x8xf32>
    %83 = arith.addf %81, %82 : vector<1x1x8xf32>
    %84 = math.rsqrt %83 : vector<1x1x8xf32>
    %85 = vector.shape_cast %66 : vector<8xf32> to vector<1x1x8xf32>
    %86 = arith.mulf %84, %85 : vector<1x1x8xf32>
    %cst_40 = arith.constant 0.000000e+00 : f32
    %87 = vector.broadcast %cst_40 : f32 to vector<1x1x8xf32>
    %88 = arith.subf %87, %75 : vector<1x1x8xf32>
    %89 = arith.mulf %88, %86 : vector<1x1x8xf32>
    %90 = vector.shape_cast %68 : vector<8xf32> to vector<1x1x8xf32>
    %91 = arith.addf %89, %90 : vector<1x1x8xf32>
    %92 = vector.broadcast %86 : vector<1x1x8xf32> to vector<16x16x8xf32>
    %93 = arith.mulf %64, %92 : vector<16x16x8xf32>
    %94 = vector.broadcast %91 : vector<1x1x8xf32> to vector<16x16x8xf32>
    %95 = arith.addf %93, %94 : vector<16x16x8xf32>
    %cst_41 = arith.constant 0.000000e+00 : f32
    %96 = vector.broadcast %cst_41 : f32 to vector<16x16x8xf32>
    %97 = arith.maximumf %95, %96 : vector<16x16x8xf32>
    %98 = vector.extract_strided_slice %97 {offsets = [1, 0, 0], sizes = [1, 16, 8], strides = [1, 1, 1]} : vector<16x16x8xf32> to vector<1x16x8xf32>
    %99 = vector.extract_strided_slice %97 {offsets = [14, 0, 0], sizes = [1, 16, 8], strides = [1, 1, 1]} : vector<16x16x8xf32> to vector<1x16x8xf32>
    %100 = tpu.concatenate %98, %97, %99 in 0 : vector<1x16x8xf32>, vector<16x16x8xf32>, vector<1x16x8xf32> -> vector<18x16x8xf32>
    %101 = vector.extract_strided_slice %100 {offsets = [0, 1, 0], sizes = [18, 1, 8], strides = [1, 1, 1]} : vector<18x16x8xf32> to vector<18x1x8xf32>
    %102 = vector.extract_strided_slice %100 {offsets = [0, 0, 0], sizes = [18, 15, 8], strides = [1, 1, 1]} : vector<18x16x8xf32> to vector<18x15x8xf32>
    %103 = tpu.concatenate %101, %102 in 1 : vector<18x1x8xf32>, vector<18x15x8xf32> -> vector<18x16x8xf32>
    %104 = vector.extract_strided_slice %100 {offsets = [0, 1, 0], sizes = [18, 15, 8], strides = [1, 1, 1]} : vector<18x16x8xf32> to vector<18x15x8xf32>
    %105 = vector.extract_strided_slice %100 {offsets = [0, 14, 0], sizes = [18, 1, 8], strides = [1, 1, 1]} : vector<18x16x8xf32> to vector<18x1x8xf32>
    %106 = tpu.concatenate %104, %105 in 1 : vector<18x15x8xf32>, vector<18x1x8xf32> -> vector<18x16x8xf32>
    %107 = vector.extract_strided_slice %103 {offsets = [0, 0, 0], sizes = [16, 16, 8], strides = [1, 1, 1]} : vector<18x16x8xf32> to vector<16x16x8xf32>
    %108 = vector.shape_cast %107 : vector<16x16x8xf32> to vector<256x8xf32>
    %c0_42 = arith.constant 0 : index
    %c0_43 = arith.constant 0 : index
    %c0_44 = arith.constant 0 : index
    %109 = vector.load %arg4[%c0_42, %c0_43, %c0_44] : memref<9x8x4xf32, #tpu.memory_space<vmem>>, vector<1x8x4xf32>
    %110 = vector.shape_cast %109 : vector<1x8x4xf32> to vector<8x4xf32>
    %cst_45 = arith.constant dense<0.000000e+00> : vector<256x4xf32>
    %111 = tpu.matmul %108, %110, %cst_45 {dimension_numbers = #tpu.dot_dimension_numbers<[1], [0], [0], [1], [0, 0, 1, 1], [], []>} : vector<256x8xf32>, vector<8x4xf32>, vector<256x4xf32> -> vector<256x4xf32>
    %112 = vector.extract_strided_slice %100 {offsets = [0, 0, 0], sizes = [16, 16, 8], strides = [1, 1, 1]} : vector<18x16x8xf32> to vector<16x16x8xf32>
    %113 = vector.shape_cast %112 : vector<16x16x8xf32> to vector<256x8xf32>
    %c1_46 = arith.constant 1 : index
    %c0_47 = arith.constant 0 : index
    %c0_48 = arith.constant 0 : index
    %114 = vector.load %arg4[%c1_46, %c0_47, %c0_48] : memref<9x8x4xf32, #tpu.memory_space<vmem>>, vector<1x8x4xf32>
    %115 = vector.shape_cast %114 : vector<1x8x4xf32> to vector<8x4xf32>
    %cst_49 = arith.constant dense<0.000000e+00> : vector<256x4xf32>
    %116 = tpu.matmul %113, %115, %cst_49 {dimension_numbers = #tpu.dot_dimension_numbers<[1], [0], [0], [1], [0, 0, 1, 1], [], []>} : vector<256x8xf32>, vector<8x4xf32>, vector<256x4xf32> -> vector<256x4xf32>
    %117 = arith.addf %111, %116 : vector<256x4xf32>
    %118 = vector.extract_strided_slice %106 {offsets = [0, 0, 0], sizes = [16, 16, 8], strides = [1, 1, 1]} : vector<18x16x8xf32> to vector<16x16x8xf32>
    %119 = vector.shape_cast %118 : vector<16x16x8xf32> to vector<256x8xf32>
    %c2_50 = arith.constant 2 : index
    %c0_51 = arith.constant 0 : index
    %c0_52 = arith.constant 0 : index
    %120 = vector.load %arg4[%c2_50, %c0_51, %c0_52] : memref<9x8x4xf32, #tpu.memory_space<vmem>>, vector<1x8x4xf32>
    %121 = vector.shape_cast %120 : vector<1x8x4xf32> to vector<8x4xf32>
    %cst_53 = arith.constant dense<0.000000e+00> : vector<256x4xf32>
    %122 = tpu.matmul %119, %121, %cst_53 {dimension_numbers = #tpu.dot_dimension_numbers<[1], [0], [0], [1], [0, 0, 1, 1], [], []>} : vector<256x8xf32>, vector<8x4xf32>, vector<256x4xf32> -> vector<256x4xf32>
    %123 = arith.addf %117, %122 : vector<256x4xf32>
    %124 = vector.extract_strided_slice %103 {offsets = [1, 0, 0], sizes = [16, 16, 8], strides = [1, 1, 1]} : vector<18x16x8xf32> to vector<16x16x8xf32>
    %125 = vector.shape_cast %124 : vector<16x16x8xf32> to vector<256x8xf32>
    %c3_54 = arith.constant 3 : index
    %c0_55 = arith.constant 0 : index
    %c0_56 = arith.constant 0 : index
    %126 = vector.load %arg4[%c3_54, %c0_55, %c0_56] : memref<9x8x4xf32, #tpu.memory_space<vmem>>, vector<1x8x4xf32>
    %127 = vector.shape_cast %126 : vector<1x8x4xf32> to vector<8x4xf32>
    %cst_57 = arith.constant dense<0.000000e+00> : vector<256x4xf32>
    %128 = tpu.matmul %125, %127, %cst_57 {dimension_numbers = #tpu.dot_dimension_numbers<[1], [0], [0], [1], [0, 0, 1, 1], [], []>} : vector<256x8xf32>, vector<8x4xf32>, vector<256x4xf32> -> vector<256x4xf32>
    %129 = arith.addf %123, %128 : vector<256x4xf32>
    %130 = vector.extract_strided_slice %100 {offsets = [1, 0, 0], sizes = [16, 16, 8], strides = [1, 1, 1]} : vector<18x16x8xf32> to vector<16x16x8xf32>
    %131 = vector.shape_cast %130 : vector<16x16x8xf32> to vector<256x8xf32>
    %c4_58 = arith.constant 4 : index
    %c0_59 = arith.constant 0 : index
    %c0_60 = arith.constant 0 : index
    %132 = vector.load %arg4[%c4_58, %c0_59, %c0_60] : memref<9x8x4xf32, #tpu.memory_space<vmem>>, vector<1x8x4xf32>
    %133 = vector.shape_cast %132 : vector<1x8x4xf32> to vector<8x4xf32>
    %cst_61 = arith.constant dense<0.000000e+00> : vector<256x4xf32>
    %134 = tpu.matmul %131, %133, %cst_61 {dimension_numbers = #tpu.dot_dimension_numbers<[1], [0], [0], [1], [0, 0, 1, 1], [], []>} : vector<256x8xf32>, vector<8x4xf32>, vector<256x4xf32> -> vector<256x4xf32>
    %135 = arith.addf %129, %134 : vector<256x4xf32>
    %136 = vector.extract_strided_slice %106 {offsets = [1, 0, 0], sizes = [16, 16, 8], strides = [1, 1, 1]} : vector<18x16x8xf32> to vector<16x16x8xf32>
    %137 = vector.shape_cast %136 : vector<16x16x8xf32> to vector<256x8xf32>
    %c5_62 = arith.constant 5 : index
    %c0_63 = arith.constant 0 : index
    %c0_64 = arith.constant 0 : index
    %138 = vector.load %arg4[%c5_62, %c0_63, %c0_64] : memref<9x8x4xf32, #tpu.memory_space<vmem>>, vector<1x8x4xf32>
    %139 = vector.shape_cast %138 : vector<1x8x4xf32> to vector<8x4xf32>
    %cst_65 = arith.constant dense<0.000000e+00> : vector<256x4xf32>
    %140 = tpu.matmul %137, %139, %cst_65 {dimension_numbers = #tpu.dot_dimension_numbers<[1], [0], [0], [1], [0, 0, 1, 1], [], []>} : vector<256x8xf32>, vector<8x4xf32>, vector<256x4xf32> -> vector<256x4xf32>
    %141 = arith.addf %135, %140 : vector<256x4xf32>
    %142 = vector.extract_strided_slice %103 {offsets = [2, 0, 0], sizes = [16, 16, 8], strides = [1, 1, 1]} : vector<18x16x8xf32> to vector<16x16x8xf32>
    %143 = vector.shape_cast %142 : vector<16x16x8xf32> to vector<256x8xf32>
    %c6_66 = arith.constant 6 : index
    %c0_67 = arith.constant 0 : index
    %c0_68 = arith.constant 0 : index
    %144 = vector.load %arg4[%c6_66, %c0_67, %c0_68] : memref<9x8x4xf32, #tpu.memory_space<vmem>>, vector<1x8x4xf32>
    %145 = vector.shape_cast %144 : vector<1x8x4xf32> to vector<8x4xf32>
    %cst_69 = arith.constant dense<0.000000e+00> : vector<256x4xf32>
    %146 = tpu.matmul %143, %145, %cst_69 {dimension_numbers = #tpu.dot_dimension_numbers<[1], [0], [0], [1], [0, 0, 1, 1], [], []>} : vector<256x8xf32>, vector<8x4xf32>, vector<256x4xf32> -> vector<256x4xf32>
    %147 = arith.addf %141, %146 : vector<256x4xf32>
    %148 = vector.extract_strided_slice %100 {offsets = [2, 0, 0], sizes = [16, 16, 8], strides = [1, 1, 1]} : vector<18x16x8xf32> to vector<16x16x8xf32>
    %149 = vector.shape_cast %148 : vector<16x16x8xf32> to vector<256x8xf32>
    %c7_70 = arith.constant 7 : index
    %c0_71 = arith.constant 0 : index
    %c0_72 = arith.constant 0 : index
    %150 = vector.load %arg4[%c7_70, %c0_71, %c0_72] : memref<9x8x4xf32, #tpu.memory_space<vmem>>, vector<1x8x4xf32>
    %151 = vector.shape_cast %150 : vector<1x8x4xf32> to vector<8x4xf32>
    %cst_73 = arith.constant dense<0.000000e+00> : vector<256x4xf32>
    %152 = tpu.matmul %149, %151, %cst_73 {dimension_numbers = #tpu.dot_dimension_numbers<[1], [0], [0], [1], [0, 0, 1, 1], [], []>} : vector<256x8xf32>, vector<8x4xf32>, vector<256x4xf32> -> vector<256x4xf32>
    %153 = arith.addf %147, %152 : vector<256x4xf32>
    %154 = vector.extract_strided_slice %106 {offsets = [2, 0, 0], sizes = [16, 16, 8], strides = [1, 1, 1]} : vector<18x16x8xf32> to vector<16x16x8xf32>
    %155 = vector.shape_cast %154 : vector<16x16x8xf32> to vector<256x8xf32>
    %c8_74 = arith.constant 8 : index
    %c0_75 = arith.constant 0 : index
    %c0_76 = arith.constant 0 : index
    %156 = vector.load %arg4[%c8_74, %c0_75, %c0_76] : memref<9x8x4xf32, #tpu.memory_space<vmem>>, vector<1x8x4xf32>
    %157 = vector.shape_cast %156 : vector<1x8x4xf32> to vector<8x4xf32>
    %cst_77 = arith.constant dense<0.000000e+00> : vector<256x4xf32>
    %158 = tpu.matmul %155, %157, %cst_77 {dimension_numbers = #tpu.dot_dimension_numbers<[1], [0], [0], [1], [0, 0, 1, 1], [], []>} : vector<256x8xf32>, vector<8x4xf32>, vector<256x4xf32> -> vector<256x4xf32>
    %159 = arith.addf %153, %158 : vector<256x4xf32>
    %160 = vector.shape_cast %159 : vector<256x4xf32> to vector<16x16x4xf32>
    %cst_78 = arith.constant dense<0.000000e+00> : vector<4xf32>
    %161 = vector.multi_reduction <add>, %160, %cst_78 [0, 1] : vector<16x16x4xf32> to vector<4xf32>
    %162 = vector.shape_cast %161 : vector<4xf32> to vector<1x1x4xf32>
    %163 = arith.mulf %160, %160 : vector<16x16x4xf32>
    %cst_79 = arith.constant dense<0.000000e+00> : vector<4xf32>
    %164 = vector.multi_reduction <add>, %163, %cst_79 [0, 1] : vector<16x16x4xf32> to vector<4xf32>
    %165 = vector.shape_cast %164 : vector<4xf32> to vector<1x1x4xf32>
    %cst_80 = arith.constant 3.906250e-03 : f32
    %166 = vector.broadcast %cst_80 : f32 to vector<1x1x4xf32>
    %167 = arith.mulf %162, %166 : vector<1x1x4xf32>
    %cst_81 = arith.constant 3.906250e-03 : f32
    %168 = vector.broadcast %cst_81 : f32 to vector<1x1x4xf32>
    %169 = arith.mulf %165, %168 : vector<1x1x4xf32>
    %170 = arith.mulf %167, %167 : vector<1x1x4xf32>
    %171 = arith.subf %169, %170 : vector<1x1x4xf32>
    %cst_82 = arith.constant 0.000000e+00 : f32
    %172 = vector.broadcast %cst_82 : f32 to vector<1x1x4xf32>
    %173 = arith.maximumf %171, %172 : vector<1x1x4xf32>
    %cst_83 = arith.constant 9.99999974E-6 : f32
    %174 = vector.broadcast %cst_83 : f32 to vector<1x1x4xf32>
    %175 = arith.addf %173, %174 : vector<1x1x4xf32>
    %176 = math.rsqrt %175 : vector<1x1x4xf32>
    %cst_84 = arith.constant 0.000000e+00 : f32
    %177 = vector.broadcast %cst_84 : f32 to vector<1x1x4xf32>
    %178 = arith.subf %177, %167 : vector<1x1x4xf32>
    %179 = arith.mulf %178, %176 : vector<1x1x4xf32>
    %180 = vector.broadcast %176 : vector<1x1x4xf32> to vector<16x16x4xf32>
    %181 = arith.mulf %160, %180 : vector<16x16x4xf32>
    %182 = vector.broadcast %179 : vector<1x1x4xf32> to vector<16x16x4xf32>
    %183 = arith.addf %181, %182 : vector<16x16x4xf32>
    %c0_85 = arith.constant 0 : index
    %c0_86 = arith.constant 0 : index
    %c0_87 = arith.constant 0 : index
    %c0_88 = arith.constant 0 : index
    %184 = vector.load %arg1[%c0_85, %c0_86, %c0_87, %c0_88] : memref<1x16x16x4xf32, #tpu.memory_space<vmem>>, vector<1x16x16x4xf32>
    %185 = vector.shape_cast %184 : vector<1x16x16x4xf32> to vector<16x16x4xf32>
    %186 = arith.addf %185, %183 : vector<16x16x4xf32>
    %c0_89 = arith.constant 0 : index
    %c0_90 = arith.constant 0 : index
    %c0_91 = arith.constant 0 : index
    %c0_92 = arith.constant 0 : index
    %187 = vector.load %arg5[%c0_89, %c0_90, %c0_91, %c0_92] : memref<1x16x16x4xf32, #tpu.memory_space<vmem>>, vector<1x16x16x4xf32>
    %188 = vector.shape_cast %187 : vector<1x16x16x4xf32> to vector<16x16x4xf32>
    %189 = vector.shape_cast %186 : vector<16x16x4xf32> to vector<1x16x16x4xf32>
    tpu.vector_store %arg5[%c0_89, %c0_90, %c0_91, %c0_92], %189 {strides = array<i32>} : memref<1x16x16x4xf32, #tpu.memory_space<vmem>>, vector<1x16x16x4xf32>,
    return
  }
  func.func @transform_0(%arg0: i32) -> (i32, i32, i32, i32) {
    %c0_i32 = arith.constant 0 : i32
    %c0_i32_0 = arith.constant 0 : i32
    %c0_i32_1 = arith.constant 0 : i32
    %c0_i32_2 = arith.constant 0 : i32
    return %arg0, %c0_i32, %c0_i32_0, %c0_i32_1 : i32, i32, i32, i32
  }
  func.func @transform_1(%arg0: i32) -> (i32, i32, i32) {
    %c0_i32 = arith.constant 0 : i32
    %c0_i32_0 = arith.constant 0 : i32
    %c0_i32_1 = arith.constant 0 : i32
    %c0_i32_2 = arith.constant 0 : i32
    return %c0_i32, %c0_i32_0, %c0_i32_1 : i32, i32, i32
  }
  func.func @transform_2(%arg0: i32) -> (i32, i32) {
    %c0_i32 = arith.constant 0 : i32
    %c0_i32_0 = arith.constant 0 : i32
    %c0_i32_1 = arith.constant 0 : i32
    return %c0_i32, %c0_i32_0 : i32, i32
  }
  func.func @transform_3(%arg0: i32) -> (i32, i32, i32) {
    %c0_i32 = arith.constant 0 : i32
    %c0_i32_0 = arith.constant 0 : i32
    %c0_i32_1 = arith.constant 0 : i32
    %c0_i32_2 = arith.constant 0 : i32
    return %c0_i32, %c0_i32_0, %c0_i32_1 : i32, i32, i32
  }
  func.func @transform_4(%arg0: i32) -> (i32, i32, i32, i32) {
    %c0_i32 = arith.constant 0 : i32
    %c0_i32_0 = arith.constant 0 : i32
    %c0_i32_1 = arith.constant 0 : i32
    %c0_i32_2 = arith.constant 0 : i32
    return %arg0, %c0_i32, %c0_i32_0, %c0_i32_1 : i32, i32, i32, i32
  }
}

</mosaic_0001>

<bundles_post_ra>
// kernel: tpu_custom_call.1
= control target key start
LH: loop header
LB: loop body
LE: loop exit
PB: predicated region body
PF: predicated region fallthrough
CT: control target
= control target key end

     0   :  { %s9036_s15 = smov 0   ;;  %s11937_s0 = inlined_call_operand.vmem [shape: f32[2,16,16,4], index: 0, kind: input, shape index: {}]   ;;  %s11938_s1 = inlined_call_operand.vmem [shape: f32[9,4,8], index: 1, kind: input, shape index: {}]   ;;  %s11939_s2 = inlined_call_operand.vmem [shape: f32[2,8], index: 2, kind: input, shape index: {}]   ;;  %s11940_s3 = inlined_call_operand.vmem [shape: f32[9,8,4], index: 3, kind: input, shape index: {}]   ;;  %s11941_s4 = inlined_call_operand.vmem [shape: f32[2,16,16,4], index: 4, kind: output, shape index: {}]  }
   0x1 LB: > { %s6339_s16 = sadd.s32 4294967295, %s9009_s15   ;;  %p6343_p0 = scmp.ge.s32.totalorder %s9009_s15, 1  ;;  %s9009_s15 = sphi %s9036_s15, %s14_s15  }
   0x2   : > { %p162_p1 = scmp.lt.s32.totalorder %s9009_s15, 3 }
   0x4   : > { %p163_p2 = pnand %p6343_p0, %p162_p1 }
   0x6   : > { %166 = sbr.rel (%p163_p2) target bundleno = 1724 (0x6bc), region = 36 }
   0xd   : > { %v6348_v0 = vld [vmem:[%s11938_s1 + $0x4] sm:$0xf]  ;;  %vm520_vm0 = vcmask 1043456   ;;  %p188_p3 = scmp.lt.s32.totalorder %s6339_s16, 1  ;;  %v456_v1 = vld [vmem:[%s11938_s1] sm:$0xf] }
   0xe   : > { %7547 = vmatprep.subr.msk.mxu0 %vm520_vm0, %v6348_v0  ;;  %vm459_vm1 = vcmask 31744   ;;  %v9077_v5 = vld [vmem:[%s11938_s1 + $0x8] sm:$0xf]  ;;  %vm294_vm2 = vcmask 1040384   ;;  %v9251_v42 = vld [vmem:[%s11938_s1 + $0xc] sm:$0xf] }
   0xf   : > { %7548 = vmatpush3.msk.msra.mxu0 %vm520_vm0, %v6348_v0  ;;  %s12426_s16 = smov (!%p188_p3, %s6339_s16), 1  ;;  %vm375_vm3 = vcmask 1046528   ;;  %vm2977_vm4 = vcmask 64512  }
  0x10   : > { %7597 = vmatprep.subr.msk.mxu0 %vm520_vm0, %v456_v1  ;;  %s6951_s21 = sshll.u32 %s12426_s16, 8 }
  0x11   : > { %s9061_s24 = scalar_lea.vmem %s11937_s0, %s6951_s21  ;;  %s11808_s17 = scalar_lea.vmem %s11941_s4, %s6951_s21 }
  0x12   : > { %v9064_v2 = vld [vmem:[%s9061_s24 + $0x10] sm:$0xff]  ;;  %v9067_v3 = vld [vmem:[%s9061_s24 + $0x18] sm:$0xff]  ;;  %v9070_v4 = vld [vmem:[%s9061_s24] sm:$0xff] }
  0x13   : > { %12152 = vst [vmem:[#allocation2_spill] sm:$0xff] %v9067_v3  ;;  %7549 = vmatprep.mubr.msk.f32.mxu0 %vm459_vm1, %v9064_v2  ;;  %v9085_v6 = vld [vmem:[%s9061_s24 + $0x8] sm:$0xff]  ;;  %v9094_v7 = vld [vmem:[%s9061_s24 + $0x20] sm:$0xff]  ;;  %v9104_v9 = vld [vmem:[%s9061_s24 + $0x30] sm:$0xff]  ;;  %v11966_v32 = vrot.slane %v9064_v2, 1  ;;  %v295_v33 = vrot.slane %v9064_v2, 7 }
  0x14   : > { %7550 = vmatmul.mubr.msk.f32.vlgmr.msra.gmra.mrb[0].mxu0 %vm459_vm1, %v9067_v3  ;;  %v9101_v8 = vld [vmem:[%s9061_s24 + $0x28] sm:$0xff]  ;;  %v9111_v10 = vld [vmem:[%s9061_s24 + $0x38] sm:$0xff]  ;;  %v9114_v11 = vld [vmem:[%s9061_s24 + $0x40] sm:$0xff]  ;;  %v11963_v35 = vrot.slane %v9067_v3, 7  ;;  %v11962_v37 = vrot.slane %v9070_v4, 1  ;;  %v298_v38 = vrot.slane %v9070_v4, 7 }
  0x15   : > { %7598 = vmatpush3.msk.msra.mxu0 %vm520_vm0, %v456_v1  ;;  %7552 = vmatprep.mubr.msk.f32.mxu0 %vm459_vm1, %v9070_v4  ;;  %v9121_v12 = vld [vmem:[%s9061_s24 + $0x48] sm:$0xff]  ;;  %v9124_v13 = vld [vmem:[%s9061_s24 + $0x50] sm:$0xff]  ;;  %v9131_v14 = vld [vmem:[%s9061_s24 + $0x58] sm:$0xff]  ;;  %v9229_v36 = vsel %vm294_vm2, %v11966_v32, %v295_v33  ;;  %v11959_v40 = vrot.slane %v9085_v6, 7  ;;  %v11958_v44 = vrot.slane %v9094_v7, 1  ;;  %v301_v45 = vrot.slane %v9094_v7, 7 }
  0x16   : > { %7647 = vmatprep.subr.msk.mxu0 %vm520_vm0, %v9077_v5  ;;  %v9134_v15 = vld [vmem:[%s9061_s24 + $0x60] sm:$0xff]  ;;  %v9141_v16 = vld [vmem:[%s9061_s24 + $0x68] sm:$0xff]  ;;  %v9144_v17 = vld [vmem:[%s9061_s24 + $0x70] sm:$0xff]  ;;  %v9240_v39 = vsel %vm294_vm2, %v295_v33, %v11963_v35  ;;  %v9246_v41 = vsel %vm294_vm2, %v11962_v37, %v298_v38  ;;  %v11955_v46 = vrot.slane %v9101_v8, 7  ;;  %v11954_v48 = vrot.slane %v9104_v9, 1 }
  0x17   : > { %v9151_v18 = vld [vmem:[%s9061_s24 + $0x78] sm:$0xff]  ;;  %v9154_v19 = vld [vmem:[%s9061_s24 + $0x80] sm:$0xff]  ;;  %v9161_v20 = vld [vmem:[%s9061_s24 + $0x88] sm:$0xff]  ;;  %v9262_v43 = vsel %vm294_vm2, %v298_v38, %v11959_v40  ;;  %v9276_v47 = vsel %vm294_vm2, %v11958_v44, %v301_v45  ;;  %v304_v49 = vrot.slane %v9104_v9, 7  ;;  %v11951_v51 = vrot.slane %v9111_v10, 7 }
  0x18   : > { %7553 = vmatmul.mubr.msk.f32.gmra.mrb[2].mxu0 %vm459_vm1, %v9085_v6  ;;  %v9164_v21 = vld [vmem:[%s9061_s24 + $0x90] sm:$0xff]  ;;  %v9171_v22 = vld [vmem:[%s9061_s24 + $0x98] sm:$0xff]  ;;  %v9174_v23 = vld [vmem:[%s9061_s24 + $0xa0] sm:$0xff]  ;;  %v9287_v50 = vsel %vm294_vm2, %v301_v45, %v11955_v46  ;;  %v11950_v53 = vrot.slane %v9114_v11, 1  ;;  %v307_v54 = vrot.slane %v9114_v11, 7  ;;  %v11947_v56 = vrot.slane %v9121_v12, 7 }
  0x19   : > { %7555 = vmatprep.mubr.msk.f32.mxu0 %vm459_vm1, %v9064_v2  ;;  %v9181_v24 = vld [vmem:[%s9061_s24 + $0xa8] sm:$0xff]  ;;  %v9184_v25 = vld [vmem:[%s9061_s24 + $0xb0] sm:$0xff]  ;;  %v9191_v26 = vld [vmem:[%s9061_s24 + $0xb8] sm:$0xff]  ;;  %v9293_v52 = vsel %vm294_vm2, %v11954_v48, %v304_v49  ;;  %v9304_v55 = vsel %vm294_vm2, %v304_v49, %v11951_v51  ;;  %v11946_v58 = vrot.slane %v9124_v13, 1  ;;  %v310_v59 = vrot.slane %v9124_v13, 7 }
  0x1a   : > { %v9194_v27 = vld [vmem:[%s9061_s24 + $0xc0] sm:$0xff]  ;;  %v9201_v28 = vld [vmem:[%s9061_s24 + $0xc8] sm:$0xff]  ;;  %v9204_v29 = vld [vmem:[%s9061_s24 + $0xd0] sm:$0xff]  ;;  %v9310_v57 = vsel %vm294_vm2, %v11950_v53, %v307_v54  ;;  %v9321_v60 = vsel %vm294_vm2, %v307_v54, %v11947_v56  ;;  %v11943_v61 = vrot.slane %v9131_v14, 7  ;;  %v11942_v63 = vrot.slane %v9134_v15, 1 }
  0x1b   : > { %12153 = vst [vmem:[#allocation3_spill] sm:$0xff] %v9204_v29  ;;  %v9211_v30 = vld [vmem:[%s9061_s24 + $0xd8] sm:$0xff]  ;;  %v9214_v31 = vld [vmem:[%s9061_s24 + $0xe0] sm:$0xff]  ;;  %v9223_v34 = vld [vmem:[%s9061_s24 + $0xe8] sm:$0xff]  ;;  %v9327_v62 = vsel %vm294_vm2, %v11946_v58, %v310_v59  ;;  %v313_v0 = vrot.slane %v9134_v15, 7  ;;  %v11945_v38 = vrot.slane %v9144_v17, 1 }
  0x1c   : > { %7556 = vmatmul.mubr.msk.f32.gmra.mrb[4].mxu0 %vm459_vm1, %v9067_v3  ;;  %12154 = vst [vmem:[#allocation4_spill] sm:$0xff] %v9211_v30  ;;  %12155 = vst [vmem:[#allocation5_spill] sm:$0xff] %v9214_v31  ;;  %v9338_v1 = vsel %vm294_vm2, %v310_v59, %v11943_v61  ;;  %v316_v45 = vrot.slane %v9144_v17, 7  ;;  %v11948_v54 = vrot.slane %v9151_v18, 7  ;;  %v319_v61 = vrot.slane %v9154_v19, 7 }
  0x1d   : > { %7558 = vmatprep.mubr.msk.f32.mxu0 %vm459_vm1, %v9094_v7  ;;  %12156 = vst [vmem:[#allocation6_spill] sm:$0xff] %v9223_v34  ;;  %v9344_v33 = vsel %vm294_vm2, %v11942_v63, %v313_v0  ;;  %v11949_v63 = vrot.slane %v9154_v19, 1  ;;  %v11953_v58 = vrot.slane %v9164_v21, 1  ;;  %v322_v56 = vrot.slane %v9164_v21, 7 }
  0x1e   : > { %v9361_v59 = vsel %vm294_vm2, %v11945_v38, %v316_v45  ;;  %v11957_v53 = vrot.slane %v9174_v23, 1  ;;  %v325_v51 = vrot.slane %v9174_v23, 7  ;;  %v11961_v48 = vrot.slane %v9184_v25, 1 }
  0x1f   : > { %v9378_v38 = vsel %vm294_vm2, %v11949_v63, %v319_v61  ;;  %v9395_v63 = vsel %vm294_vm2, %v11953_v58, %v322_v56  ;;  %v328_v46 = vrot.slane %v9184_v25, 7  ;;  %v11965_v44 = vrot.slane %v9194_v27, 1 }
  0x20   : > { %7559 = vmatmul.mubr.msk.f32.gmra.mrb[6].mxu0 %vm459_vm1, %v9101_v8  ;;  %v9412_v58 = vsel %vm294_vm2, %v11957_v53, %v325_v51  ;;  %v331_v40 = vrot.slane %v9194_v27, 7  ;;  %v11970_v37 = vrot.slane %v9204_v29, 1  ;;  %v334_v35 = vrot.slane %v9204_v29, 7 }
  0x21   : > { %7561 = vmatprep.mubr.msk.f32.mxu0 %vm459_vm1, %v9104_v9  ;;  %v9429_v53 = vsel %vm294_vm2, %v11961_v48, %v328_v46  ;;  %v11976_v32 = vrot.slane %v9214_v31, 1 }
  0x22   : > { %12157 = vst [vmem:[#allocation7_spill] sm:$0xff] %v9429_v53  ;;  %v9446_v48 = vsel %vm294_vm2, %v11965_v44, %v331_v40  ;;  %v9463_v44 = vsel %vm294_vm2, %v11970_v37, %v334_v35 }
  0x23   : > { %12159 = vst [vmem:[#allocation9_spill] sm:$0xff] %v9446_v48  ;;  %12161 = vst [vmem:[#allocation11_spill] sm:$0xff] %v9463_v44 }
  0x24   : > { %7562 = vmatmul.mubr.msk.f32.gmra.mrb[8].mxu0 %vm459_vm1, %v9111_v10 }
  0x25   : > { %7564 = vmatprep.mubr.msk.f32.mxu0 %vm459_vm1, %v9114_v11 }
  0x28   : > { %7565 = vmatmul.mubr.msk.f32.gmra.mrb[10].mxu0 %vm459_vm1, %v9121_v12 }
  0x29   : > { %7567 = vmatprep.mubr.msk.f32.mxu0 %vm459_vm1, %v9124_v13 }
  0x2c   : > { %7568 = vmatmul.mubr.msk.f32.gmra.mrb[12].mxu0 %vm459_vm1, %v9131_v14 }
  0x2d   : > { %7570 = vmatprep.mubr.msk.f32.mxu0 %vm459_vm1, %v9134_v15 }
  0x30   : > { %7571 = vmatmul.mubr.msk.f32.gmra.mrb[14].mxu0 %vm459_vm1, %v9141_v16 }
  0x31   : > { %7573 = vmatprep.mubr.msk.f32.mxu0 %vm459_vm1, %v9144_v17 }
  0x34   : > { %7574 = vmatmul.mubr.msk.f32.gmra.mrb[16].mxu0 %vm459_vm1, %v9151_v18 }
  0x35   : > { %7576 = vmatprep.mubr.msk.f32.mxu0 %vm459_vm1, %v9154_v19 }
  0x38   : > { %7577 = vmatmul.mubr.msk.f32.gmra.mrb[18].mxu0 %vm459_vm1, %v9161_v20 }
  0x39   : > { %7579 = vmatprep.mubr.msk.f32.mxu0 %vm459_vm1, %v9164_v21 }
  0x3c   : > { %7580 = vmatmul.mubr.msk.f32.gmra.mrb[20].mxu0 %vm459_vm1, %v9171_v22 }
  0x3d   : > { %7582 = vmatprep.mubr.msk.f32.mxu0 %vm459_vm1, %v9174_v23 }
  0x40   : > { %7583 = vmatmul.mubr.msk.f32.gmra.mrb[22].mxu0 %vm459_vm1, %v9181_v24 }
  0x41   : > { %7585 = vmatprep.mubr.msk.f32.mxu0 %vm459_vm1, %v9184_v25 }
  0x44   : > { %7586 = vmatmul.mubr.msk.f32.gmra.mrb[24].mxu0 %vm459_vm1, %v9191_v26 }
  0x45   : > { %7588 = vmatprep.mubr.msk.f32.mxu0 %vm459_vm1, %v9194_v27 }
  0x48   : > { %7589 = vmatmul.mubr.msk.f32.gmra.mrb[26].mxu0 %vm459_vm1, %v9201_v28 }
  0x49   : > { %7591 = vmatprep.mubr.msk.f32.mxu0 %vm459_vm1, %v9204_v29 }
  0x4c   : > { %7592 = vmatmul.mubr.msk.f32.gmra.mrb[28].mxu0 %vm459_vm1, %v9211_v30 }
  0x4d   : > { %7594 = vmatprep.mubr.msk.f32.mxu0 %vm459_vm1, %v9214_v31 }
  0x50   : > { %7595 = vmatmul.mubr.msk.f32.gmra.mrb[30].mxu0 %vm459_vm1, %v9223_v34 }
  0x51   : > { %7599 = vmatprep.mubr.msk.f32.mxu0 %vm459_vm1, %v9229_v36 }
  0x54   : > { %7600 = vmatmul.mubr.msk.f32.vlgmr.msra.gmra.mrb[0].mxu0 %vm459_vm1, %v9240_v39 }
  0x55   : > { %7648 = vmatpush3.msk.msra.mxu0 %vm520_vm0, %v9077_v5  ;;  %7602 = vmatprep.mubr.msk.f32.mxu0 %vm459_vm1, %v9246_v41  ;;  %v11944_v5 = vrot.slane %v9141_v16, 7 }
  0x56   : > { %7697 = vmatprep.subr.msk.mxu0 %vm520_vm0, %v9251_v42 }
  0x57   : > { %v9355_v49 = vsel %vm294_vm2, %v313_v0, %v11944_v5  ;;  %v9372_v0 = vsel %vm294_vm2, %v316_v45, %v11948_v54  ;;  %v11952_v5 = vrot.slane %v9161_v20, 7  ;;  %v11956_v54 = vrot.slane %v9171_v22, 7 }
  0x58   : > { %7603 = vmatmul.mubr.msk.f32.gmra.mrb[2].mxu0 %vm459_vm1, %v9262_v43 }
  0x59   : > { %7605 = vmatprep.mubr.msk.f32.mxu0 %vm459_vm1, %v9229_v36  ;;  %v9389_v45 = vsel %vm294_vm2, %v319_v61, %v11952_v5  ;;  %v9406_v61 = vsel %vm294_vm2, %v322_v56, %v11956_v54  ;;  %v11960_v5 = vrot.slane %v9181_v24, 7  ;;  %v11964_v54 = vrot.slane %v9191_v26, 7 }
  0x5b   : > { %v9423_v56 = vsel %vm294_vm2, %v325_v51, %v11960_v5  ;;  %v9440_v51 = vsel %vm294_vm2, %v328_v46, %v11964_v54  ;;  %v11969_v5 = vrot.slane %v9201_v28, 7  ;;  %v11973_v54 = vrot.slane %v9211_v30, 7 }
  0x5c   : > { %7606 = vmatmul.mubr.msk.f32.gmra.mrb[4].mxu0 %vm459_vm1, %v9240_v39  ;;  %12158 = vst [vmem:[#allocation8_spill] sm:$0xff] %v9440_v51 }
  0x5d   : > { %7608 = vmatprep.mubr.msk.f32.mxu0 %vm459_vm1, %v9276_v47  ;;  %v9457_v46 = vsel %vm294_vm2, %v331_v40, %v11969_v5  ;;  %v9474_v40 = vsel %vm294_vm2, %v334_v35, %v11973_v54  ;;  %v11981_v5 = vrot.slane %v9223_v34, 7  ;;  %v12164_v54 = vrot.slane %v9064_v2, 1 }
  0x5e   : > { %12160 = vst [vmem:[#allocation10_spill] sm:$0xff] %v9457_v46  ;;  %12162 = vst [vmem:[#allocation12_spill] sm:$0xff] %v9474_v40 }
  0x60   : > { %7609 = vmatmul.mubr.msk.f32.gmra.mrb[6].mxu0 %vm459_vm1, %v9287_v50 }
  0x61   : > { %7611 = vmatprep.mubr.msk.f32.mxu0 %vm459_vm1, %v9293_v52 }
  0x64   : > { %7612 = vmatmul.mubr.msk.f32.gmra.mrb[8].mxu0 %vm459_vm1, %v9304_v55 }
  0x65   : > { %7614 = vmatprep.mubr.msk.f32.mxu0 %vm459_vm1, %v9310_v57 }
  0x68   : > { %7615 = vmatmul.mubr.msk.f32.gmra.mrb[10].mxu0 %vm459_vm1, %v9321_v60 }
  0x69   : > { %7617 = vmatprep.mubr.msk.f32.mxu0 %vm459_vm1, %v9327_v62 }
  0x6c   : > { %7618 = vmatmul.mubr.msk.f32.gmra.mrb[12].mxu0 %vm459_vm1, %v9338_v1 }
  0x6d   : > { %7620 = vmatprep.mubr.msk.f32.mxu0 %vm459_vm1, %v9344_v33 }
  0x70   : > { %7621 = vmatmul.mubr.msk.f32.gmra.mrb[14].mxu0 %vm459_vm1, %v9355_v49 }
  0x71   : > { %7623 = vmatprep.mubr.msk.f32.mxu0 %vm459_vm1, %v9361_v59 }
  0x74   : > { %7624 = vmatmul.mubr.msk.f32.gmra.mrb[16].mxu0 %vm459_vm1, %v9372_v0 }
  0x75   : > { %7626 = vmatprep.mubr.msk.f32.mxu0 %vm459_vm1, %v9378_v38 }
  0x78   : > { %7627 = vmatmul.mubr.msk.f32.gmra.mrb[18].mxu0 %vm459_vm1, %v9389_v45 }
  0x79   : > { %7629 = vmatprep.mubr.msk.f32.mxu0 %vm459_vm1, %v9395_v63 }
  0x7c   : > { %7630 = vmatmul.mubr.msk.f32.gmra.mrb[20].mxu0 %vm459_vm1, %v9406_v61 }
  0x7d   : > { %7632 = vmatprep.mubr.msk.f32.mxu0 %vm459_vm1, %v9412_v58 }
  0x80   : > { %7633 = vmatmul.mubr.msk.f32.gmra.mrb[22].mxu0 %vm459_vm1, %v9423_v56 }
  0x81   : > { %7635 = vmatprep.mubr.msk.f32.mxu0 %vm459_vm1, %v9429_v53  ;;  %v337_v53 = vrot.slane %v9214_v31, 7 }
  0x83   : > { %v9480_v37 = vsel %vm294_vm2, %v11976_v32, %v337_v53  ;;  %v9490_v35 = vsel %vm294_vm2, %v337_v53, %v11981_v5  ;;  %v378_v32 = vrot.slane %v9085_v6, 1  ;;  %v12168_v53 = vrot.slane %v9070_v4, 1 }
  0x84   : > { %7636 = vmatmul.mubr.msk.f32.gmra.mrb[24].mxu0 %vm459_vm1, %v9440_v51  ;;  %12163 = vst [vmem:[#allocation13_spill] sm:$0xff] %v9480_v37 }
  0x85   : > { %7638 = vmatprep.mubr.msk.f32.mxu0 %vm459_vm1, %v9446_v48  ;;  %v376_v48 = vrot.slane %v9067_v3, 1  ;;  %v9510_v5 = vsel %vm375_vm3, %v12168_v53, %v378_v32  ;;  %v380_v53 = vrot.slane %v9101_v8, 1 }
  0x86   : > { %12169 = vst [vmem:[#allocation16_spill] sm:$0xff] %v9510_v5 }
  0x88   : > { %7639 = vmatmul.mubr.msk.f32.gmra.mrb[26].mxu0 %vm459_vm1, %v9457_v46 }
  0x89   : > { %7641 = vmatprep.mubr.msk.f32.mxu0 %vm459_vm1, %v9463_v44  ;;  %v9495_v44 = vsel %vm375_vm3, %v12164_v54, %v376_v48  ;;  %v9515_v54 = vld [vmem:[%s11938_s1 + $0x10] sm:$0xf] }
  0x8a   : > { %12165 = vst [vmem:[#allocation14_spill] sm:$0xff] %v9495_v44 }
  0x8c   : > { %7642 = vmatmul.mubr.msk.f32.gmra.mrb[28].mxu0 %vm459_vm1, %v9474_v40 }
  0x8d   : > { %7644 = vmatprep.mubr.msk.f32.mxu0 %vm459_vm1, %v9480_v37  ;;  %v12166_v37 = vrot.slane %v9067_v3, 7  ;;  %v382_v3 = vrot.slane %v9111_v10, 1 }
  0x8f   : > { %v9505_v40 = vsel %vm375_vm3, %v376_v48, %v12166_v37  ;;  %v12170_v37 = vrot.slane %v9085_v6, 7 }
  0x90   : > { %7645 = vmatmul.mubr.msk.f32.gmra.mrb[30].mxu0 %vm459_vm1, %v9490_v35  ;;  %12167 = vst [vmem:[#allocation15_spill] sm:$0xff] %v9505_v40 }
  0x91   : > { %7649 = vmatprep.mubr.msk.f32.mxu0 %vm459_vm1, %v9495_v44  ;;  %v9526_v48 = vsel %vm375_vm3, %v378_v32, %v12170_v37  ;;  %v12174_v32 = vrot.slane %v9101_v8, 7 }
  0x92   : > { %12171 = vst [vmem:[#allocation17_spill] sm:$0xff] %v9526_v48 }
  0x93   : > { %v9548_v37 = vsel %vm375_vm3, %v380_v53, %v12174_v32 }
  0x94   : > { %7650 = vmatmul.mubr.msk.f32.vlgmr.msra.gmra.mrb[0].mxu0 %vm459_vm1, %v9505_v40  ;;  %12175 = vst [vmem:[#allocation19_spill] sm:$0xff] %v9548_v37 }
  0x95   : > { %7698 = vmatpush3.msk.msra.mxu0 %vm520_vm0, %v9251_v42  ;;  %7652 = vmatprep.mubr.msk.f32.mxu0 %vm459_vm1, %v9510_v5  ;;  %v12172_v42 = vrot.slane %v9094_v7, 1 }
  0x96   : > { %7747 = vmatprep.subr.msk.mxu0 %vm520_vm0, %v9515_v54 }
  0x97   : > { %v9538_v5 = vsel %vm375_vm3, %v12172_v42, %v380_v53  ;;  %v384_v42 = vrot.slane %v9121_v12, 1  ;;  %v12180_v53 = vrot.slane %v9114_v11, 1 }
  0x98   : > { %7653 = vmatmul.mubr.msk.f32.gmra.mrb[2].mxu0 %vm459_vm1, %v9526_v48  ;;  %12173 = vst [vmem:[#allocation18_spill] sm:$0xff] %v9538_v5 }
  0x99   : > { %7655 = vmatprep.mubr.msk.f32.mxu0 %vm459_vm1, %v9495_v44  ;;  %v12176_v44 = vrot.slane %v9104_v9, 1  ;;  %v9568_v32 = vsel %vm375_vm3, %v12180_v53, %v384_v42  ;;  %v388_v53 = vrot.slane %v9141_v16, 1 }
  0x9a   : > { %12181 = vst [vmem:[#allocation22_spill] sm:$0xff] %v9568_v32 }
  0x9b   : > { %v9553_v48 = vsel %vm375_vm3, %v12176_v44, %v382_v3  ;;  %v386_v44 = vrot.slane %v9131_v14, 1 }
  0x9c   : > { %7656 = vmatmul.mubr.msk.f32.gmra.mrb[4].mxu0 %vm459_vm1, %v9505_v40  ;;  %12177 = vst [vmem:[#allocation20_spill] sm:$0xff] %v9553_v48 }
  0x9d   : > { %7658 = vmatprep.mubr.msk.f32.mxu0 %vm459_vm1, %v9538_v5  ;;  %v12178_v5 = vrot.slane %v9111_v10, 7 }
  0x9f   : > { %v9563_v40 = vsel %vm375_vm3, %v382_v3, %v12178_v5  ;;  %v12184_v3 = vrot.slane %v9124_v13, 1 }
  0xa0   : > { %7659 = vmatmul.mubr.msk.f32.gmra.mrb[6].mxu0 %vm459_vm1, %v9548_v37  ;;  %12179 = vst [vmem:[#allocation21_spill] sm:$0xff] %v9563_v40 }
  0xa1   : > { %7661 = vmatprep.mubr.msk.f32.mxu0 %vm459_vm1, %v9553_v48  ;;  %v12182_v48 = vrot.slane %v9121_v12, 7  ;;  %v9583_v5 = vsel %vm375_vm3, %v12184_v3, %v386_v44  ;;  %v390_v3 = vrot.slane %v9151_v18, 1 }
  0xa2   : > { %12185 = vst [vmem:[#allocation24_spill] sm:$0xff] %v9583_v5 }
  0xa3   : > { %v9578_v37 = vsel %vm375_vm3, %v384_v42, %v12182_v48  ;;  %v12188_v48 = vrot.slane %v9134_v15, 1 }
  0xa4   : > { %7662 = vmatmul.mubr.msk.f32.gmra.mrb[8].mxu0 %vm459_vm1, %v9563_v40  ;;  %12183 = vst [vmem:[#allocation23_spill] sm:$0xff] %v9578_v37 }
  0xa5   : > { %7664 = vmatprep.mubr.msk.f32.mxu0 %vm459_vm1, %v9568_v32  ;;  %v12186_v32 = vrot.slane %v9131_v14, 7  ;;  %v9598_v42 = vsel %vm375_vm3, %v12188_v48, %v388_v53  ;;  %v392_v48 = vrot.slane %v9161_v20, 1 }
  0xa6   : > { %12189 = vst [vmem:[#allocation26_spill] sm:$0xff] %v9598_v42 }
  0xa7   : > { %v9593_v40 = vsel %vm375_vm3, %v386_v44, %v12186_v32  ;;  %v12192_v32 = vrot.slane %v9144_v17, 1 }
  0xa8   : > { %7665 = vmatmul.mubr.msk.f32.gmra.mrb[10].mxu0 %vm459_vm1, %v9578_v37  ;;  %12187 = vst [vmem:[#allocation25_spill] sm:$0xff] %v9593_v40 }
  0xa9   : > { %7667 = vmatprep.mubr.msk.f32.mxu0 %vm459_vm1, %v9583_v5  ;;  %v12190_v5 = vrot.slane %v9141_v16, 7  ;;  %v9613_v44 = vsel %vm375_vm3, %v12192_v32, %v390_v3  ;;  %v394_v32 = vrot.slane %v9171_v22, 1 }
  0xaa   : > { %12193 = vst [vmem:[#allocation28_spill] sm:$0xff] %v9613_v44 }
  0xab   : > { %v9608_v37 = vsel %vm375_vm3, %v388_v53, %v12190_v5  ;;  %v12196_v5 = vrot.slane %v9154_v19, 1 }
  0xac   : > { %7668 = vmatmul.mubr.msk.f32.gmra.mrb[12].mxu0 %vm459_vm1, %v9593_v40  ;;  %12191 = vst [vmem:[#allocation27_spill] sm:$0xff] %v9608_v37 }
  0xad   : > { %7670 = vmatprep.mubr.msk.f32.mxu0 %vm459_vm1, %v9598_v42  ;;  %v12194_v42 = vrot.slane %v9151_v18, 7  ;;  %v9628_v53 = vsel %vm375_vm3, %v12196_v5, %v392_v48  ;;  %v396_v5 = vrot.slane %v9181_v24, 1 }
  0xae   : > { %12197 = vst [vmem:[#allocation30_spill] sm:$0xff] %v9628_v53 }
  0xaf   : > { %v9623_v40 = vsel %vm375_vm3, %v390_v3, %v12194_v42  ;;  %v12200_v42 = vrot.slane %v9164_v21, 1 }
  0xb0   : > { %7671 = vmatmul.mubr.msk.f32.gmra.mrb[14].mxu0 %vm459_vm1, %v9608_v37  ;;  %12195 = vst [vmem:[#allocation29_spill] sm:$0xff] %v9623_v40 }
  0xb1   : > { %7673 = vmatprep.mubr.msk.f32.mxu0 %vm459_vm1, %v9613_v44  ;;  %v12198_v44 = vrot.slane %v9161_v20, 7  ;;  %v9643_v3 = vsel %vm375_vm3, %v12200_v42, %v394_v32  ;;  %v398_v42 = vrot.slane %v9191_v26, 1 }
  0xb2   : > { %12201 = vst [vmem:[#allocation32_spill] sm:$0xff] %v9643_v3 }
  0xb3   : > { %v9638_v37 = vsel %vm375_vm3, %v392_v48, %v12198_v44  ;;  %v12204_v44 = vrot.slane %v9174_v23, 1 }
  0xb4   : > { %7674 = vmatmul.mubr.msk.f32.gmra.mrb[16].mxu0 %vm459_vm1, %v9623_v40  ;;  %12199 = vst [vmem:[#allocation31_spill] sm:$0xff] %v9638_v37 }
  0xb5   : > { %7676 = vmatprep.mubr.msk.f32.mxu0 %vm459_vm1, %v9628_v53  ;;  %v12202_v53 = vrot.slane %v9171_v22, 7  ;;  %v9658_v48 = vsel %vm375_vm3, %v12204_v44, %v396_v5  ;;  %v400_v44 = vrot.slane %v9201_v28, 1 }
  0xb6   : > { %12205 = vst [vmem:[#allocation34_spill] sm:$0xff] %v9658_v48 }
  0xb7   : > { %v9653_v40 = vsel %vm375_vm3, %v394_v32, %v12202_v53  ;;  %v12208_v53 = vrot.slane %v9184_v25, 1 }
  0xb8   : > { %7677 = vmatmul.mubr.msk.f32.gmra.mrb[18].mxu0 %vm459_vm1, %v9638_v37  ;;  %12203 = vst [vmem:[#allocation33_spill] sm:$0xff] %v9653_v40 }
  0xb9   : > { %7679 = vmatprep.mubr.msk.f32.mxu0 %vm459_vm1, %v9643_v3  ;;  %v12206_v3 = vrot.slane %v9181_v24, 7  ;;  %v9673_v32 = vsel %vm375_vm3, %v12208_v53, %v398_v42  ;;  %v402_v53 = vrot.slane %v9211_v30, 1 }
  0xba   : > { %12209 = vst [vmem:[#allocation36_spill] sm:$0xff] %v9673_v32 }
  0xbb   : > { %v9668_v37 = vsel %vm375_vm3, %v396_v5, %v12206_v3  ;;  %v12212_v3 = vrot.slane %v9194_v27, 1 }
  0xbc   : > { %7680 = vmatmul.mubr.msk.f32.gmra.mrb[20].mxu0 %vm459_vm1, %v9653_v40  ;;  %12207 = vst [vmem:[#allocation35_spill] sm:$0xff] %v9668_v37 }
  0xbd   : > { %7682 = vmatprep.mubr.msk.f32.mxu0 %vm459_vm1, %v9658_v48  ;;  %v12210_v48 = vrot.slane %v9191_v26, 7  ;;  %v9688_v5 = vsel %vm375_vm3, %v12212_v3, %v400_v44  ;;  %v404_v3 = vrot.slane %v9223_v34, 1 }
  0xbe   : > { %12213 = vst [vmem:[#allocation38_spill] sm:$0xff] %v9688_v5 }
  0xbf   : > { %v9683_v40 = vsel %vm375_vm3, %v398_v42, %v12210_v48  ;;  %v12216_v48 = vrot.slane %v9204_v29, 1 }
  0xc0   : > { %7683 = vmatmul.mubr.msk.f32.gmra.mrb[22].mxu0 %vm459_vm1, %v9668_v37  ;;  %12211 = vst [vmem:[#allocation37_spill] sm:$0xff] %v9683_v40 }
  0xc1   : > { %7685 = vmatprep.mubr.msk.f32.mxu0 %vm459_vm1, %v9673_v32  ;;  %v12214_v32 = vrot.slane %v9201_v28, 7  ;;  %v9703_v42 = vsel %vm375_vm3, %v12216_v48, %v402_v53  ;;  %v12220_v48 = vrot.slane %v9223_v34, 7 }
  0xc2   : > { %12217 = vst [vmem:[#allocation40_spill] sm:$0xff] %v9703_v42 }
  0xc3   : > { %v9698_v37 = vsel %vm375_vm3, %v400_v44, %v12214_v32  ;;  %v12219_v32 = vrot.slane %v9214_v31, 1 }
  0xc4   : > { %7686 = vmatmul.mubr.msk.f32.gmra.mrb[24].mxu0 %vm459_vm1, %v9683_v40  ;;  %12215 = vst [vmem:[#allocation39_spill] sm:$0xff] %v9698_v37 }
  0xc5   : > { %7688 = vmatprep.mubr.msk.f32.mxu0 %vm459_vm1, %v9688_v5  ;;  %v12218_v5 = vrot.slane %v9211_v30, 7  ;;  %v9718_v44 = vsel %vm375_vm3, %v12219_v32, %v404_v3 }
  0xc7   : > { %v9713_v40 = vsel %vm375_vm3, %v402_v53, %v12218_v5  ;;  %v6517_v5 = vld [vmem:[%s11938_s1 + $0x14] sm:$0xf]  ;;  %v12223_v53 = vld [vmem:[#allocation11_spill] sm:$0xff] }
  0xc8   : > { %7689 = vmatmul.mubr.msk.f32.gmra.mrb[26].mxu0 %vm459_vm1, %v9698_v37 }
  0xc9   : > { %7691 = vmatprep.mubr.msk.f32.mxu0 %vm459_vm1, %v9703_v42  ;;  %v9727_v42 = vsel %vm375_vm3, %v404_v3, %v12220_v48  ;;  %v9797_v48 = vld [vmem:[%s9061_s24 + $0xf8] sm:$0xff] }
  0xcc   : > { %7692 = vmatmul.mubr.msk.f32.gmra.mrb[28].mxu0 %vm459_vm1, %v9713_v40 }
  0xcd   : > { %7694 = vmatprep.mubr.msk.f32.mxu0 %vm459_vm1, %v9718_v44 }
  0xd0   : > { %7695 = vmatmul.mubr.msk.f32.gmra.mrb[30].mxu0 %vm459_vm1, %v9727_v42 }
  0xd1   : > { %7699 = vmatprep.mubr.msk.f32.mxu0 %vm459_vm1, %v9246_v41  ;;  %v12221_v41 = vld [vmem:[#allocation7_spill] sm:$0xff] }
  0xd4   : > { %7700 = vmatmul.mubr.msk.f32.vlgmr.msra.gmra.mrb[0].mxu0 %vm459_vm1, %v9262_v43  ;;  %v12222_v43 = vld [vmem:[#allocation9_spill] sm:$0xff] }
  0xd5   : > { %7748 = vmatpush3.msk.msra.mxu0 %vm520_vm0, %v9515_v54  ;;  %7702 = vmatprep.mubr.msk.f32.mxu0 %vm459_vm1, %v9229_v36  ;;  %v9788_v54 = vld [vmem:[%s9061_s24 + $0xf0] sm:$0xff] }
  0xd6   : > { %7797 = vmatprep.subr.msk.mxu0 %vm520_vm0, %v6517_v5  ;;  %v12036_v3 = vrot.slane %v9788_v54, 1  ;;  %v340_v32 = vrot.slane %v9788_v54, 7 }
  0xd8   : > { %7703 = vmatmul.mubr.msk.f32.gmra.mrb[2].mxu0 %vm459_vm1, %v9240_v39 }
  0xd9   : > { %7705 = vmatprep.mubr.msk.f32.mxu0 %vm459_vm1, %v9276_v47 }
  0xdc   : > { %7706 = vmatmul.mubr.msk.f32.gmra.mrb[4].mxu0 %vm459_vm1, %v9287_v50 }
  0xdd   : > { %7708 = vmatprep.mubr.msk.f32.mxu0 %vm459_vm1, %v9293_v52 }
  0xe0   : > { %7709 = vmatmul.mubr.msk.f32.gmra.mrb[6].mxu0 %vm459_vm1, %v9304_v55 }
  0xe1   : > { %7711 = vmatprep.mubr.msk.f32.mxu0 %vm459_vm1, %v9310_v57 }
  0xe4   : > { %7712 = vmatmul.mubr.msk.f32.gmra.mrb[8].mxu0 %vm459_vm1, %v9321_v60 }
  0xe5   : > { %7714 = vmatprep.mubr.msk.f32.mxu0 %vm459_vm1, %v9327_v62 }
  0xe8   : > { %7715 = vmatmul.mubr.msk.f32.gmra.mrb[10].mxu0 %vm459_vm1, %v9338_v1 }
  0xe9   : > { %7717 = vmatprep.mubr.msk.f32.mxu0 %vm459_vm1, %v9344_v33 }
  0xec   : > { %7718 = vmatmul.mubr.msk.f32.gmra.mrb[12].mxu0 %vm459_vm1, %v9355_v49 }
  0xed   : > { %7720 = vmatprep.mubr.msk.f32.mxu0 %vm459_vm1, %v9361_v59 }
  0xf0   : > { %7721 = vmatmul.mubr.msk.f32.gmra.mrb[14].mxu0 %vm459_vm1, %v9372_v0 }
  0xf1   : > { %7723 = vmatprep.mubr.msk.f32.mxu0 %vm459_vm1, %v9378_v38 }
  0xf4   : > { %7724 = vmatmul.mubr.msk.f32.gmra.mrb[16].mxu0 %vm459_vm1, %v9389_v45 }
  0xf5   : > { %7726 = vmatprep.mubr.msk.f32.mxu0 %vm459_vm1, %v9395_v63 }
  0xf8   : > { %7727 = vmatmul.mubr.msk.f32.gmra.mrb[18].mxu0 %vm459_vm1, %v9406_v61 }
  0xf9   : > { %7729 = vmatprep.mubr.msk.f32.mxu0 %vm459_vm1, %v9412_v58 }
  0xfc   : > { %7730 = vmatmul.mubr.msk.f32.gmra.mrb[20].mxu0 %vm459_vm1, %v9423_v56 }
  0xfd   : > { %7732 = vmatprep.mubr.msk.f32.mxu0 %vm459_vm1, %v12221_v41  ;;  %v12224_v41 = vld [vmem:[#allocation12_spill] sm:$0xff] }
 0x100   : > { %7733 = vmatmul.mubr.msk.f32.gmra.mrb[22].mxu0 %vm459_vm1, %v9440_v51  ;;  %v12225_v51 = vld [vmem:[#allocation13_spill] sm:$0xff] }
 0x101   : > { %7735 = vmatprep.mubr.msk.f32.mxu0 %vm459_vm1, %v12222_v43  ;;  %v12037_v43 = vrot.slane %v9797_v48, 7 }
 0x104   : > { %7736 = vmatmul.mubr.msk.f32.gmra.mrb[24].mxu0 %vm459_vm1, %v9457_v46  ;;  %v9807_v46 = vsel %vm294_vm2, %v12036_v3, %v340_v32  ;;  %v6551_v3 = vld [vmem:[%s11938_s1 + $0x18] sm:$0xf] }
 0x105   : > { %7738 = vmatprep.mubr.msk.f32.mxu0 %vm459_vm1, %v12223_v53 }
 0x108   : > { %7739 = vmatmul.mubr.msk.f32.gmra.mrb[26].mxu0 %vm459_vm1, %v12224_v41  ;;  %v9816_v41 = vsel %vm294_vm2, %v340_v32, %v12037_v43  ;;  %v12226_v32 = vld [vmem:[#allocation2_spill] sm:$0xff] }
 0x109   : > { %7741 = vmatprep.mubr.msk.f32.mxu0 %vm459_vm1, %v12225_v51  ;;  %v12229_v43 = vld [vmem:[#allocation14_spill] sm:$0xff] }
 0x10c   : > { %7742 = vmatmul.mubr.msk.f32.gmra.mrb[28].mxu0 %vm459_vm1, %v9490_v35 }
 0x10d   : > { %7744 = vmatprep.mubr.msk.f32.mxu0 %vm459_vm1, %v9807_v46 }
 0x110   : > { %7745 = vmatmul.mubr.msk.f32.gmra.mrb[30].mxu0 %vm459_vm1, %v9816_v41 }
 0x111   : > { %7749 = vmatprep.mubr.msk.f32.mxu0 %vm459_vm1, %v9070_v4  ;;  %v12227_v4 = vld [vmem:[#allocation16_spill] sm:$0xff] }
 0x114   : > { %7750 = vmatmul.mubr.msk.f32.vlgmr.msra.gmra.mrb[0].mxu0 %vm459_vm1, %v9085_v6  ;;  %v6585_v6 = vld [vmem:[%s11938_s1 + $0x1c] sm:$0xf] }
 0x115   : > { %7798 = vmatpush3.msk.msra.mxu0 %vm520_vm0, %v6517_v5  ;;  %7752 = vmatprep.mubr.msk.f32.mxu0 %vm459_vm1, %v9064_v2  ;;  %v12228_v5 = vld [vmem:[#allocation17_spill] sm:$0xff] }
 0x116   : > { %7847 = vmatprep.subr.msk.mxu0 %vm520_vm0, %v6551_v3 }
 0x118   : > { %7753 = vmatmul.mubr.msk.f32.gmra.mrb[2].mxu0 %vm459_vm1, %v12226_v32 }
 0x119   : > { %7755 = vmatprep.mubr.msk.f32.mxu0 %vm459_vm1, %v9094_v7 }
 0x11c   : > { %7756 = vmatmul.mubr.msk.f32.gmra.mrb[4].mxu0 %vm459_vm1, %v9101_v8 }
 0x11d   : > { %7758 = vmatprep.mubr.msk.f32.mxu0 %vm459_vm1, %v9104_v9 }
 0x120   : > { %7759 = vmatmul.mubr.msk.f32.gmra.mrb[6].mxu0 %vm459_vm1, %v9111_v10 }
 0x121   : > { %7761 = vmatprep.mubr.msk.f32.mxu0 %vm459_vm1, %v9114_v11 }
 0x124   : > { %7762 = vmatmul.mubr.msk.f32.gmra.mrb[8].mxu0 %vm459_vm1, %v9121_v12 }
 0x125   : > { %7764 = vmatprep.mubr.msk.f32.mxu0 %vm459_vm1, %v9124_v13 }
 0x128   : > { %7765 = vmatmul.mubr.msk.f32.gmra.mrb[10].mxu0 %vm459_vm1, %v9131_v14 }
 0x129   : > { %7767 = vmatprep.mubr.msk.f32.mxu0 %vm459_vm1, %v9134_v15 }
 0x12c   : > { %7768 = vmatmul.mubr.msk.f32.gmra.mrb[12].mxu0 %vm459_vm1, %v9141_v16 }
 0x12d   : > { %7770 = vmatprep.mubr.msk.f32.mxu0 %vm459_vm1, %v9144_v17 }
 0x130   : > { %7771 = vmatmul.mubr.msk.f32.gmra.mrb[14].mxu0 %vm459_vm1, %v9151_v18 }
 0x131   : > { %7773 = vmatprep.mubr.msk.f32.mxu0 %vm459_vm1, %v9154_v19 }
 0x134   : > { %7774 = vmatmul.mubr.msk.f32.gmra.mrb[16].mxu0 %vm459_vm1, %v9161_v20 }
 0x135   : > { %7776 = vmatprep.mubr.msk.f32.mxu0 %vm459_vm1, %v9164_v21 }
 0x138   : > { %7777 = vmatmul.mubr.msk.f32.gmra.mrb[18].mxu0 %vm459_vm1, %v9171_v22 }
 0x139   : > { %7779 = vmatprep.mubr.msk.f32.mxu0 %vm459_vm1, %v9174_v23 }
 0x13c   : > { %7780 = vmatmul.mubr.msk.f32.gmra.mrb[20].mxu0 %vm459_vm1, %v9181_v24 }
 0x13d   : > { %7782 = vmatprep.mubr.msk.f32.mxu0 %vm459_vm1, %v9184_v25 }
 0x140   : > { %7783 = vmatmul.mubr.msk.f32.gmra.mrb[22].mxu0 %vm459_vm1, %v9191_v26 }
 0x141   : > { %7785 = vmatprep.mubr.msk.f32.mxu0 %vm459_vm1, %v9194_v27 }
 0x144   : > { %7786 = vmatmul.mubr.msk.f32.gmra.mrb[24].mxu0 %vm459_vm1, %v9201_v28 }
 0x145   : > { %7788 = vmatprep.mubr.msk.f32.mxu0 %vm459_vm1, %v9204_v29  ;;  %v12237_v29 = vld [vmem:[#allocation24_spill] sm:$0xff] }
 0x148   : > { %7789 = vmatmul.mubr.msk.f32.gmra.mrb[26].mxu0 %vm459_vm1, %v9211_v30  ;;  %v12233_v30 = vld [vmem:[#allocation20_spill] sm:$0xff] }
 0x149   : > { %7791 = vmatprep.mubr.msk.f32.mxu0 %vm459_vm1, %v9214_v31  ;;  %v12231_v31 = vld [vmem:[#allocation18_spill] sm:$0xff] }
 0x14c   : > { %7792 = vmatmul.mubr.msk.f32.gmra.mrb[28].mxu0 %vm459_vm1, %v9223_v34  ;;  %v12230_v34 = vld [vmem:[#allocation15_spill] sm:$0xff] }
 0x14d   : > { %7794 = vmatprep.mubr.msk.f32.mxu0 %vm459_vm1, %v9788_v54 }
 0x150   : > { %7795 = vmatmul.mubr.msk.f32.gmra.mrb[30].mxu0 %vm459_vm1, %v9797_v48 }
 0x151   : > { %7799 = vmatprep.mubr.msk.f32.mxu0 %vm459_vm1, %v12227_v4  ;;  %v12232_v4 = vld [vmem:[#allocation19_spill] sm:$0xff] }
 0x154   : > { %7800 = vmatmul.mubr.msk.f32.vlgmr.msra.gmra.mrb[0].mxu0 %vm459_vm1, %v12228_v5  ;;  %v12234_v5 = vld [vmem:[#allocation21_spill] sm:$0xff] }
 0x155   : > { %7848 = vmatpush3.msk.msra.mxu0 %vm520_vm0, %v6551_v3  ;;  %7802 = vmatprep.mubr.msk.f32.mxu0 %vm459_vm1, %v12229_v43  ;;  %v12235_v3 = vld [vmem:[#allocation22_spill] sm:$0xff]  ;;  %v12236_v43 = vld [vmem:[#allocation23_spill] sm:$0xff] }
 0x156   : > { %7897 = vmatprep.subr.msk.mxu0 %vm520_vm0, %v6585_v6 }
 0x158   : > { %7803 = vmatmul.mubr.msk.f32.gmra.mrb[2].mxu0 %vm459_vm1, %v12230_v34  ;;  %v12238_v34 = vld [vmem:[#allocation25_spill] sm:$0xff] }
 0x159   : > { %7805 = vmatprep.mubr.msk.f32.mxu0 %vm459_vm1, %v12231_v31  ;;  %v12239_v31 = vld [vmem:[#allocation26_spill] sm:$0xff] }
 0x15c   : > { %7806 = vmatmul.mubr.msk.f32.gmra.mrb[4].mxu0 %vm459_vm1, %v12232_v4  ;;  %v12240_v4 = vld [vmem:[#allocation27_spill] sm:$0xff] }
 0x15d   : > { %7808 = vmatprep.mubr.msk.f32.mxu0 %vm459_vm1, %v12233_v30  ;;  %v12241_v30 = vld [vmem:[#allocation28_spill] sm:$0xff] }
 0x160   : > { %7809 = vmatmul.mubr.msk.f32.gmra.mrb[6].mxu0 %vm459_vm1, %v12234_v5  ;;  %v12242_v5 = vld [vmem:[#allocation29_spill] sm:$0xff] }
 0x161   : > { %7811 = vmatprep.mubr.msk.f32.mxu0 %vm459_vm1, %v12235_v3  ;;  %v12243_v3 = vld [vmem:[#allocation30_spill] sm:$0xff] }
 0x164   : > { %7812 = vmatmul.mubr.msk.f32.gmra.mrb[8].mxu0 %vm459_vm1, %v12236_v43  ;;  %v12244_v43 = vld [vmem:[#allocation31_spill] sm:$0xff] }
 0x165   : > { %7814 = vmatprep.mubr.msk.f32.mxu0 %vm459_vm1, %v12237_v29  ;;  %v12245_v29 = vld [vmem:[#allocation32_spill] sm:$0xff] }
 0x168   : > { %7815 = vmatmul.mubr.msk.f32.gmra.mrb[10].mxu0 %vm459_vm1, %v12238_v34  ;;  %v12246_v34 = vld [vmem:[#allocation33_spill] sm:$0xff] }
 0x169   : > { %7817 = vmatprep.mubr.msk.f32.mxu0 %vm459_vm1, %v12239_v31  ;;  %v12247_v31 = vld [vmem:[#allocation34_spill] sm:$0xff] }
 0x16c   : > { %7818 = vmatmul.mubr.msk.f32.gmra.mrb[12].mxu0 %vm459_vm1, %v12240_v4  ;;  %v12248_v4 = vld [vmem:[#allocation35_spill] sm:$0xff] }
 0x16d   : > { %7820 = vmatprep.mubr.msk.f32.mxu0 %vm459_vm1, %v12241_v30  ;;  %v12249_v30 = vld [vmem:[#allocation36_spill] sm:$0xff] }
 0x170   : > { %7821 = vmatmul.mubr.msk.f32.gmra.mrb[14].mxu0 %vm459_vm1, %v12242_v5  ;;  %v12250_v5 = vld [vmem:[#allocation37_spill] sm:$0xff] }
 0x171   : > { %7823 = vmatprep.mubr.msk.f32.mxu0 %vm459_vm1, %v12243_v3  ;;  %v12251_v3 = vld [vmem:[#allocation38_spill] sm:$0xff] }
 0x174   : > { %7824 = vmatmul.mubr.msk.f32.gmra.mrb[16].mxu0 %vm459_vm1, %v12244_v43 }
 0x175   : > { %7826 = vmatprep.mubr.msk.f32.mxu0 %vm459_vm1, %v12245_v29  ;;  %v12252_v29 = vld [vmem:[#allocation40_spill] sm:$0xff] }
 0x178   : > { %7827 = vmatmul.mubr.msk.f32.gmra.mrb[18].mxu0 %vm459_vm1, %v12246_v34 }
 0x179   : > { %7829 = vmatprep.mubr.msk.f32.mxu0 %vm459_vm1, %v12247_v31  ;;  %v406_v31 = vrot.slane %v9797_v48, 1 }
 0x17c   : > { %7830 = vmatmul.mubr.msk.f32.gmra.mrb[20].mxu0 %vm459_vm1, %v12248_v4 }
 0x17d   : > { %7832 = vmatprep.mubr.msk.f32.mxu0 %vm459_vm1, %v12249_v30  ;;  %v12253_v30 = vrot.slane %v9788_v54, 1 }
 0x180   : > { %7833 = vmatmul.mubr.msk.f32.gmra.mrb[22].mxu0 %vm459_vm1, %v12250_v5  ;;  %v9956_v5 = vsel %vm375_vm3, %v12253_v30, %v406_v31  ;;  %v6619_v30 = vld [vmem:[%s11938_s1 + $0x20] sm:$0xf] }
 0x181   : > { %7835 = vmatprep.mubr.msk.f32.mxu0 %vm459_vm1, %v12251_v3 }
 0x184   : > { %7836 = vmatmul.mubr.msk.f32.gmra.mrb[24].mxu0 %vm459_vm1, %v9698_v37 }
 0x185   : > { %7838 = vmatprep.mubr.msk.f32.mxu0 %vm459_vm1, %v12252_v29  ;;  %v12254_v29 = vrot.slane %v9797_v48, 7 }
 0x187   : > { %v9965_v37 = vsel %vm375_vm3, %v406_v31, %v12254_v29  ;;  %v12255_v29 = vld [vmem:[#allocation7_spill] sm:$0xff]  ;;  %v12256_v31 = vld [vmem:[#allocation8_spill] sm:$0xff] }
 0x188   : > { %7839 = vmatmul.mubr.msk.f32.gmra.mrb[26].mxu0 %vm459_vm1, %v9713_v40 }
 0x189   : > { %7841 = vmatprep.mubr.msk.f32.mxu0 %vm459_vm1, %v9718_v44 }
 0x18c   : > { %7842 = vmatmul.mubr.msk.f32.gmra.mrb[28].mxu0 %vm459_vm1, %v9727_v42 }
 0x18d   : > { %7844 = vmatprep.mubr.msk.f32.mxu0 %vm459_vm1, %v9956_v5 }
 0x190   : > { %7845 = vmatmul.mubr.msk.f32.gmra.mrb[30].mxu0 %vm459_vm1, %v9965_v37 }
 0x191   : > { %7849 = vmatprep.mubr.msk.f32.mxu0 %vm459_vm1, %v9229_v36  ;;  %v12257_v36 = vld [vmem:[#allocation9_spill] sm:$0xff] }
 0x194   : > { %7850 = vmatmul.mubr.msk.f32.vlgmr.msra.gmra.mrb[0].mxu0 %vm459_vm1, %v9240_v39  ;;  %v12258_v39 = vld [vmem:[#allocation10_spill] sm:$0xff] }
 0x195   : > { %7898 = vmatpush3.msk.msra.mxu0 %vm520_vm0, %v6585_v6  ;;  %7852 = vmatprep.mubr.msk.f32.mxu0 %vm459_vm1, %v9276_v47  ;;  %v12259_v47 = vld [vmem:[#allocation12_spill] sm:$0xff] }
 0x196   : > { %7947 = vmatprep.subr.msk.mxu0 %vm520_vm0, %v6619_v30 }
 0x198   : > { %7853 = vmatmul.mubr.msk.f32.gmra.mrb[2].mxu0 %vm459_vm1, %v9287_v50  ;;  %v12283_v50 = vld [vmem:[#allocation39_spill] sm:$0xff] }
 0x199   : > { %7855 = vmatprep.mubr.msk.f32.mxu0 %vm459_vm1, %v9293_v52  ;;  %v12284_v52 = vld [vmem:[#allocation40_spill] sm:$0xff] }
 0x19c   : > { %7856 = vmatmul.mubr.msk.f32.gmra.mrb[4].mxu0 %vm459_vm1, %v9304_v55  ;;  %v6653_v55 = vld [vmem:[%s11940_s3 + $0x8] sm:$0xff] }
 0x19d   : > { %7858 = vmatprep.mubr.msk.f32.mxu0 %vm459_vm1, %v9310_v57  ;;  %v10175_v57 = vld [vmem:[%s11940_s3] sm:$0xff]  ;;  %7997 = vmatprep.subr.mxu1 %v6653_v55 }
 0x19e   : > { %7998 = vmatpush3.msra.mxu1 %v6653_v55 }
 0x19f   : > { %8047 = vmatprep.subr.mxu1 %v10175_v57 }
 0x1a0   : > { %7859 = vmatmul.mubr.msk.f32.gmra.mrb[6].mxu0 %vm459_vm1, %v9321_v60 }
 0x1a1   : > { %7861 = vmatprep.mubr.msk.f32.mxu0 %vm459_vm1, %v9327_v62 }
 0x1a4   : > { %7862 = vmatmul.mubr.msk.f32.gmra.mrb[8].mxu0 %vm459_vm1, %v9338_v1 }
 0x1a5   : > { %7864 = vmatprep.mubr.msk.f32.mxu0 %vm459_vm1, %v9344_v33 }
 0x1a8   : > { %7865 = vmatmul.mubr.msk.f32.gmra.mrb[10].mxu0 %vm459_vm1, %v9355_v49 }
 0x1a9   : > { %7867 = vmatprep.mubr.msk.f32.mxu0 %vm459_vm1, %v9361_v59 }
 0x1ac   : > { %7868 = vmatmul.mubr.msk.f32.gmra.mrb[12].mxu0 %vm459_vm1, %v9372_v0 }
 0x1ad   : > { %7870 = vmatprep.mubr.msk.f32.mxu0 %vm459_vm1, %v9378_v38 }
 0x1b0   : > { %7871 = vmatmul.mubr.msk.f32.gmra.mrb[14].mxu0 %vm459_vm1, %v9389_v45 }
 0x1b1   : > { %7873 = vmatprep.mubr.msk.f32.mxu0 %vm459_vm1, %v9395_v63 }
 0x1b4   : > { %7874 = vmatmul.mubr.msk.f32.gmra.mrb[16].mxu0 %vm459_vm1, %v9406_v61 }
 0x1b5   : > { %7876 = vmatprep.mubr.msk.f32.mxu0 %vm459_vm1, %v9412_v58 }
 0x1b8   : > { %7877 = vmatmul.mubr.msk.f32.gmra.mrb[18].mxu0 %vm459_vm1, %v9423_v56 }
 0x1b9   : > { %7879 = vmatprep.mubr.msk.f32.mxu0 %vm459_vm1, %v12255_v29 }
 0x1bc   : > { %7880 = vmatmul.mubr.msk.f32.gmra.mrb[20].mxu0 %vm459_vm1, %v12256_v31 }
 0x1bd   : > { %7882 = vmatprep.mubr.msk.f32.mxu0 %vm459_vm1, %v12257_v36 }
 0x1c0   : > { %7883 = vmatmul.mubr.msk.f32.gmra.mrb[22].mxu0 %vm459_vm1, %v12258_v39 }
 0x1c1   : > { %7885 = vmatprep.mubr.msk.f32.mxu0 %vm459_vm1, %v12223_v53 }
 0x1c4   : > { %7886 = vmatmul.mubr.msk.f32.gmra.mrb[24].mxu0 %vm459_vm1, %v12259_v47 }
 0x1c5   : > { %7888 = vmatprep.mubr.msk.f32.mxu0 %vm459_vm1, %v12225_v51 }
 0x1c8   : > { %7889 = vmatmul.mubr.msk.f32.gmra.mrb[26].mxu0 %vm459_vm1, %v9490_v35 }
 0x1c9   : > { %7891 = vmatprep.mubr.msk.f32.mxu0 %vm459_vm1, %v9807_v46 }
 0x1cc   : > { %7892 = vmatmul.mubr.msk.f32.gmra.mrb[28].mxu0 %vm459_vm1, %v9816_v41 }
 0x1cd   : > { %7894 = vmatprep.mubr.msk.f32.mxu0 %vm459_vm1, %v12225_v51 }
 0x1d0   : > { %7895 = vmatmul.mubr.msk.f32.gmra.mrb[30].mxu0 %vm459_vm1, %v9490_v35 }
 0x1d1   : > { %7899 = vmatprep.mubr.msk.f32.mxu0 %vm459_vm1, %v9064_v2  ;;  %v12260_v2 = vld [vmem:[#allocation3_spill] sm:$0xff] }
 0x1d4   : > { %7900 = vmatmul.mubr.msk.f32.vlgmr.msra.gmra.mrb[0].mxu0 %vm459_vm1, %v12226_v32 }
 0x1d5   : > { %7948 = vmatpush3.msk.msra.mxu0 %vm520_vm0, %v6619_v30  ;;  %7902 = vmatprep.mubr.msk.f32.mxu0 %vm459_vm1, %v9094_v7  ;;  %v12261_v7 = vld [vmem:[#allocation4_spill] sm:$0xff] }
 0x1d8   : > { %7903 = vmatmul.mubr.msk.f32.gmra.mrb[2].mxu0 %vm459_vm1, %v9101_v8  ;;  %v12262_v8 = vld [vmem:[#allocation5_spill] sm:$0xff] }
 0x1d9   : > { %7905 = vmatprep.mubr.msk.f32.mxu0 %vm459_vm1, %v9104_v9  ;;  %v12263_v9 = vld [vmem:[#allocation6_spill] sm:$0xff] }
 0x1dc   : > { %7906 = vmatmul.mubr.msk.f32.gmra.mrb[4].mxu0 %vm459_vm1, %v9111_v10  ;;  %v12264_v10 = vld [vmem:[#allocation14_spill] sm:$0xff] }
 0x1dd   : > { %7908 = vmatprep.mubr.msk.f32.mxu0 %vm459_vm1, %v9114_v11  ;;  %v12265_v11 = vld [vmem:[#allocation15_spill] sm:$0xff] }
 0x1e0   : > { %7909 = vmatmul.mubr.msk.f32.gmra.mrb[6].mxu0 %vm459_vm1, %v9121_v12  ;;  %v12266_v12 = vld [vmem:[#allocation18_spill] sm:$0xff] }
 0x1e1   : > { %7911 = vmatprep.mubr.msk.f32.mxu0 %vm459_vm1, %v9124_v13  ;;  %v12267_v13 = vld [vmem:[#allocation19_spill] sm:$0xff] }
 0x1e4   : > { %7912 = vmatmul.mubr.msk.f32.gmra.mrb[8].mxu0 %vm459_vm1, %v9131_v14  ;;  %v12268_v14 = vld [vmem:[#allocation20_spill] sm:$0xff] }
 0x1e5   : > { %7914 = vmatprep.mubr.msk.f32.mxu0 %vm459_vm1, %v9134_v15  ;;  %v12269_v15 = vld [vmem:[#allocation21_spill] sm:$0xff] }
 0x1e8   : > { %7915 = vmatmul.mubr.msk.f32.gmra.mrb[10].mxu0 %vm459_vm1, %v9141_v16  ;;  %v12270_v16 = vld [vmem:[#allocation22_spill] sm:$0xff] }
 0x1e9   : > { %7917 = vmatprep.mubr.msk.f32.mxu0 %vm459_vm1, %v9144_v17  ;;  %v12271_v17 = vld [vmem:[#allocation23_spill] sm:$0xff] }
 0x1ec   : > { %7918 = vmatmul.mubr.msk.f32.gmra.mrb[12].mxu0 %vm459_vm1, %v9151_v18  ;;  %v12272_v18 = vld [vmem:[#allocation24_spill] sm:$0xff] }
 0x1ed   : > { %7920 = vmatprep.mubr.msk.f32.mxu0 %vm459_vm1, %v9154_v19  ;;  %v12273_v19 = vld [vmem:[#allocation25_spill] sm:$0xff] }
 0x1f0   : > { %7921 = vmatmul.mubr.msk.f32.gmra.mrb[14].mxu0 %vm459_vm1, %v9161_v20  ;;  %v12274_v20 = vld [vmem:[#allocation26_spill] sm:$0xff] }
 0x1f1   : > { %7923 = vmatprep.mubr.msk.f32.mxu0 %vm459_vm1, %v9164_v21  ;;  %v12275_v21 = vld [vmem:[#allocation27_spill] sm:$0xff] }
 0x1f4   : > { %7924 = vmatmul.mubr.msk.f32.gmra.mrb[16].mxu0 %vm459_vm1, %v9171_v22  ;;  %v12276_v22 = vld [vmem:[#allocation28_spill] sm:$0xff] }
 0x1f5   : > { %7926 = vmatprep.mubr.msk.f32.mxu0 %vm459_vm1, %v9174_v23  ;;  %v12277_v23 = vld [vmem:[#allocation29_spill] sm:$0xff] }
 0x1f8   : > { %7927 = vmatmul.mubr.msk.f32.gmra.mrb[18].mxu0 %vm459_vm1, %v9181_v24  ;;  %v12278_v24 = vld [vmem:[#allocation30_spill] sm:$0xff] }
 0x1f9   : > { %7929 = vmatprep.mubr.msk.f32.mxu0 %vm459_vm1, %v9184_v25  ;;  %v12279_v25 = vld [vmem:[#allocation32_spill] sm:$0xff] }
 0x1fc   : > { %7930 = vmatmul.mubr.msk.f32.gmra.mrb[20].mxu0 %vm459_vm1, %v9191_v26  ;;  %v12280_v26 = vld [vmem:[#allocation34_spill] sm:$0xff] }
 0x1fd   : > { %7932 = vmatprep.mubr.msk.f32.mxu0 %vm459_vm1, %v9194_v27  ;;  %v12281_v27 = vld [vmem:[#allocation36_spill] sm:$0xff] }
 0x200   : > { %7933 = vmatmul.mubr.msk.f32.gmra.mrb[22].mxu0 %vm459_vm1, %v9201_v28  ;;  %v12282_v28 = vld [vmem:[#allocation37_spill] sm:$0xff] }
 0x201   : > { %7935 = vmatprep.mubr.msk.f32.mxu0 %vm459_vm1, %v12260_v2 }
 0x204   : > { %7936 = vmatmul.mubr.msk.f32.gmra.mrb[24].mxu0 %vm459_vm1, %v12261_v7 }
 0x205   : > { %7938 = vmatprep.mubr.msk.f32.mxu0 %vm459_vm1, %v12262_v8 }
 0x208   : > { %7939 = vmatmul.mubr.msk.f32.gmra.mrb[26].mxu0 %vm459_vm1, %v12263_v9 }
 0x209   : > { %7941 = vmatprep.mubr.msk.f32.mxu0 %vm459_vm1, %v9788_v54 }
 0x20c   : > { %7942 = vmatmul.mubr.msk.f32.gmra.mrb[28].mxu0 %vm459_vm1, %v9797_v48 }
 0x20d   : > { %7944 = vmatprep.mubr.msk.f32.mxu0 %vm459_vm1, %v12262_v8 }
 0x210   : > { %7945 = vmatmul.mubr.msk.f32.gmra.mrb[30].mxu0 %vm459_vm1, %v12263_v9 }
 0x211   : > { %7949 = vmatprep.mubr.msk.f32.mxu0 %vm459_vm1, %v12264_v10 }
 0x214   : > { %7950 = vmatmul.mubr.msk.f32.vlgmr.msra.gmra.mrb[0].mxu0 %vm459_vm1, %v12265_v11 }
 0x215   : > { %7952 = vmatprep.mubr.msk.f32.mxu0 %vm459_vm1, %v12266_v12 }
 0x218   : > { %7953 = vmatmul.mubr.msk.f32.gmra.mrb[2].mxu0 %vm459_vm1, %v12267_v13 }
 0x219   : > { %7955 = vmatprep.mubr.msk.f32.mxu0 %vm459_vm1, %v12268_v14 }
 0x21c   : > { %7956 = vmatmul.mubr.msk.f32.gmra.mrb[4].mxu0 %vm459_vm1, %v12269_v15 }
 0x21d   : > { %7958 = vmatprep.mubr.msk.f32.mxu0 %vm459_vm1, %v12270_v16 }
 0x220   : > { %7959 = vmatmul.mubr.msk.f32.gmra.mrb[6].mxu0 %vm459_vm1, %v12271_v17 }
 0x221   : > { %7961 = vmatprep.mubr.msk.f32.mxu0 %vm459_vm1, %v12272_v18 }
 0x224   : > { %7962 = vmatmul.mubr.msk.f32.gmra.mrb[8].mxu0 %vm459_vm1, %v12273_v19 }
 0x225   : > { %7964 = vmatprep.mubr.msk.f32.mxu0 %vm459_vm1, %v12274_v20 }
 0x228   : > { %7965 = vmatmul.mubr.msk.f32.gmra.mrb[10].mxu0 %vm459_vm1, %v12275_v21 }
 0x229   : > { %7967 = vmatprep.mubr.msk.f32.mxu0 %vm459_vm1, %v12276_v22 }
 0x22c   : > { %7968 = vmatmul.mubr.msk.f32.gmra.mrb[12].mxu0 %vm459_vm1, %v12277_v23 }
 0x22d   : > { %7970 = vmatprep.mubr.msk.f32.mxu0 %vm459_vm1, %v12278_v24 }
 0x230   : > { %7971 = vmatmul.mubr.msk.f32.gmra.mrb[14].mxu0 %vm459_vm1, %v12244_v43 }
 0x231   : > { %7973 = vmatprep.mubr.msk.f32.mxu0 %vm459_vm1, %v12279_v25 }
 0x234   : > { %7974 = vmatmul.mubr.msk.f32.gmra.mrb[16].mxu0 %vm459_vm1, %v12246_v34 }
 0x235   : > { %7976 = vmatprep.mubr.msk.f32.mxu0 %vm459_vm1, %v12280_v26 }
 0x238   : > { %7977 = vmatmul.mubr.msk.f32.gmra.mrb[18].mxu0 %vm459_vm1, %v12248_v4 }
 0x239   : > { %7979 = vmatprep.mubr.msk.f32.mxu0 %vm459_vm1, %v12281_v27 }
 0x23c   : > { %7980 = vmatmul.mubr.msk.f32.gmra.mrb[20].mxu0 %vm459_vm1, %v12282_v28 }
 0x23d   : > { %7982 = vmatprep.mubr.msk.f32.mxu0 %vm459_vm1, %v12251_v3 }
 0x240   : > { %7983 = vmatmul.mubr.msk.f32.gmra.mrb[22].mxu0 %vm459_vm1, %v12283_v50 }
 0x241   : > { %7985 = vmatprep.mubr.msk.f32.mxu0 %vm459_vm1, %v12284_v52 }
 0x244   : > { %7986 = vmatmul.mubr.msk.f32.gmra.mrb[24].mxu0 %vm459_vm1, %v9713_v40 }
 0x245   : > { %7988 = vmatprep.mubr.msk.f32.mxu0 %vm459_vm1, %v9718_v44 }
 0x248   : > { %7989 = vmatmul.mubr.msk.f32.gmra.mrb[26].mxu0 %vm459_vm1, %v9727_v42 }
 0x249   : > { %7991 = vmatprep.mubr.msk.f32.mxu0 %vm459_vm1, %v9956_v5 }
 0x24c   : > { %7992 = vmatmul.mubr.msk.f32.gmra.mrb[28].mxu0 %vm459_vm1, %v9965_v37 }
 0x24d   : > { %7994 = vmatprep.mubr.msk.f32.mxu0 %vm459_vm1, %v9718_v44 }
 0x250   : > { %7995 = vmatmul.mubr.msk.f32.gmra.mrb[30].mxu0 %vm459_vm1, %v9727_v42 }
 0x2e7   : > { %v10167_v34 = vpop.f32.mrb[0].mxu0 }
 0x2e8   : > { %v2979_v58 = vsel %vm2977_vm4, %v10167_v34, 0.0  ;;  %v3048_v60 = vmul.f32 %v10167_v34, %v10167_v34  ;;  %v10181_v62 = vpop.f32.mrb[1].mxu0 }
 0x2e9   : > { %v2978_v63 = vsel %vm2977_vm4, %v10181_v62, 0.0  ;;  %v3047_v1 = vmul.f32 %v10181_v62, %v10181_v62 }
 0x2ea   : > { %v3080_v33 = vsel %vm2977_vm4, %v3048_v60, 0.0  ;;  %v2980_v38 = vadd.f32 %v2979_v58, %v2978_v63 }
 0x2eb   : > { %v3079_v49 = vsel %vm2977_vm4, %v3047_v1, 0.0  ;;  %v10190_v59 = vpop.f32.mrb[2].mxu0 }
 0x2ec   : > { %v3081_v0 = vadd.f32 %v3080_v33, %v3079_v49  ;;  %v10192_v45 = vpop.f32.mrb[3].mxu0  ;;  %v3050_v61 = vmul.f32 %v10190_v59, %v10190_v59  ;;  %v2983_v40 = vsel %vm2977_vm4, %v10190_v59, 0.0 }
 0x2ed   : > { %v2981_v56 = vsel %vm2977_vm4, %v10192_v45, 0.0  ;;  %v3049_v51 = vmul.f32 %v10192_v45, %v10192_v45 }
 0x2ee   : > { %v2982_v46 = vadd.f32 %v2981_v56, %v2980_v38  ;;  %v3084_v43 = vsel %vm2977_vm4, %v3050_v61, 0.0 }
 0x2ef   : > { %v3082_v35 = vsel %vm2977_vm4, %v3049_v51, 0.0  ;;  %v10203_v37 = vpop.f32.mrb[4].mxu0 }
 0x2f0   : > { %v3083_v42 = vadd.f32 %v3082_v35, %v3081_v0  ;;  %v10205_v44 = vpop.f32.mrb[5].mxu0  ;;  %v2984_v41 = vadd.f32 %v2983_v40, %v2982_v46  ;;  %v3052_v54 = vmul.f32 %v10203_v37, %v10203_v37  ;;  %v2987_v4 = vsel %vm2977_vm4, %v10203_v37, 0.0 }
 0x2f1   : > { %v2985_v53 = vsel %vm2977_vm4, %v10205_v44, 0.0  ;;  %v3051_v48 = vmul.f32 %v10205_v44, %v10205_v44 }
 0x2f2   : > { %v2986_v32 = vadd.f32 %v2985_v53, %v2984_v41  ;;  %v3085_v6 = vadd.f32 %v3084_v43, %v3083_v42  ;;  %v3088_v36 = vsel %vm2977_vm4, %v3052_v54, 0.0 }
 0x2f3   : > { %v3086_v5 = vsel %vm2977_vm4, %v3051_v48, 0.0  ;;  %v10217_v3 = vpop.f32.mrb[6].mxu0 }
 0x2f4   : > { %v3087_v30 = vadd.f32 %v3086_v5, %v3085_v6  ;;  %v10219_v29 = vpop.f32.mrb[7].mxu0  ;;  %v2988_v31 = vadd.f32 %v2987_v4, %v2986_v32  ;;  %v3054_v39 = vmul.f32 %v10217_v3, %v10217_v3  ;;  %v2991_v9 = vsel %vm2977_vm4, %v10217_v3, 0.0 }
 0x2f5   : > { %v2989_v47 = vsel %vm2977_vm4, %v10219_v29, 0.0  ;;  %v3053_v2 = vmul.f32 %v10219_v29, %v10219_v29 }
 0x2f6   : > { %v2990_v7 = vadd.f32 %v2989_v47, %v2988_v31  ;;  %v3089_v8 = vadd.f32 %v3088_v36, %v3087_v30  ;;  %v3092_v15 = vsel %vm2977_vm4, %v3054_v39, 0.0 }
 0x2f7   : > { %v3090_v10 = vsel %vm2977_vm4, %v3053_v2, 0.0  ;;  %v10231_v11 = vpop.f32.mrb[8].mxu0 }
 0x2f8   : > { %v3091_v12 = vadd.f32 %v3090_v10, %v3089_v8  ;;  %v10233_v13 = vpop.f32.mrb[9].mxu0  ;;  %v2992_v14 = vadd.f32 %v2991_v9, %v2990_v7  ;;  %v3056_v16 = vmul.f32 %v10231_v11, %v10231_v11  ;;  %v2995_v21 = vsel %vm2977_vm4, %v10231_v11, 0.0 }
 0x2f9   : > { %v2993_v17 = vsel %vm2977_vm4, %v10233_v13, 0.0  ;;  %v3055_v18 = vmul.f32 %v10233_v13, %v10233_v13 }
 0x2fa   : > { %v2994_v19 = vadd.f32 %v2993_v17, %v2992_v14  ;;  %v3093_v20 = vadd.f32 %v3092_v15, %v3091_v12  ;;  %v3096_v27 = vsel %vm2977_vm4, %v3056_v16, 0.0 }
 0x2fb   : > { %v3094_v22 = vsel %vm2977_vm4, %v3055_v18, 0.0  ;;  %v10245_v23 = vpop.f32.mrb[10].mxu0 }
 0x2fc   : > { %v3095_v24 = vadd.f32 %v3094_v22, %v3093_v20  ;;  %v10247_v25 = vpop.f32.mrb[11].mxu0  ;;  %v2996_v26 = vadd.f32 %v2995_v21, %v2994_v19  ;;  %v3058_v28 = vmul.f32 %v10245_v23, %v10245_v23  ;;  %v2999_v60 = vsel %vm2977_vm4, %v10245_v23, 0.0 }
 0x2fd   : > { %v2997_v50 = vsel %vm2977_vm4, %v10247_v25, 0.0  ;;  %v3057_v52 = vmul.f32 %v10247_v25, %v10247_v25 }
 0x2fe   : > { %v2998_v55 = vadd.f32 %v2997_v50, %v2996_v26  ;;  %v3097_v58 = vadd.f32 %v3096_v27, %v3095_v24  ;;  %v3100_v0 = vsel %vm2977_vm4, %v3058_v28, 0.0 }
 0x2ff   : > { %v3098_v63 = vsel %vm2977_vm4, %v3057_v52, 0.0  ;;  %v10259_v1 = vpop.f32.mrb[12].mxu0 }
 0x300   : > { %v3099_v33 = vadd.f32 %v3098_v63, %v3097_v58  ;;  %v10261_v38 = vpop.f32.mrb[13].mxu0  ;;  %v3000_v49 = vadd.f32 %v2999_v60, %v2998_v55  ;;  %v3060_v61 = vmul.f32 %v10259_v1, %v10259_v1  ;;  %v3003_v35 = vsel %vm2977_vm4, %v10259_v1, 0.0 }
 0x301   : > { %v3001_v56 = vsel %vm2977_vm4, %v10261_v38, 0.0  ;;  %v3059_v51 = vmul.f32 %v10261_v38, %v10261_v38 }
 0x302   : > { %v3002_v46 = vadd.f32 %v3001_v56, %v3000_v49  ;;  %v3101_v40 = vadd.f32 %v3100_v0, %v3099_v33  ;;  %v3104_v48 = vsel %vm2977_vm4, %v3060_v61, 0.0 }
 0x303   : > { %v3102_v42 = vsel %vm2977_vm4, %v3059_v51, 0.0  ;;  %v10273_v41 = vpop.f32.mrb[14].mxu0 }
 0x304   : > { %v3103_v43 = vadd.f32 %v3102_v42, %v3101_v40  ;;  %v10275_v54 = vpop.f32.mrb[15].mxu0  ;;  %v3004_v53 = vadd.f32 %v3003_v35, %v3002_v46  ;;  %v3062_v32 = vmul.f32 %v10273_v41, %v10273_v41  ;;  %v3007_v31 = vsel %vm2977_vm4, %v10273_v41, 0.0 }
 0x305   : > { %v3005_v6 = vsel %vm2977_vm4, %v10275_v54, 0.0  ;;  %v3061_v4 = vmul.f32 %v10275_v54, %v10275_v54 }
 0x306   : > { %v3006_v5 = vadd.f32 %v3005_v6, %v3004_v53  ;;  %v3105_v30 = vadd.f32 %v3104_v48, %v3103_v43  ;;  %v3108_v8 = vsel %vm2977_vm4, %v3062_v32, 0.0 }
 0x307   : > { %v3106_v36 = vsel %vm2977_vm4, %v3061_v4, 0.0  ;;  %v10287_v39 = vpop.f32.mrb[16].mxu0 }
 0x308   : > { %v3107_v47 = vadd.f32 %v3106_v36, %v3105_v30  ;;  %v10289_v2 = vpop.f32.mrb[17].mxu0  ;;  %v3008_v7 = vadd.f32 %v3007_v31, %v3006_v5  ;;  %v3064_v9 = vmul.f32 %v10287_v39, %v10287_v39  ;;  %v3011_v16 = vsel %vm2977_vm4, %v10287_v39, 0.0 }
 0x309   : > { %v3009_v10 = vsel %vm2977_vm4, %v10289_v2, 0.0  ;;  %v3063_v12 = vmul.f32 %v10289_v2, %v10289_v2 }
 0x30a   : > { %v3010_v14 = vadd.f32 %v3009_v10, %v3008_v7  ;;  %v3109_v15 = vadd.f32 %v3108_v8, %v3107_v47  ;;  %v3112_v22 = vsel %vm2977_vm4, %v3064_v9, 0.0 }
 0x30b   : > { %v3110_v17 = vsel %vm2977_vm4, %v3063_v12, 0.0  ;;  %v10301_v18 = vpop.f32.mrb[18].mxu0 }
 0x30c   : > { %v3111_v19 = vadd.f32 %v3110_v17, %v3109_v15  ;;  %v10303_v20 = vpop.f32.mrb[19].mxu0  ;;  %v3012_v21 = vadd.f32 %v3011_v16, %v3010_v14  ;;  %v3066_v24 = vmul.f32 %v10301_v18, %v10301_v18  ;;  %v3015_v52 = vsel %vm2977_vm4, %v10301_v18, 0.0 }
 0x30d   : > { %v3013_v26 = vsel %vm2977_vm4, %v10303_v20, 0.0  ;;  %v3065_v27 = vmul.f32 %v10303_v20, %v10303_v20 }
 0x30e   : > { %v3014_v28 = vadd.f32 %v3013_v26, %v3012_v21  ;;  %v3113_v50 = vadd.f32 %v3112_v22, %v3111_v19  ;;  %v3116_v49 = vsel %vm2977_vm4, %v3066_v24, 0.0 }
 0x30f   : > { %v3114_v55 = vsel %vm2977_vm4, %v3065_v27, 0.0  ;;  %v10315_v58 = vpop.f32.mrb[20].mxu0 }
 0x310   : > { %v3115_v60 = vadd.f32 %v3114_v55, %v3113_v50  ;;  %v10317_v63 = vpop.f32.mrb[21].mxu0  ;;  %v3016_v33 = vadd.f32 %v3015_v52, %v3014_v28  ;;  %v3068_v0 = vmul.f32 %v10315_v58, %v10315_v58  ;;  %v3019_v40 = vsel %vm2977_vm4, %v10315_v58, 0.0 }
 0x311   : > { %v3017_v61 = vsel %vm2977_vm4, %v10317_v63, 0.0  ;;  %v3067_v56 = vmul.f32 %v10317_v63, %v10317_v63 }
 0x312   : > { %v3018_v51 = vadd.f32 %v3017_v61, %v3016_v33  ;;  %v3117_v46 = vadd.f32 %v3116_v49, %v3115_v60  ;;  %v3120_v32 = vsel %vm2977_vm4, %v3068_v0, 0.0 }
 0x313   : > { %v3118_v35 = vsel %vm2977_vm4, %v3067_v56, 0.0  ;;  %v10329_v42 = vpop.f32.mrb[22].mxu0 }
 0x314   : > { %v3119_v43 = vadd.f32 %v3118_v35, %v3117_v46  ;;  %v10331_v53 = vpop.f32.mrb[23].mxu0  ;;  %v3020_v48 = vadd.f32 %v3019_v40, %v3018_v51  ;;  %v3070_v6 = vmul.f32 %v10329_v42, %v10329_v42  ;;  %v3023_v36 = vsel %vm2977_vm4, %v10329_v42, 0.0 }
 0x315   : > { %v3021_v4 = vsel %vm2977_vm4, %v10331_v53, 0.0  ;;  %v3069_v5 = vmul.f32 %v10331_v53, %v10331_v53 }
 0x316   : > { %v3022_v30 = vadd.f32 %v3021_v4, %v3020_v48  ;;  %v3121_v31 = vadd.f32 %v3120_v32, %v3119_v43  ;;  %v3124_v12 = vsel %vm2977_vm4, %v3070_v6, 0.0 }
 0x317   : > { %v3122_v47 = vsel %vm2977_vm4, %v3069_v5, 0.0  ;;  %v10343_v7 = vpop.f32.mrb[24].mxu0 }
 0x318   : > { %v3123_v8 = vadd.f32 %v3122_v47, %v3121_v31  ;;  %v10345_v9 = vpop.f32.mrb[25].mxu0  ;;  %v3024_v10 = vadd.f32 %v3023_v36, %v3022_v30  ;;  %v3072_v14 = vmul.f32 %v10343_v7, %v10343_v7  ;;  %v3027_v21 = vsel %vm2977_vm4, %v10343_v7, 0.0 }
 0x319   : > { %v3025_v15 = vsel %vm2977_vm4, %v10345_v9, 0.0  ;;  %v3071_v16 = vmul.f32 %v10345_v9, %v10345_v9 }
 0x31a   : > { %v3026_v17 = vadd.f32 %v3025_v15, %v3024_v10  ;;  %v3125_v19 = vadd.f32 %v3124_v12, %v3123_v8  ;;  %v3128_v50 = vsel %vm2977_vm4, %v3072_v14, 0.0 }
 0x31b   : > { %v3126_v22 = vsel %vm2977_vm4, %v3071_v16, 0.0  ;;  %v10357_v24 = vpop.f32.mrb[26].mxu0 }
 0x31c   : > { %v3127_v26 = vadd.f32 %v3126_v22, %v3125_v19  ;;  %v10359_v27 = vpop.f32.mrb[27].mxu0  ;;  %v3028_v28 = vadd.f32 %v3027_v21, %v3026_v17  ;;  %v3074_v52 = vmul.f32 %v10357_v24, %v10357_v24  ;;  %v3031_v0 = vsel %vm2977_vm4, %v10357_v24, 0.0 }
 0x31d   : > { %v3029_v55 = vsel %vm2977_vm4, %v10359_v27, 0.0  ;;  %v3073_v60 = vmul.f32 %v10359_v27, %v10359_v27 }
 0x31e   : > { %v3030_v33 = vadd.f32 %v3029_v55, %v3028_v28  ;;  %v3129_v49 = vadd.f32 %v3128_v50, %v3127_v26  ;;  %v3132_v35 = vsel %vm2977_vm4, %v3074_v52, 0.0 }
 0x31f   : > { %v3130_v61 = vsel %vm2977_vm4, %v3073_v60, 0.0  ;;  %v10371_v56 = vpop.f32.mrb[28].mxu0 }
 0x320   : > { %v3131_v51 = vadd.f32 %v3130_v61, %v3129_v49  ;;  %v10373_v46 = vpop.f32.mrb[29].mxu0  ;;  %v3032_v40 = vadd.f32 %v3031_v0, %v3030_v33  ;;  %v3076_v43 = vmul.f32 %v10371_v56, %v10371_v56  ;;  %v3035_v5 = vsel %vm2977_vm4, %v10371_v56, 0.0 }
 0x321   : > { %v3033_v48 = vsel %vm2977_vm4, %v10373_v46, 0.0  ;;  %v3075_v32 = vmul.f32 %v10373_v46, %v10373_v46 }
 0x322   : > { %v3034_v6 = vadd.f32 %v3033_v48, %v3032_v40  ;;  %v3133_v4 = vadd.f32 %v3132_v35, %v3131_v51  ;;  %v3136_v10 = vsel %vm2977_vm4, %v3076_v43, 0.0 }
 0x323   : > { %v3134_v30 = vsel %vm2977_vm4, %v3075_v32, 0.0  ;;  %v10385_v31 = vpop.f32.mrb[30].mxu0 }
 0x324   : > { %v3135_v36 = vadd.f32 %v3134_v30, %v3133_v4  ;;  %v2934_v47 = vpop.f32.mrb[31].mxu0  ;;  %v3036_v8 = vadd.f32 %v3035_v5, %v3034_v6  ;;  %v3078_v12 = vmul.f32 %v10385_v31, %v10385_v31  ;;  %v3039_v19 = vsel %vm2977_vm4, %v10385_v31, 0.0 }
 0x325   : > { %v3037_v14 = vsel %vm2977_vm4, %v2934_v47, 0.0  ;;  %v3077_v15 = vmul.f32 %v2934_v47, %v2934_v47 }
 0x326   : > { %v3038_v16 = vadd.f32 %v3037_v14, %v3036_v8  ;;  %v3137_v17 = vadd.f32 %v3136_v10, %v3135_v36  ;;  %v3140_v28 = vsel %vm2977_vm4, %v3078_v12, 0.0  ;;  %v3159_v8 = vlaneseq  ;;  %v2975_v12 = vld [vmem:[%s11939_s2] sm:$0x1] }
 0x327   : > { %v3138_v21 = vsel %vm2977_vm4, %v3077_v15, 0.0 }
 0x328   : > { %v3040_v22 = vadd.f32 %v3039_v19, %v3038_v16  ;;  %v3139_v26 = vadd.f32 %v3138_v21, %v3137_v17  ;;  %v3160_v10 = vshrl.u32 %v3159_v8, 7  ;;  %v2976_v19 = vld [vmem:[%s11939_s2 + $0x1] sm:$0x1] }
 0x32a   : > { %v3041_v50 = vrot.slane %v3040_v22, 4  ;;  %v3141_v52 = vadd.f32 %v3140_v28, %v3139_v26  ;;  %v3161_v14 = vsub.s32 0, %v3160_v10 }
 0x32c   : > { %v3042_v55 = vadd.f32 %v3041_v50, %v3040_v22  ;;  %v3142_v60 = vrot.slane %v3141_v52, 4 }
 0x32e   : > { %v3043_v33 = vrot.slane %v3042_v55, 2  ;;  %v3143_v49 = vadd.f32 %v3142_v60, %v3141_v52 }
 0x330   : > { %v3044_v0 = vadd.f32 %v3043_v33, %v3042_v55  ;;  %v3144_v61 = vrot.slane %v3143_v49, 2 }
 0x332   : > { %v3045_v51 = vrot.slane %v3044_v0, 1  ;;  %v3145_v40 = vadd.f32 %v3144_v61, %v3143_v49 }
 0x334   : > { %v3046_v35 = vadd.f32 %v3045_v51, %v3044_v0  ;;  %v3146_v43 = vrot.slane %v3145_v40, 1 }
 0x336   : > { %v3147_v48 = vadd.f32 %v3146_v43, %v3145_v40  ;;  %v3148_v32 = vmul.f32 0.00390625, %v3046_v35 }
 0x338   : > { %v3149_v6 = vmul.f32 0.00390625, %v3147_v48  ;;  %v3150_v4 = vmul.f32 %v3148_v32, %v3148_v32  ;;  %v3156_v17 = vsub.f32 0.0, %v3148_v32 }
 0x33a   : > { %v3151_v5 = vsub.f32 %v3149_v6, %v3150_v4 }
 0x33c   : > { %v3152_v30 = vmax.f32 %v3151_v5, 0.0 }
 0x33e   : > { %v3153_v36 = vadd.f32 1e-05, %v3152_v30 }
 0x340   : > { %8967 = vrsqrt.f32 %v3153_v36 }
 0x34a   : > { %v8968_v15 = vpop.eup %8967 }
 0x34b   : > { %v3155_v16 = vmul.f32 %v8968_v15, %v2975_v12 }
 0x34d   : > { %v3157_v21 = vmul.f32 %v3156_v17, %v3155_v16  ;;  %v3162_v22 = vrot.slane %v3155_v16, %v3161_v14 }
 0x34f   : > { %v3158_v26 = vadd.f32 %v3157_v21, %v2976_v19  ;;  %v3193_v28 = vmul.f32 %v3162_v22, %v2934_v47  ;;  %v3163_v50 = vmul.f32 %v3162_v22, %v10181_v62  ;;  %v3164_v52 = vmul.f32 %v10167_v34, %v3162_v22 }
 0x350   : > { %v3165_v55 = vmul.f32 %v3162_v22, %v10192_v45  ;;  %v3166_v60 = vmul.f32 %v10190_v59, %v3162_v22  ;;  %v3167_v33 = vmul.f32 %v3162_v22, %v10205_v44  ;;  %v3168_v49 = vmul.f32 %v10203_v37, %v3162_v22 }
 0x351   : > { %v3198_v0 = vrot.slane %v3158_v26, %v3161_v14  ;;  %v3169_v61 = vmul.f32 %v3162_v22, %v10219_v29  ;;  %v3170_v51 = vmul.f32 %v10217_v3, %v3162_v22  ;;  %v3171_v40 = vmul.f32 %v3162_v22, %v10233_v13 }
 0x352   : > { %v3172_v47 = vmul.f32 %v10231_v11, %v3162_v22  ;;  %v3173_v62 = vmul.f32 %v3162_v22, %v10247_v25  ;;  %v3174_v34 = vmul.f32 %v10245_v23, %v3162_v22  ;;  %v3175_v45 = vmul.f32 %v3162_v22, %v10261_v38 }
 0x353   : > { %v10414_v59 = vadd.f32 %v3198_v0, %v3193_v28  ;;  %v3176_v44 = vmul.f32 %v10259_v1, %v3162_v22  ;;  %v3177_v37 = vmul.f32 %v3162_v22, %v10275_v54  ;;  %v3178_v29 = vmul.f32 %v10273_v41, %v3162_v22 }
 0x354   : > { %v3179_v3 = vmul.f32 %v3162_v22, %v10289_v2  ;;  %v3180_v13 = vmul.f32 %v10287_v39, %v3162_v22  ;;  %v3181_v11 = vmul.f32 %v3162_v22, %v10303_v20  ;;  %v3182_v25 = vmul.f32 %v10301_v18, %v3162_v22 }
 0x355   : > { %12285 = vst [vmem:[#allocation11_spill] sm:$0xff] %v10414_v59  ;;  %v3183_v23 = vmul.f32 %v3162_v22, %v10317_v63  ;;  %v3184_v38 = vmul.f32 %v10315_v58, %v3162_v22  ;;  %v3185_v35 = vmul.f32 %v3162_v22, %v10331_v53  ;;  %v3186_v1 = vmul.f32 %v10329_v42, %v3162_v22 }
 0x356   : > { %v3187_v54 = vmul.f32 %v3162_v22, %v10345_v9  ;;  %v3188_v41 = vmul.f32 %v10343_v7, %v3162_v22  ;;  %v3189_v2 = vmul.f32 %v3162_v22, %v10359_v27  ;;  %v3190_v39 = vmul.f32 %v10357_v24, %v3162_v22 }
 0x357   : > { %v3191_v20 = vmul.f32 %v3162_v22, %v10373_v46  ;;  %v3192_v18 = vmul.f32 %v10371_v56, %v3162_v22  ;;  %v3194_v63 = vmul.f32 %v10385_v31, %v3162_v22  ;;  %v3199_v43 = vadd.f32 %v3198_v0, %v3163_v50 }
 0x358   : > { %v3200_v58 = vadd.f32 %v3198_v0, %v3164_v52  ;;  %v3201_v48 = vadd.f32 %v3198_v0, %v3165_v55  ;;  %v3202_v53 = vadd.f32 %v3198_v0, %v3166_v60  ;;  %v3203_v32 = vadd.f32 %v3198_v0, %v3167_v33  ;;  %v10451_v33 = vld [vmem:[%s11940_s3 + $0x10] sm:$0xff] }
 0x359   : > { %v3204_v42 = vadd.f32 %v3198_v0, %v3168_v49  ;;  %v3205_v6 = vadd.f32 %v3198_v0, %v3169_v61  ;;  %v3206_v9 = vadd.f32 %v3198_v0, %v3170_v51  ;;  %v3207_v4 = vadd.f32 %v3198_v0, %v3171_v40 }
 0x35a   : > { %v3208_v7 = vadd.f32 %v3198_v0, %v3172_v47  ;;  %v3209_v5 = vadd.f32 %v3198_v0, %v3173_v62  ;;  %v3210_v27 = vadd.f32 %v3198_v0, %v3174_v34  ;;  %v3211_v30 = vadd.f32 %v3198_v0, %v3175_v45 }
 0x35b   : > { %v3212_v24 = vadd.f32 %v3198_v0, %v3176_v44  ;;  %v3213_v36 = vadd.f32 %v3198_v0, %v3177_v37  ;;  %v3214_v46 = vadd.f32 %v3198_v0, %v3178_v29  ;;  %v3215_v8 = vadd.f32 %v3198_v0, %v3179_v3 }
 0x35c   : > { %v3216_v56 = vadd.f32 %v3198_v0, %v3180_v13  ;;  %v3217_v10 = vadd.f32 %v3198_v0, %v3181_v11  ;;  %v3218_v31 = vadd.f32 %v3198_v0, %v3182_v25  ;;  %v3219_v12 = vadd.f32 %v3198_v0, %v3183_v23 }
 0x35d   : > { %v3220_v14 = vadd.f32 %v3198_v0, %v3184_v38  ;;  %v3221_v15 = vadd.f32 %v3198_v0, %v3185_v35  ;;  %v3222_v16 = vadd.f32 %v3198_v0, %v3186_v1  ;;  %v3223_v17 = vadd.f32 %v3198_v0, %v3187_v54 }
 0x35e   : > { %v3224_v19 = vadd.f32 %v3198_v0, %v3188_v41  ;;  %v3225_v21 = vadd.f32 %v3198_v0, %v3189_v2  ;;  %v10434_v22 = vadd.f32 %v3198_v0, %v3190_v39  ;;  %v3227_v26 = vadd.f32 %v3198_v0, %v3191_v20 }
 0x35f   : > { %v10436_v28 = vadd.f32 %v3198_v0, %v3192_v18  ;;  %v10438_v50 = vadd.f32 %v3198_v0, %v3194_v63  ;;  %v10440_v52 = vmax.f32 %v3201_v48, 0.0  ;;  %v10442_v55 = vmax.f32 %v3202_v53, 0.0 }
 0x360   : > { %v10444_v60 = vmax.f32 %v3199_v43, 0.0  ;;  %v10458_v49 = vmax.f32 %v3200_v58, 0.0  ;;  %v10465_v0 = vmax.f32 %v3203_v32, 0.0  ;;  %v10473_v61 = vmax.f32 %v3205_v6, 0.0 }
 0x361   : > { %12286 = vst [vmem:[#allocation13_spill] sm:$0xff] %v10438_v50  ;;  %12287 = vst [vmem:[#allocation2_spill] sm:$0xff] %v10442_v55  ;;  %7999 = vmatprep.mubr.msk.f32.mxu1 %vm2977_vm4, %v10440_v52  ;;  %v10479_v51 = vmax.f32 %v3206_v9, 0.0  ;;  %v10481_v40 = vmax.f32 %v3207_v4, 0.0  ;;  %v10487_v47 = vmax.f32 %v3208_v7, 0.0  ;;  %v10489_v62 = vmax.f32 %v3209_v5, 0.0 }
 0x362   : > { %8000 = vmatmul.mubr.msk.f32.vlgmr.msra.gmra.mrb[0].mxu1 %vm2977_vm4, %v10442_v55  ;;  %v10495_v34 = vmax.f32 %v3210_v27, 0.0  ;;  %v10497_v45 = vmax.f32 %v3211_v30, 0.0  ;;  %v10503_v44 = vmax.f32 %v3212_v24, 0.0  ;;  %v10505_v37 = vmax.f32 %v3213_v36, 0.0  ;;  %v10594_v9 = vld [vmem:[%s11940_s3 + $0x18] sm:$0xff] }
 0x363   : > { %8048 = vmatpush3.msra.mxu1 %v10175_v57  ;;  %8002 = vmatprep.mubr.msk.f32.mxu1 %vm2977_vm4, %v10444_v60  ;;  %v10471_v57 = vmax.f32 %v3204_v42, 0.0  ;;  %v10511_v29 = vmax.f32 %v3214_v46, 0.0  ;;  %v10513_v3 = vmax.f32 %v3215_v8, 0.0  ;;  %v10519_v13 = vmax.f32 %v3216_v56, 0.0 }
 0x364   : > { %8097 = vmatprep.subr.mxu1 %v10451_v33  ;;  %v10521_v11 = vmax.f32 %v3217_v10, 0.0  ;;  %v10527_v25 = vmax.f32 %v3218_v31, 0.0  ;;  %v10529_v23 = vmax.f32 %v3219_v12, 0.0  ;;  %v10535_v38 = vmax.f32 %v3220_v14, 0.0 }
 0x365   : > { %v10537_v35 = vmax.f32 %v3221_v15, 0.0  ;;  %v10543_v1 = vmax.f32 %v3222_v16, 0.0  ;;  %v10545_v54 = vmax.f32 %v3223_v17, 0.0  ;;  %v10551_v41 = vmax.f32 %v3224_v19, 0.0 }
 0x366   : > { %8003 = vmatmul.mubr.msk.f32.gmra.mrb[2].mxu1 %vm2977_vm4, %v10458_v49  ;;  %v10553_v2 = vmax.f32 %v3225_v21, 0.0  ;;  %v10560_v39 = vmax.f32 %v10434_v22, 0.0  ;;  %v10562_v20 = vmax.f32 %v3227_v26, 0.0  ;;  %v12067_v18 = vrot.slane %v10440_v52, 1 }
 0x367   : > { %8005 = vmatprep.mubr.msk.f32.mxu1 %vm2977_vm4, %v10440_v52  ;;  %v3327_v63 = vrot.slane %v10440_v52, 7  ;;  %v10571_v43 = vmax.f32 %v10436_v28, 0.0  ;;  %v12064_v58 = vrot.slane %v10442_v55, 7  ;;  %v12063_v53 = vrot.slane %v10444_v60, 1 }
 0x368   : > { %12288 = vst [vmem:[#allocation16_spill] sm:$0xff] %v10560_v39  ;;  %12289 = vst [vmem:[#allocation17_spill] sm:$0xff] %v10562_v20  ;;  %v3330_v32 = vrot.slane %v10444_v60, 7  ;;  %v12060_v6 = vrot.slane %v10458_v49, 7  ;;  %v12059_v5 = vrot.slane %v10465_v0, 1  ;;  %v3333_v27 = vrot.slane %v10465_v0, 7 }
 0x369   : > { %12290 = vst [vmem:[#allocation31_spill] sm:$0xff] %v10571_v43  ;;  %v10579_v48 = vsel %vm294_vm2, %v12067_v18, %v3327_v63  ;;  %v10588_v42 = vsel %vm294_vm2, %v3327_v63, %v12064_v58  ;;  %v12056_v30 = vrot.slane %v10471_v57, 7  ;;  %v12055_v36 = vrot.slane %v10473_v61, 1 }
 0x36a   : > { %8006 = vmatmul.mubr.msk.f32.gmra.mrb[4].mxu1 %vm2977_vm4, %v10442_v55  ;;  %v10601_v4 = vsel %vm294_vm2, %v12063_v53, %v3330_v32  ;;  %v10610_v7 = vsel %vm294_vm2, %v3330_v32, %v12060_v6  ;;  %v10624_v24 = vsel %vm294_vm2, %v12059_v5, %v3333_v27  ;;  %v3336_v46 = vrot.slane %v10473_v61, 7 }
 0x36b   : > { %8008 = vmatprep.mubr.msk.f32.mxu1 %vm2977_vm4, %v10465_v0  ;;  %v10633_v8 = vsel %vm294_vm2, %v3333_v27, %v12056_v30  ;;  %v12052_v56 = vrot.slane %v10479_v51, 7  ;;  %v12051_v31 = vrot.slane %v10481_v40, 1  ;;  %v3339_v12 = vrot.slane %v10481_v40, 7 }
 0x36c   : > { %v10641_v10 = vsel %vm294_vm2, %v12055_v36, %v3336_v46  ;;  %v12048_v15 = vrot.slane %v10487_v47, 7  ;;  %v12047_v17 = vrot.slane %v10489_v62, 1  ;;  %v3342_v19 = vrot.slane %v10489_v62, 7 }
 0x36d   : > { %v10650_v14 = vsel %vm294_vm2, %v3336_v46, %v12052_v56  ;;  %v10658_v16 = vsel %vm294_vm2, %v12051_v31, %v3339_v12  ;;  %v12045_v22 = vrot.slane %v10495_v34, 7  ;;  %v12046_v28 = vrot.slane %v10497_v45, 1 }
 0x36e   : > { %8009 = vmatmul.mubr.msk.f32.gmra.mrb[6].mxu1 %vm2977_vm4, %v10471_v57  ;;  %v10667_v21 = vsel %vm294_vm2, %v3339_v12, %v12048_v15  ;;  %v10675_v26 = vsel %vm294_vm2, %v12047_v17, %v3342_v19  ;;  %v12049_v32 = vrot.slane %v10503_v44, 7  ;;  %v12050_v46 = vrot.slane %v10505_v37, 1 }
 0x36f   : > { %8011 = vmatprep.mubr.msk.f32.mxu1 %vm2977_vm4, %v10473_v61  ;;  %v10684_v63 = vsel %vm294_vm2, %v3342_v19, %v12045_v22  ;;  %v3348_v12 = vrot.slane %v10505_v37, 7  ;;  %v12053_v22 = vrot.slane %v10511_v29, 7  ;;  %v12054_v17 = vrot.slane %v10513_v3, 1 }
 0x370   : > { %v3351_v15 = vrot.slane %v10513_v3, 7  ;;  %v12058_v31 = vrot.slane %v10521_v11, 1  ;;  %v3354_v56 = vrot.slane %v10521_v11, 7  ;;  %v12062_v36 = vrot.slane %v10529_v23, 1 }
 0x371   : > { %v3357_v30 = vrot.slane %v10529_v23, 7  ;;  %v12066_v5 = vrot.slane %v10537_v35, 1  ;;  %v3360_v6 = vrot.slane %v10537_v35, 7  ;;  %v12069_v53 = vrot.slane %v10545_v54, 1 }
 0x372   : > { %8012 = vmatmul.mubr.msk.f32.gmra.mrb[8].mxu1 %vm2977_vm4, %v10479_v51  ;;  %v3363_v58 = vrot.slane %v10545_v54, 7  ;;  %v12073_v18 = vrot.slane %v10553_v2, 1  ;;  %v3366_v50 = vrot.slane %v10553_v2, 7  ;;  %v12079_v59 = vrot.slane %v10562_v20, 1 }
 0x373   : > { %8014 = vmatprep.mubr.msk.f32.mxu1 %vm2977_vm4, %v10481_v40 }
 0x376   : > { %8015 = vmatmul.mubr.msk.f32.gmra.mrb[10].mxu1 %vm2977_vm4, %v10487_v47 }
 0x377   : > { %8017 = vmatprep.mubr.msk.f32.mxu1 %vm2977_vm4, %v10489_v62 }
 0x37a   : > { %8018 = vmatmul.mubr.msk.f32.gmra.mrb[12].mxu1 %vm2977_vm4, %v10495_v34 }
 0x37b   : > { %8020 = vmatprep.mubr.msk.f32.mxu1 %vm2977_vm4, %v10497_v45 }
 0x37e   : > { %8021 = vmatmul.mubr.msk.f32.gmra.mrb[14].mxu1 %vm2977_vm4, %v10503_v44 }
 0x37f   : > { %8023 = vmatprep.mubr.msk.f32.mxu1 %vm2977_vm4, %v10505_v37 }
 0x382   : > { %8024 = vmatmul.mubr.msk.f32.gmra.mrb[16].mxu1 %vm2977_vm4, %v10511_v29 }
 0x383   : > { %8026 = vmatprep.mubr.msk.f32.mxu1 %vm2977_vm4, %v10513_v3 }
 0x386   : > { %8027 = vmatmul.mubr.msk.f32.gmra.mrb[18].mxu1 %vm2977_vm4, %v10519_v13 }
 0x387   : > { %8029 = vmatprep.mubr.msk.f32.mxu1 %vm2977_vm4, %v10521_v11 }
 0x38a   : > { %8030 = vmatmul.mubr.msk.f32.gmra.mrb[20].mxu1 %vm2977_vm4, %v10527_v25 }
 0x38b   : > { %8032 = vmatprep.mubr.msk.f32.mxu1 %vm2977_vm4, %v10529_v23 }
 0x38e   : > { %8033 = vmatmul.mubr.msk.f32.gmra.mrb[22].mxu1 %vm2977_vm4, %v10535_v38 }
 0x38f   : > { %8035 = vmatprep.mubr.msk.f32.mxu1 %vm2977_vm4, %v10537_v35 }
 0x392   : > { %8036 = vmatmul.mubr.msk.f32.gmra.mrb[24].mxu1 %vm2977_vm4, %v10543_v1 }
 0x393   : > { %8038 = vmatprep.mubr.msk.f32.mxu1 %vm2977_vm4, %v10545_v54 }
 0x396   : > { %8039 = vmatmul.mubr.msk.f32.gmra.mrb[26].mxu1 %vm2977_vm4, %v10551_v41 }
 0x397   : > { %8041 = vmatprep.mubr.msk.f32.mxu1 %vm2977_vm4, %v10553_v2 }
 0x39a   : > { %8042 = vmatmul.mubr.msk.f32.gmra.mrb[28].mxu1 %vm2977_vm4, %v10560_v39 }
 0x39b   : > { %8044 = vmatprep.mubr.msk.f32.mxu1 %vm2977_vm4, %v10562_v20 }
 0x39e   : > { %8045 = vmatmul.mubr.msk.f32.gmra.mrb[30].mxu1 %vm2977_vm4, %v10571_v43 }
 0x39f   : > { %8049 = vmatprep.mubr.msk.f32.mxu1 %vm2977_vm4, %v10579_v48 }
 0x3a2   : > { %8050 = vmatmul.mubr.msk.f32.vlgmr.msra.gmra.mrb[0].mxu1 %vm2977_vm4, %v10588_v42 }
 0x3a3   : > { %8098 = vmatpush3.msra.mxu1 %v10451_v33  ;;  %8052 = vmatprep.mubr.msk.f32.mxu1 %vm2977_vm4, %v10601_v4  ;;  %v3345_v33 = vrot.slane %v10497_v45, 7 }
 0x3a4   : > { %8147 = vmatprep.subr.mxu1 %v10594_v9 }
 0x3a5   : > { %v10692_v27 = vsel %vm294_vm2, %v12046_v28, %v3345_v33  ;;  %v10701_v19 = vsel %vm294_vm2, %v3345_v33, %v12049_v32  ;;  %v10709_v28 = vsel %vm294_vm2, %v12050_v46, %v3348_v12  ;;  %v10718_v33 = vsel %vm294_vm2, %v3348_v12, %v12053_v22 }
 0x3a6   : > { %8053 = vmatmul.mubr.msk.f32.gmra.mrb[2].mxu1 %vm2977_vm4, %v10610_v7  ;;  %v12057_v32 = vrot.slane %v10519_v13, 7  ;;  %v10726_v46 = vsel %vm294_vm2, %v12054_v17, %v3351_v15  ;;  %v12061_v22 = vrot.slane %v10527_v25, 7  ;;  %v10743_v17 = vsel %vm294_vm2, %v12058_v31, %v3354_v56 }
 0x3a7   : > { %8055 = vmatprep.mubr.msk.f32.mxu1 %vm2977_vm4, %v10579_v48  ;;  %v10760_v31 = vsel %vm294_vm2, %v12062_v36, %v3357_v30  ;;  %v10777_v36 = vsel %vm294_vm2, %v12066_v5, %v3360_v6  ;;  %v10794_v5 = vsel %vm294_vm2, %v12069_v53, %v3363_v58  ;;  %v10811_v53 = vsel %vm294_vm2, %v12073_v18, %v3366_v50 }
 0x3a8   : > { %v10735_v12 = vsel %vm294_vm2, %v3351_v15, %v12057_v32  ;;  %v10752_v15 = vsel %vm294_vm2, %v3354_v56, %v12061_v22  ;;  %v12065_v32 = vrot.slane %v10535_v38, 7  ;;  %v12068_v22 = vrot.slane %v10543_v1, 7  ;;  %12292 = vst [vmem:[#allocation35_spill] sm:$0xff] %v10777_v36  ;;  %12294 = vst [vmem:[#allocation7_spill] sm:$0xff] %v10794_v5 }
 0x3a9   : > { %12296 = vst [vmem:[#allocation9_spill] sm:$0xff] %v10811_v53 }
 0x3aa   : > { %8056 = vmatmul.mubr.msk.f32.gmra.mrb[4].mxu1 %vm2977_vm4, %v10588_v42  ;;  %v10769_v56 = vsel %vm294_vm2, %v3357_v30, %v12065_v32  ;;  %v10786_v30 = vsel %vm294_vm2, %v3360_v6, %v12068_v22  ;;  %v12072_v32 = vrot.slane %v10551_v41, 7  ;;  %v12076_v22 = vrot.slane %v10560_v39, 7 }
 0x3ab   : > { %8058 = vmatprep.mubr.msk.f32.mxu1 %vm2977_vm4, %v10624_v24  ;;  %12291 = vst [vmem:[#allocation33_spill] sm:$0xff] %v10769_v56  ;;  %12293 = vst [vmem:[#allocation38_spill] sm:$0xff] %v10786_v30 }
 0x3ac   : > { %v10803_v6 = vsel %vm294_vm2, %v3363_v58, %v12072_v32  ;;  %v10820_v58 = vsel %vm294_vm2, %v3366_v50, %v12076_v22  ;;  %v12084_v32 = vrot.slane %v10571_v43, 7  ;;  %v12300_v22 = vrot.slane %v10440_v52, 1 }
 0x3ad   : > { %12295 = vst [vmem:[#allocation8_spill] sm:$0xff] %v10803_v6  ;;  %12297 = vst [vmem:[#allocation10_spill] sm:$0xff] %v10820_v58 }
 0x3ae   : > { %8059 = vmatmul.mubr.msk.f32.gmra.mrb[6].mxu1 %vm2977_vm4, %v10633_v8 }
 0x3af   : > { %8061 = vmatprep.mubr.msk.f32.mxu1 %vm2977_vm4, %v10641_v10 }
 0x3b2   : > { %8062 = vmatmul.mubr.msk.f32.gmra.mrb[8].mxu1 %vm2977_vm4, %v10650_v14 }
 0x3b3   : > { %8064 = vmatprep.mubr.msk.f32.mxu1 %vm2977_vm4, %v10658_v16 }
 0x3b6   : > { %8065 = vmatmul.mubr.msk.f32.gmra.mrb[10].mxu1 %vm2977_vm4, %v10667_v21 }
 0x3b7   : > { %8067 = vmatprep.mubr.msk.f32.mxu1 %vm2977_vm4, %v10675_v26 }
 0x3ba   : > { %8068 = vmatmul.mubr.msk.f32.gmra.mrb[12].mxu1 %vm2977_vm4, %v10684_v63 }
 0x3bb   : > { %8070 = vmatprep.mubr.msk.f32.mxu1 %vm2977_vm4, %v10692_v27 }
 0x3be   : > { %8071 = vmatmul.mubr.msk.f32.gmra.mrb[14].mxu1 %vm2977_vm4, %v10701_v19 }
 0x3bf   : > { %8073 = vmatprep.mubr.msk.f32.mxu1 %vm2977_vm4, %v10709_v28 }
 0x3c2   : > { %8074 = vmatmul.mubr.msk.f32.gmra.mrb[16].mxu1 %vm2977_vm4, %v10718_v33 }
 0x3c3   : > { %8076 = vmatprep.mubr.msk.f32.mxu1 %vm2977_vm4, %v10726_v46 }
 0x3c6   : > { %8077 = vmatmul.mubr.msk.f32.gmra.mrb[18].mxu1 %vm2977_vm4, %v10735_v12 }
 0x3c7   : > { %8079 = vmatprep.mubr.msk.f32.mxu1 %vm2977_vm4, %v10743_v17 }
 0x3ca   : > { %8080 = vmatmul.mubr.msk.f32.gmra.mrb[20].mxu1 %vm2977_vm4, %v10752_v15 }
 0x3cb   : > { %8082 = vmatprep.mubr.msk.f32.mxu1 %vm2977_vm4, %v10760_v31 }
 0x3ce   : > { %8083 = vmatmul.mubr.msk.f32.gmra.mrb[22].mxu1 %vm2977_vm4, %v10769_v56 }
 0x3cf   : > { %8085 = vmatprep.mubr.msk.f32.mxu1 %vm2977_vm4, %v10777_v36 }
 0x3d2   : > { %8086 = vmatmul.mubr.msk.f32.gmra.mrb[24].mxu1 %vm2977_vm4, %v10786_v30  ;;  %v3369_v30 = vrot.slane %v10562_v20, 7 }
 0x3d3   : > { %8088 = vmatprep.mubr.msk.f32.mxu1 %vm2977_vm4, %v10794_v5 }
 0x3d4   : > { %v10828_v18 = vsel %vm294_vm2, %v12079_v59, %v3369_v30  ;;  %v10836_v50 = vsel %vm294_vm2, %v3369_v30, %v12084_v32  ;;  %v3409_v59 = vrot.slane %v10458_v49, 1  ;;  %v10856_v30 = vld [vmem:[%s11940_s3 + $0x20] sm:$0xff] }
 0x3d5   : > { %12298 = vst [vmem:[#allocation12_spill] sm:$0xff] %v10828_v18  ;;  %12299 = vst [vmem:[#allocation3_spill] sm:$0xff] %v10836_v50 }
 0x3d6   : > { %8089 = vmatmul.mubr.msk.f32.gmra.mrb[26].mxu1 %vm2977_vm4, %v10803_v6  ;;  %v3407_v6 = vrot.slane %v10442_v55, 1 }
 0x3d7   : > { %8091 = vmatprep.mubr.msk.f32.mxu1 %vm2977_vm4, %v10811_v53 }
 0x3da   : > { %8092 = vmatmul.mubr.msk.f32.gmra.mrb[28].mxu1 %vm2977_vm4, %v10820_v58  ;;  %v10843_v58 = vsel %vm375_vm3, %v12300_v22, %v3407_v6  ;;  %v12304_v22 = vrot.slane %v10444_v60, 1 }
 0x3db   : > { %8094 = vmatprep.mubr.msk.f32.mxu1 %vm2977_vm4, %v10828_v18  ;;  %12301 = vst [vmem:[#allocation4_spill] sm:$0xff] %v10843_v58  ;;  %v12302_v18 = vrot.slane %v10442_v55, 7  ;;  %v3411_v55 = vrot.slane %v10471_v57, 1 }
 0x3dc   : > { %v10863_v32 = vsel %vm375_vm3, %v12304_v22, %v3409_v59 }
 0x3dd   : > { %v10851_v53 = vsel %vm375_vm3, %v3407_v6, %v12302_v18  ;;  %12305 = vst [vmem:[#allocation6_spill] sm:$0xff] %v10863_v32  ;;  %v12306_v18 = vrot.slane %v10458_v49, 7 }
 0x3de   : > { %8095 = vmatmul.mubr.msk.f32.gmra.mrb[30].mxu1 %vm2977_vm4, %v10836_v50  ;;  %12303 = vst [vmem:[#allocation5_spill] sm:$0xff] %v10851_v53 }
 0x3df   : > { %8099 = vmatprep.mubr.msk.f32.mxu1 %vm2977_vm4, %v10843_v58  ;;  %v10872_v6 = vsel %vm375_vm3, %v3409_v59, %v12306_v18  ;;  %v12310_v59 = vrot.slane %v10471_v57, 7 }
 0x3e0   : > { %12307 = vst [vmem:[#allocation14_spill] sm:$0xff] %v10872_v6 }
 0x3e1   : > { %v10892_v18 = vsel %vm375_vm3, %v3411_v55, %v12310_v59 }
 0x3e2   : > { %8100 = vmatmul.mubr.msk.f32.vlgmr.msra.gmra.mrb[0].mxu1 %vm2977_vm4, %v10851_v53  ;;  %12311 = vst [vmem:[#allocation18_spill] sm:$0xff] %v10892_v18 }
 0x3e3   : > { %8148 = vmatpush3.msra.mxu1 %v10594_v9  ;;  %8102 = vmatprep.mubr.msk.f32.mxu1 %vm2977_vm4, %v10863_v32  ;;  %v12308_v9 = vrot.slane %v10465_v0, 1  ;;  %v3413_v32 = vrot.slane %v10479_v51, 1 }
 0x3e4   : > { %8197 = vmatprep.subr.mxu1 %v10856_v30 }
 0x3e5   : > { %v10884_v22 = vsel %vm375_vm3, %v12308_v9, %v3411_v55  ;;  %v3415_v9 = vrot.slane %v10487_v47, 1  ;;  %v12316_v55 = vrot.slane %v10481_v40, 1 }
 0x3e6   : > { %8103 = vmatmul.mubr.msk.f32.gmra.mrb[2].mxu1 %vm2977_vm4, %v10872_v6  ;;  %12309 = vst [vmem:[#allocation15_spill] sm:$0xff] %v10884_v22 }
 0x3e7   : > { %8105 = vmatprep.mubr.msk.f32.mxu1 %vm2977_vm4, %v10843_v58  ;;  %v10914_v59 = vsel %vm375_vm3, %v12316_v55, %v3415_v9  ;;  %v3419_v55 = vrot.slane %v10503_v44, 1 }
 0x3e8   : > { %12317 = vst [vmem:[#allocation21_spill] sm:$0xff] %v10914_v59 }
 0x3ea   : > { %8106 = vmatmul.mubr.msk.f32.gmra.mrb[4].mxu1 %vm2977_vm4, %v10851_v53  ;;  %v12312_v53 = vrot.slane %v10473_v61, 1 }
 0x3eb   : > { %8108 = vmatprep.mubr.msk.f32.mxu1 %vm2977_vm4, %v10884_v22  ;;  %v12314_v22 = vrot.slane %v10479_v51, 7 }
 0x3ec   : > { %v10899_v58 = vsel %vm375_vm3, %v12312_v53, %v3413_v32  ;;  %v3417_v53 = vrot.slane %v10495_v34, 1 }
 0x3ed   : > { %12313 = vst [vmem:[#allocation19_spill] sm:$0xff] %v10899_v58  ;;  %v10907_v6 = vsel %vm375_vm3, %v3413_v32, %v12314_v22  ;;  %v12320_v32 = vrot.slane %v10489_v62, 1 }
 0x3ee   : > { %8109 = vmatmul.mubr.msk.f32.gmra.mrb[6].mxu1 %vm2977_vm4, %v10892_v18  ;;  %12315 = vst [vmem:[#allocation20_spill] sm:$0xff] %v10907_v6 }
 0x3ef   : > { %8111 = vmatprep.mubr.msk.f32.mxu1 %vm2977_vm4, %v10899_v58  ;;  %v12318_v58 = vrot.slane %v10487_v47, 7  ;;  %v10929_v22 = vsel %vm375_vm3, %v12320_v32, %v3417_v53  ;;  %v3421_v32 = vrot.slane %v10511_v29, 1 }
 0x3f0   : > { %12321 = vst [vmem:[#allocation23_spill] sm:$0xff] %v10929_v22 }
 0x3f1   : > { %v10922_v18 = vsel %vm375_vm3, %v3415_v9, %v12318_v58  ;;  %v12324_v58 = vrot.slane %v10497_v45, 1 }
 0x3f2   : > { %8112 = vmatmul.mubr.msk.f32.gmra.mrb[8].mxu1 %vm2977_vm4, %v10907_v6  ;;  %12319 = vst [vmem:[#allocation22_spill] sm:$0xff] %v10922_v18 }
 0x3f3   : > { %8114 = vmatprep.mubr.msk.f32.mxu1 %vm2977_vm4, %v10914_v59  ;;  %v12322_v59 = vrot.slane %v10495_v34, 7  ;;  %v10944_v9 = vsel %vm375_vm3, %v12324_v58, %v3419_v55  ;;  %v3423_v58 = vrot.slane %v10519_v13, 1 }
 0x3f4   : > { %12325 = vst [vmem:[#allocation25_spill] sm:$0xff] %v10944_v9 }
 0x3f5   : > { %v10937_v6 = vsel %vm375_vm3, %v3417_v53, %v12322_v59  ;;  %v12328_v59 = vrot.slane %v10505_v37, 1 }
 0x3f6   : > { %8115 = vmatmul.mubr.msk.f32.gmra.mrb[10].mxu1 %vm2977_vm4, %v10922_v18  ;;  %12323 = vst [vmem:[#allocation24_spill] sm:$0xff] %v10937_v6 }
 0x3f7   : > { %8117 = vmatprep.mubr.msk.f32.mxu1 %vm2977_vm4, %v10929_v22  ;;  %v12326_v22 = vrot.slane %v10503_v44, 7  ;;  %v10959_v53 = vsel %vm375_vm3, %v12328_v59, %v3421_v32  ;;  %v3425_v59 = vrot.slane %v10527_v25, 1 }
 0x3f8   : > { %12329 = vst [vmem:[#allocation27_spill] sm:$0xff] %v10959_v53 }
 0x3f9   : > { %v10952_v18 = vsel %vm375_vm3, %v3419_v55, %v12326_v22  ;;  %v12332_v22 = vrot.slane %v10513_v3, 1 }
 0x3fa   : > { %8118 = vmatmul.mubr.msk.f32.gmra.mrb[12].mxu1 %vm2977_vm4, %v10937_v6  ;;  %12327 = vst [vmem:[#allocation26_spill] sm:$0xff] %v10952_v18 }
 0x3fb   : > { %8120 = vmatprep.mubr.msk.f32.mxu1 %vm2977_vm4, %v10944_v9  ;;  %v12330_v9 = vrot.slane %v10511_v29, 7  ;;  %v10974_v55 = vsel %vm375_vm3, %v12332_v22, %v3423_v58  ;;  %v3427_v22 = vrot.slane %v10535_v38, 1 }
 0x3fc   : > { %12333 = vst [vmem:[#allocation29_spill] sm:$0xff] %v10974_v55 }
 0x3fd   : > { %v10967_v6 = vsel %vm375_vm3, %v3421_v32, %v12330_v9  ;;  %v12336_v9 = vrot.slane %v10521_v11, 1 }
 0x3fe   : > { %8121 = vmatmul.mubr.msk.f32.gmra.mrb[14].mxu1 %vm2977_vm4, %v10952_v18  ;;  %12331 = vst [vmem:[#allocation28_spill] sm:$0xff] %v10967_v6 }
 0x3ff   : > { %8123 = vmatprep.mubr.msk.f32.mxu1 %vm2977_vm4, %v10959_v53  ;;  %v12334_v53 = vrot.slane %v10519_v13, 7  ;;  %v10989_v32 = vsel %vm375_vm3, %v12336_v9, %v3425_v59  ;;  %v3429_v9 = vrot.slane %v10543_v1, 1 }
 0x400   : > { %12337 = vst [vmem:[#allocation32_spill] sm:$0xff] %v10989_v32 }
 0x401   : > { %v10982_v18 = vsel %vm375_vm3, %v3423_v58, %v12334_v53  ;;  %v12340_v53 = vrot.slane %v10529_v23, 1 }
 0x402   : > { %8124 = vmatmul.mubr.msk.f32.gmra.mrb[16].mxu1 %vm2977_vm4, %v10967_v6  ;;  %12335 = vst [vmem:[#allocation30_spill] sm:$0xff] %v10982_v18 }
 0x403   : > { %8126 = vmatprep.mubr.msk.f32.mxu1 %vm2977_vm4, %v10974_v55  ;;  %v12338_v55 = vrot.slane %v10527_v25, 7  ;;  %v11004_v58 = vsel %vm375_vm3, %v12340_v53, %v3427_v22  ;;  %v3431_v53 = vrot.slane %v10551_v41, 1 }
 0x404   : > { %12341 = vst [vmem:[#allocation36_spill] sm:$0xff] %v11004_v58 }
 0x405   : > { %v10997_v6 = vsel %vm375_vm3, %v3425_v59, %v12338_v55  ;;  %v12344_v55 = vrot.slane %v10537_v35, 1 }
 0x406   : > { %8127 = vmatmul.mubr.msk.f32.gmra.mrb[18].mxu1 %vm2977_vm4, %v10982_v18  ;;  %12339 = vst [vmem:[#allocation34_spill] sm:$0xff] %v10997_v6 }
 0x407   : > { %8129 = vmatprep.mubr.msk.f32.mxu1 %vm2977_vm4, %v10989_v32  ;;  %v12342_v32 = vrot.slane %v10535_v38, 7  ;;  %v11019_v59 = vsel %vm375_vm3, %v12344_v55, %v3429_v9  ;;  %v3433_v55 = vrot.slane %v10560_v39, 1 }
 0x408   : > { %12345 = vst [vmem:[#allocation39_spill] sm:$0xff] %v11019_v59 }
 0x409   : > { %v11012_v18 = vsel %vm375_vm3, %v3427_v22, %v12342_v32  ;;  %v12348_v32 = vrot.slane %v10545_v54, 1 }
 0x40a   : > { %8130 = vmatmul.mubr.msk.f32.gmra.mrb[20].mxu1 %vm2977_vm4, %v10997_v6  ;;  %12343 = vst [vmem:[#allocation37_spill] sm:$0xff] %v11012_v18 }
 0x40b   : > { %8132 = vmatprep.mubr.msk.f32.mxu1 %vm2977_vm4, %v11004_v58  ;;  %v12346_v58 = vrot.slane %v10543_v1, 7  ;;  %v11034_v22 = vsel %vm375_vm3, %v12348_v32, %v3431_v53  ;;  %v3435_v32 = vrot.slane %v10571_v43, 1 }
 0x40c   : > { %12349 = vst [vmem:[#allocation41_spill] sm:$0xff] %v11034_v22 }
 0x40d   : > { %v11027_v6 = vsel %vm375_vm3, %v3429_v9, %v12346_v58  ;;  %v12351_v58 = vrot.slane %v10553_v2, 1 }
 0x40e   : > { %8133 = vmatmul.mubr.msk.f32.gmra.mrb[22].mxu1 %vm2977_vm4, %v11012_v18  ;;  %12347 = vst [vmem:[#allocation40_spill] sm:$0xff] %v11027_v6 }
 0x40f   : > { %8135 = vmatprep.mubr.msk.f32.mxu1 %vm2977_vm4, %v11019_v59  ;;  %v12350_v59 = vrot.slane %v10551_v41, 7  ;;  %v11049_v9 = vsel %vm375_vm3, %v12351_v58, %v3433_v55  ;;  %v12356_v58 = vrot.slane %v10571_v43, 7 }
 0x410   : > { %12352 = vst [vmem:[#allocation42_spill] sm:$0xff] %v11049_v9 }
 0x411   : > { %v11042_v18 = vsel %vm375_vm3, %v3431_v53, %v12350_v59  ;;  %v12355_v59 = vrot.slane %v10562_v20, 1 }
 0x412   : > { %8136 = vmatmul.mubr.msk.f32.gmra.mrb[24].mxu1 %vm2977_vm4, %v11027_v6 }
 0x413   : > { %8138 = vmatprep.mubr.msk.f32.mxu1 %vm2977_vm4, %v11034_v22  ;;  %v12353_v22 = vrot.slane %v10560_v39, 7  ;;  %v11064_v53 = vsel %vm375_vm3, %v12355_v59, %v3435_v32  ;;  %v12362_v59 = vld [vmem:[#allocation13_spill] sm:$0xff] }
 0x415   : > { %v11057_v6 = vsel %vm375_vm3, %v3433_v55, %v12353_v22  ;;  %v6817_v22 = vld [vmem:[%s11940_s3 + $0x28] sm:$0xff]  ;;  %v12360_v55 = vld [vmem:[#allocation8_spill] sm:$0xff] }
 0x416   : > { %8139 = vmatmul.mubr.msk.f32.gmra.mrb[26].mxu1 %vm2977_vm4, %v11042_v18  ;;  %12354 = vst [vmem:[#allocation43_spill] sm:$0xff] %v11057_v6 }
 0x417   : > { %8141 = vmatprep.mubr.msk.f32.mxu1 %vm2977_vm4, %v11049_v9  ;;  %v11071_v9 = vsel %vm375_vm3, %v3435_v32, %v12356_v58  ;;  %v12361_v32 = vld [vmem:[#allocation9_spill] sm:$0xff]  ;;  %v11137_v58 = vmax.f32 %v12362_v59, 0.0 }
 0x418   : > { %12357 = vst [vmem:[#allocation44_spill] sm:$0xff] %v11071_v9 }
 0x41a   : > { %8142 = vmatmul.mubr.msk.f32.gmra.mrb[28].mxu1 %vm2977_vm4, %v11057_v6 }
 0x41b   : > { %8144 = vmatprep.mubr.msk.f32.mxu1 %vm2977_vm4, %v11064_v53 }
 0x41e   : > { %8145 = vmatmul.mubr.msk.f32.gmra.mrb[30].mxu1 %vm2977_vm4, %v11071_v9 }
 0x41f   : > { %8149 = vmatprep.mubr.msk.f32.mxu1 %vm2977_vm4, %v10601_v4  ;;  %v12358_v4 = vld [vmem:[#allocation38_spill] sm:$0xff] }
 0x422   : > { %8150 = vmatmul.mubr.msk.f32.vlgmr.msra.gmra.mrb[0].mxu1 %vm2977_vm4, %v10610_v7  ;;  %v12359_v7 = vld [vmem:[#allocation11_spill] sm:$0xff] }
 0x423   : > { %8198 = vmatpush3.msra.mxu1 %v10856_v30  ;;  %8152 = vmatprep.mubr.msk.f32.mxu1 %vm2977_vm4, %v10579_v48  ;;  %v11130_v30 = vmax.f32 %v12359_v7, 0.0  ;;  %v12142_v7 = vrot.slane %v11137_v58, 7 }
 0x424   : > { %8247 = vmatprep.subr.mxu1 %v6817_v22 }
 0x426   : > { %8153 = vmatmul.mubr.msk.f32.gmra.mrb[2].mxu1 %vm2977_vm4, %v10588_v42 }
 0x427   : > { %8155 = vmatprep.mubr.msk.f32.mxu1 %vm2977_vm4, %v10624_v24 }
 0x42a   : > { %8156 = vmatmul.mubr.msk.f32.gmra.mrb[4].mxu1 %vm2977_vm4, %v10633_v8 }
 0x42b   : > { %8158 = vmatprep.mubr.msk.f32.mxu1 %vm2977_vm4, %v10641_v10 }
 0x42e   : > { %8159 = vmatmul.mubr.msk.f32.gmra.mrb[6].mxu1 %vm2977_vm4, %v10650_v14 }
 0x42f   : > { %8161 = vmatprep.mubr.msk.f32.mxu1 %vm2977_vm4, %v10658_v16 }
 0x432   : > { %8162 = vmatmul.mubr.msk.f32.gmra.mrb[8].mxu1 %vm2977_vm4, %v10667_v21 }
 0x433   : > { %8164 = vmatprep.mubr.msk.f32.mxu1 %vm2977_vm4, %v10675_v26 }
 0x436   : > { %8165 = vmatmul.mubr.msk.f32.gmra.mrb[10].mxu1 %vm2977_vm4, %v10684_v63 }
 0x437   : > { %8167 = vmatprep.mubr.msk.f32.mxu1 %vm2977_vm4, %v10692_v27 }
 0x43a   : > { %8168 = vmatmul.mubr.msk.f32.gmra.mrb[12].mxu1 %vm2977_vm4, %v10701_v19 }
 0x43b   : > { %8170 = vmatprep.mubr.msk.f32.mxu1 %vm2977_vm4, %v10709_v28 }
 0x43e   : > { %8171 = vmatmul.mubr.msk.f32.gmra.mrb[14].mxu1 %vm2977_vm4, %v10718_v33 }
 0x43f   : > { %8173 = vmatprep.mubr.msk.f32.mxu1 %vm2977_vm4, %v10726_v46 }
 0x442   : > { %8174 = vmatmul.mubr.msk.f32.gmra.mrb[16].mxu1 %vm2977_vm4, %v10735_v12 }
 0x443   : > { %8176 = vmatprep.mubr.msk.f32.mxu1 %vm2977_vm4, %v10743_v17 }
 0x446   : > { %8177 = vmatmul.mubr.msk.f32.gmra.mrb[18].mxu1 %vm2977_vm4, %v10752_v15 }
 0x447   : > { %8179 = vmatprep.mubr.msk.f32.mxu1 %vm2977_vm4, %v10760_v31 }
 0x44a   : > { %8180 = vmatmul.mubr.msk.f32.gmra.mrb[20].mxu1 %vm2977_vm4, %v10769_v56  ;;  %v12363_v56 = vld [vmem:[#allocation10_spill] sm:$0xff] }
 0x44b   : > { %8182 = vmatprep.mubr.msk.f32.mxu1 %vm2977_vm4, %v10777_v36  ;;  %v3372_v36 = vrot.slane %v11130_v30, 7 }
 0x44e   : > { %8183 = vmatmul.mubr.msk.f32.gmra.mrb[22].mxu1 %vm2977_vm4, %v12358_v4  ;;  %v12143_v4 = vrot.slane %v11130_v30, 1 }
 0x44f   : > { %8185 = vmatprep.mubr.msk.f32.mxu1 %vm2977_vm4, %v10794_v5  ;;  %v12364_v5 = vld [vmem:[#allocation12_spill] sm:$0xff] }
 0x450   : > { %v11151_v59 = vsel %vm294_vm2, %v12143_v4, %v3372_v36  ;;  %v12369_v4 = vld [vmem:[#allocation5_spill] sm:$0xff] }
 0x452   : > { %8186 = vmatmul.mubr.msk.f32.gmra.mrb[24].mxu1 %vm2977_vm4, %v12360_v55 }
 0x453   : > { %8188 = vmatprep.mubr.msk.f32.mxu1 %vm2977_vm4, %v12361_v32 }
 0x456   : > { %8189 = vmatmul.mubr.msk.f32.gmra.mrb[26].mxu1 %vm2977_vm4, %v12363_v56  ;;  %v11158_v56 = vsel %vm294_vm2, %v3372_v36, %v12142_v7  ;;  %v12365_v36 = vld [vmem:[#allocation2_spill] sm:$0xff]  ;;  %v12368_v7 = vld [vmem:[#allocation4_spill] sm:$0xff] }
 0x457   : > { %8191 = vmatprep.mubr.msk.f32.mxu1 %vm2977_vm4, %v12364_v5 }
 0x45a   : > { %8192 = vmatmul.mubr.msk.f32.gmra.mrb[28].mxu1 %vm2977_vm4, %v10836_v50  ;;  %v6850_v50 = vld [vmem:[%s11940_s3 + $0x30] sm:$0xff] }
 0x45b   : > { %8194 = vmatprep.mubr.msk.f32.mxu1 %vm2977_vm4, %v11151_v59 }
 0x45e   : > { %8195 = vmatmul.mubr.msk.f32.gmra.mrb[30].mxu1 %vm2977_vm4, %v11158_v56 }
 0x45f   : > { %8199 = vmatprep.mubr.msk.f32.mxu1 %vm2977_vm4, %v10444_v60  ;;  %v12366_v60 = vld [vmem:[#allocation6_spill] sm:$0xff] }
 0x462   : > { %8200 = vmatmul.mubr.msk.f32.vlgmr.msra.gmra.mrb[0].mxu1 %vm2977_vm4, %v10458_v49  ;;  %v6883_v49 = vld [vmem:[%s11940_s3 + $0x38] sm:$0xff] }
 0x463   : > { %8248 = vmatpush3.msra.mxu1 %v6817_v22  ;;  %8202 = vmatprep.mubr.msk.f32.mxu1 %vm2977_vm4, %v10440_v52  ;;  %v12367_v22 = vld [vmem:[#allocation14_spill] sm:$0xff] }
 0x464   : > { %8297 = vmatprep.subr.mxu1 %v6850_v50 }
 0x466   : > { %8203 = vmatmul.mubr.msk.f32.gmra.mrb[2].mxu1 %vm2977_vm4, %v12365_v36 }
 0x467   : > { %8205 = vmatprep.mubr.msk.f32.mxu1 %vm2977_vm4, %v10465_v0 }
 0x46a   : > { %8206 = vmatmul.mubr.msk.f32.gmra.mrb[4].mxu1 %vm2977_vm4, %v10471_v57 }
 0x46b   : > { %8208 = vmatprep.mubr.msk.f32.mxu1 %vm2977_vm4, %v10473_v61 }
 0x46e   : > { %8209 = vmatmul.mubr.msk.f32.gmra.mrb[6].mxu1 %vm2977_vm4, %v10479_v51 }
 0x46f   : > { %8211 = vmatprep.mubr.msk.f32.mxu1 %vm2977_vm4, %v10481_v40 }
 0x472   : > { %8212 = vmatmul.mubr.msk.f32.gmra.mrb[8].mxu1 %vm2977_vm4, %v10487_v47 }
 0x473   : > { %8214 = vmatprep.mubr.msk.f32.mxu1 %vm2977_vm4, %v10489_v62 }
 0x476   : > { %8215 = vmatmul.mubr.msk.f32.gmra.mrb[10].mxu1 %vm2977_vm4, %v10495_v34 }
 0x477   : > { %8217 = vmatprep.mubr.msk.f32.mxu1 %vm2977_vm4, %v10497_v45 }
 0x47a   : > { %8218 = vmatmul.mubr.msk.f32.gmra.mrb[12].mxu1 %vm2977_vm4, %v10503_v44 }
 0x47b   : > { %8220 = vmatprep.mubr.msk.f32.mxu1 %vm2977_vm4, %v10505_v37 }
 0x47e   : > { %8221 = vmatmul.mubr.msk.f32.gmra.mrb[14].mxu1 %vm2977_vm4, %v10511_v29 }
 0x47f   : > { %8223 = vmatprep.mubr.msk.f32.mxu1 %vm2977_vm4, %v10513_v3 }
 0x482   : > { %8224 = vmatmul.mubr.msk.f32.gmra.mrb[16].mxu1 %vm2977_vm4, %v10519_v13 }
 0x483   : > { %8226 = vmatprep.mubr.msk.f32.mxu1 %vm2977_vm4, %v10521_v11 }
 0x486   : > { %8227 = vmatmul.mubr.msk.f32.gmra.mrb[18].mxu1 %vm2977_vm4, %v10527_v25 }
 0x487   : > { %8229 = vmatprep.mubr.msk.f32.mxu1 %vm2977_vm4, %v10529_v23 }
 0x48a   : > { %8230 = vmatmul.mubr.msk.f32.gmra.mrb[20].mxu1 %vm2977_vm4, %v10535_v38 }
 0x48b   : > { %8232 = vmatprep.mubr.msk.f32.mxu1 %vm2977_vm4, %v10537_v35 }
 0x48e   : > { %8233 = vmatmul.mubr.msk.f32.gmra.mrb[22].mxu1 %vm2977_vm4, %v10543_v1 }
 0x48f   : > { %8235 = vmatprep.mubr.msk.f32.mxu1 %vm2977_vm4, %v10545_v54 }
 0x492   : > { %8236 = vmatmul.mubr.msk.f32.gmra.mrb[24].mxu1 %vm2977_vm4, %v10551_v41 }
 0x493   : > { %8238 = vmatprep.mubr.msk.f32.mxu1 %vm2977_vm4, %v10553_v2 }
 0x496   : > { %8239 = vmatmul.mubr.msk.f32.gmra.mrb[26].mxu1 %vm2977_vm4, %v10560_v39  ;;  %v12373_v39 = vld [vmem:[#allocation20_spill] sm:$0xff] }
 0x497   : > { %8241 = vmatprep.mubr.msk.f32.mxu1 %vm2977_vm4, %v10562_v20  ;;  %v12371_v20 = vld [vmem:[#allocation18_spill] sm:$0xff] }
 0x49a   : > { %8242 = vmatmul.mubr.msk.f32.gmra.mrb[28].mxu1 %vm2977_vm4, %v10571_v43  ;;  %v12370_v43 = vld [vmem:[#allocation15_spill] sm:$0xff] }
 0x49b   : > { %8244 = vmatprep.mubr.msk.f32.mxu1 %vm2977_vm4, %v11130_v30 }
 0x49e   : > { %8245 = vmatmul.mubr.msk.f32.gmra.mrb[30].mxu1 %vm2977_vm4, %v11137_v58 }
 0x49f   : > { %8249 = vmatprep.mubr.msk.f32.mxu1 %vm2977_vm4, %v12366_v60  ;;  %v12372_v60 = vld [vmem:[#allocation19_spill] sm:$0xff] }
 0x4a2   : > { %8250 = vmatmul.mubr.msk.f32.vlgmr.msra.gmra.mrb[0].mxu1 %vm2977_vm4, %v12367_v22  ;;  %v12375_v22 = vld [vmem:[#allocation22_spill] sm:$0xff] }
 0x4a3   : > { %8298 = vmatpush3.msra.mxu1 %v6850_v50  ;;  %8252 = vmatprep.mubr.msk.f32.mxu1 %vm2977_vm4, %v12368_v7  ;;  %v12374_v50 = vld [vmem:[#allocation21_spill] sm:$0xff]  ;;  %v12376_v7 = vld [vmem:[#allocation23_spill] sm:$0xff] }
 0x4a4   : > { %8347 = vmatprep.subr.mxu1 %v6883_v49 }
 0x4a6   : > { %8253 = vmatmul.mubr.msk.f32.gmra.mrb[2].mxu1 %vm2977_vm4, %v12369_v4  ;;  %v12377_v4 = vld [vmem:[#allocation24_spill] sm:$0xff] }
 0x4a7   : > { %8255 = vmatprep.mubr.msk.f32.mxu1 %vm2977_vm4, %v12370_v43  ;;  %v12378_v43 = vld [vmem:[#allocation25_spill] sm:$0xff] }
 0x4aa   : > { %8256 = vmatmul.mubr.msk.f32.gmra.mrb[4].mxu1 %vm2977_vm4, %v12371_v20  ;;  %v12379_v20 = vld [vmem:[#allocation26_spill] sm:$0xff] }
 0x4ab   : > { %8258 = vmatprep.mubr.msk.f32.mxu1 %vm2977_vm4, %v12372_v60  ;;  %v12380_v60 = vld [vmem:[#allocation27_spill] sm:$0xff] }
 0x4ae   : > { %8259 = vmatmul.mubr.msk.f32.gmra.mrb[6].mxu1 %vm2977_vm4, %v12373_v39  ;;  %v12381_v39 = vld [vmem:[#allocation28_spill] sm:$0xff] }
 0x4af   : > { %8261 = vmatprep.mubr.msk.f32.mxu1 %vm2977_vm4, %v12374_v50  ;;  %v12382_v50 = vld [vmem:[#allocation29_spill] sm:$0xff] }
 0x4b2   : > { %8262 = vmatmul.mubr.msk.f32.gmra.mrb[8].mxu1 %vm2977_vm4, %v12375_v22  ;;  %v12383_v22 = vld [vmem:[#allocation30_spill] sm:$0xff] }
 0x4b3   : > { %8264 = vmatprep.mubr.msk.f32.mxu1 %vm2977_vm4, %v12376_v7  ;;  %v12384_v7 = vld [vmem:[#allocation32_spill] sm:$0xff] }
 0x4b6   : > { %8265 = vmatmul.mubr.msk.f32.gmra.mrb[10].mxu1 %vm2977_vm4, %v12377_v4  ;;  %v12385_v4 = vld [vmem:[#allocation34_spill] sm:$0xff] }
 0x4b7   : > { %8267 = vmatprep.mubr.msk.f32.mxu1 %vm2977_vm4, %v12378_v43  ;;  %v12386_v43 = vld [vmem:[#allocation36_spill] sm:$0xff] }
 0x4ba   : > { %8268 = vmatmul.mubr.msk.f32.gmra.mrb[12].mxu1 %vm2977_vm4, %v12379_v20  ;;  %v12387_v20 = vld [vmem:[#allocation37_spill] sm:$0xff] }
 0x4bb   : > { %8270 = vmatprep.mubr.msk.f32.mxu1 %vm2977_vm4, %v12380_v60  ;;  %v12388_v60 = vld [vmem:[#allocation39_spill] sm:$0xff] }
 0x4be   : > { %8271 = vmatmul.mubr.msk.f32.gmra.mrb[14].mxu1 %vm2977_vm4, %v12381_v39  ;;  %v12389_v39 = vld [vmem:[#allocation40_spill] sm:$0xff] }
 0x4bf   : > { %8273 = vmatprep.mubr.msk.f32.mxu1 %vm2977_vm4, %v12382_v50  ;;  %v12390_v50 = vld [vmem:[#allocation41_spill] sm:$0xff] }
 0x4c2   : > { %8274 = vmatmul.mubr.msk.f32.gmra.mrb[16].mxu1 %vm2977_vm4, %v12383_v22 }
 0x4c3   : > { %8276 = vmatprep.mubr.msk.f32.mxu1 %vm2977_vm4, %v12384_v7  ;;  %v12391_v7 = vld [vmem:[#allocation42_spill] sm:$0xff] }
 0x4c6   : > { %8277 = vmatmul.mubr.msk.f32.gmra.mrb[18].mxu1 %vm2977_vm4, %v12385_v4 }
 0x4c7   : > { %8279 = vmatprep.mubr.msk.f32.mxu1 %vm2977_vm4, %v12386_v43 }
 0x4ca   : > { %8280 = vmatmul.mubr.msk.f32.gmra.mrb[20].mxu1 %vm2977_vm4, %v12387_v20  ;;  %v3437_v20 = vrot.slane %v11137_v58, 1 }
 0x4cb   : > { %8282 = vmatprep.mubr.msk.f32.mxu1 %vm2977_vm4, %v12388_v60 }
 0x4ce   : > { %8283 = vmatmul.mubr.msk.f32.gmra.mrb[22].mxu1 %vm2977_vm4, %v12389_v39  ;;  %v12392_v39 = vrot.slane %v11130_v30, 1 }
 0x4cf   : > { %8285 = vmatprep.mubr.msk.f32.mxu1 %vm2977_vm4, %v12390_v50 }
 0x4d0   : > { %v11296_v50 = vsel %vm375_vm3, %v12392_v39, %v3437_v20  ;;  %v12394_v39 = vld [vmem:[#allocation33_spill] sm:$0xff] }
 0x4d2   : > { %8286 = vmatmul.mubr.msk.f32.gmra.mrb[24].mxu1 %vm2977_vm4, %v11042_v18 }
 0x4d3   : > { %8288 = vmatprep.mubr.msk.f32.mxu1 %vm2977_vm4, %v12391_v7  ;;  %v12393_v7 = vrot.slane %v11137_v58, 7 }
 0x4d6   : > { %8289 = vmatmul.mubr.msk.f32.gmra.mrb[26].mxu1 %vm2977_vm4, %v11057_v6  ;;  %v11303_v6 = vsel %vm375_vm3, %v3437_v20, %v12393_v7  ;;  %v12395_v20 = vld [vmem:[#allocation35_spill] sm:$0xff] }
 0x4d7   : > { %8291 = vmatprep.mubr.msk.f32.mxu1 %vm2977_vm4, %v11064_v53 }
 0x4da   : > { %8292 = vmatmul.mubr.msk.f32.gmra.mrb[28].mxu1 %vm2977_vm4, %v11071_v9  ;;  %v6916_v9 = vld [vmem:[%s11940_s3 + $0x40] sm:$0xff] }
 0x4db   : > { %8294 = vmatprep.mubr.msk.f32.mxu1 %vm2977_vm4, %v11296_v50 }
 0x4de   : > { %8295 = vmatmul.mubr.msk.f32.gmra.mrb[30].mxu1 %vm2977_vm4, %v11303_v6 }
 0x4df   : > { %8299 = vmatprep.mubr.msk.f32.mxu1 %vm2977_vm4, %v10579_v48  ;;  %v12396_v48 = vld [vmem:[#allocation38_spill] sm:$0xff] }
 0x4e2   : > { %8300 = vmatmul.mubr.msk.f32.vlgmr.msra.gmra.mrb[0].mxu1 %vm2977_vm4, %v10588_v42  ;;  %v12397_v42 = vld [vmem:[#allocation7_spill] sm:$0xff] }
 0x4e3   : > { %8348 = vmatpush3.msra.mxu1 %v6883_v49  ;;  %8302 = vmatprep.mubr.msk.f32.mxu1 %vm2977_vm4, %v10624_v24  ;;  %v12398_v24 = vld [vmem:[#allocation10_spill] sm:$0xff] }
 0x4e4   : > { %8397 = vmatprep.subr.mxu1 %v6916_v9 }
 0x4e6   : > { %8303 = vmatmul.mubr.msk.f32.gmra.mrb[2].mxu1 %vm2977_vm4, %v10633_v8  ;;  %v12399_v8 = vld [vmem:[#allocation3_spill] sm:$0xff] }
 0x4e7   : > { %8305 = vmatprep.mubr.msk.f32.mxu1 %vm2977_vm4, %v10641_v10 }
 0x4ea   : > { %8306 = vmatmul.mubr.msk.f32.gmra.mrb[4].mxu1 %vm2977_vm4, %v10650_v14 }
 0x4eb   : > { %8308 = vmatprep.mubr.msk.f32.mxu1 %vm2977_vm4, %v10658_v16 }
 0x4ee   : > { %8309 = vmatmul.mubr.msk.f32.gmra.mrb[6].mxu1 %vm2977_vm4, %v10667_v21 }
 0x4ef   : > { %8311 = vmatprep.mubr.msk.f32.mxu1 %vm2977_vm4, %v10675_v26 }
 0x4f2   : > { %8312 = vmatmul.mubr.msk.f32.gmra.mrb[8].mxu1 %vm2977_vm4, %v10684_v63 }
 0x4f3   : > { %8314 = vmatprep.mubr.msk.f32.mxu1 %vm2977_vm4, %v10692_v27 }
 0x4f6   : > { %8315 = vmatmul.mubr.msk.f32.gmra.mrb[10].mxu1 %vm2977_vm4, %v10701_v19 }
 0x4f7   : > { %8317 = vmatprep.mubr.msk.f32.mxu1 %vm2977_vm4, %v10709_v28 }
 0x4fa   : > { %8318 = vmatmul.mubr.msk.f32.gmra.mrb[12].mxu1 %vm2977_vm4, %v10718_v33 }
 0x4fb   : > { %8320 = vmatprep.mubr.msk.f32.mxu1 %vm2977_vm4, %v10726_v46 }
 0x4fe   : > { %8321 = vmatmul.mubr.msk.f32.gmra.mrb[14].mxu1 %vm2977_vm4, %v10735_v12 }
 0x4ff   : > { %8323 = vmatprep.mubr.msk.f32.mxu1 %vm2977_vm4, %v10743_v17 }
 0x502   : > { %8324 = vmatmul.mubr.msk.f32.gmra.mrb[16].mxu1 %vm2977_vm4, %v10752_v15 }
 0x503   : > { %8326 = vmatprep.mubr.msk.f32.mxu1 %vm2977_vm4, %v10760_v31 }
 0x506   : > { %8327 = vmatmul.mubr.msk.f32.gmra.mrb[18].mxu1 %vm2977_vm4, %v12394_v39 }
 0x507   : > { %8329 = vmatprep.mubr.msk.f32.mxu1 %vm2977_vm4, %v12395_v20 }
 0x50a   : > { %8330 = vmatmul.mubr.msk.f32.gmra.mrb[20].mxu1 %vm2977_vm4, %v12396_v48 }
 0x50b   : > { %8332 = vmatprep.mubr.msk.f32.mxu1 %vm2977_vm4, %v12397_v42 }
 0x50e   : > { %8333 = vmatmul.mubr.msk.f32.gmra.mrb[22].mxu1 %vm2977_vm4, %v12360_v55 }
 0x50f   : > { %8335 = vmatprep.mubr.msk.f32.mxu1 %vm2977_vm4, %v12361_v32 }
 0x512   : > { %8336 = vmatmul.mubr.msk.f32.gmra.mrb[24].mxu1 %vm2977_vm4, %v12398_v24 }
 0x513   : > { %8338 = vmatprep.mubr.msk.f32.mxu1 %vm2977_vm4, %v12364_v5 }
 0x516   : > { %8339 = vmatmul.mubr.msk.f32.gmra.mrb[26].mxu1 %vm2977_vm4, %v12399_v8 }
 0x517   : > { %8341 = vmatprep.mubr.msk.f32.mxu1 %vm2977_vm4, %v11151_v59 }
 0x51a   : > { %8342 = vmatmul.mubr.msk.f32.gmra.mrb[28].mxu1 %vm2977_vm4, %v11158_v56 }
 0x51b   : > { %8344 = vmatprep.mubr.msk.f32.mxu1 %vm2977_vm4, %v12364_v5 }
 0x51e   : > { %8345 = vmatmul.mubr.msk.f32.gmra.mrb[30].mxu1 %vm2977_vm4, %v12399_v8 }
 0x51f   : > { %8349 = vmatprep.mubr.msk.f32.mxu1 %vm2977_vm4, %v10440_v52  ;;  %v12400_v52 = vld [vmem:[#allocation16_spill] sm:$0xff] }
 0x522   : > { %8350 = vmatmul.mubr.msk.f32.vlgmr.msra.gmra.mrb[0].mxu1 %vm2977_vm4, %v12365_v36 }
 0x523   : > { %8398 = vmatpush3.msra.mxu1 %v6916_v9  ;;  %8352 = vmatprep.mubr.msk.f32.mxu1 %vm2977_vm4, %v10465_v0  ;;  %v12401_v0 = vld [vmem:[#allocation17_spill] sm:$0xff] }
 0x526   : > { %8353 = vmatmul.mubr.msk.f32.gmra.mrb[2].mxu1 %vm2977_vm4, %v10471_v57  ;;  %v12402_v57 = vld [vmem:[#allocation31_spill] sm:$0xff] }
 0x527   : > { %8355 = vmatprep.mubr.msk.f32.mxu1 %vm2977_vm4, %v10473_v61  ;;  %v12403_v61 = vld [vmem:[#allocation4_spill] sm:$0xff] }
 0x52a   : > { %8356 = vmatmul.mubr.msk.f32.gmra.mrb[4].mxu1 %vm2977_vm4, %v10479_v51  ;;  %v12404_v51 = vld [vmem:[#allocation5_spill] sm:$0xff] }
 0x52b   : > { %8358 = vmatprep.mubr.msk.f32.mxu1 %vm2977_vm4, %v10481_v40  ;;  %v12405_v40 = vld [vmem:[#allocation15_spill] sm:$0xff] }
 0x52e   : > { %8359 = vmatmul.mubr.msk.f32.gmra.mrb[6].mxu1 %vm2977_vm4, %v10487_v47  ;;  %v12406_v47 = vld [vmem:[#allocation18_spill] sm:$0xff] }
 0x52f   : > { %8361 = vmatprep.mubr.msk.f32.mxu1 %vm2977_vm4, %v10489_v62  ;;  %v12407_v62 = vld [vmem:[#allocation19_spill] sm:$0xff] }
 0x532   : > { %8362 = vmatmul.mubr.msk.f32.gmra.mrb[8].mxu1 %vm2977_vm4, %v10495_v34  ;;  %v12408_v34 = vld [vmem:[#allocation20_spill] sm:$0xff] }
 0x533   : > { %8364 = vmatprep.mubr.msk.f32.mxu1 %vm2977_vm4, %v10497_v45  ;;  %v12409_v45 = vld [vmem:[#allocation21_spill] sm:$0xff] }
 0x536   : > { %8365 = vmatmul.mubr.msk.f32.gmra.mrb[10].mxu1 %vm2977_vm4, %v10503_v44  ;;  %v12410_v44 = vld [vmem:[#allocation22_spill] sm:$0xff] }
 0x537   : > { %8367 = vmatprep.mubr.msk.f32.mxu1 %vm2977_vm4, %v10505_v37  ;;  %v12411_v37 = vld [vmem:[#allocation23_spill] sm:$0xff] }
 0x53a   : > { %8368 = vmatmul.mubr.msk.f32.gmra.mrb[12].mxu1 %vm2977_vm4, %v10511_v29  ;;  %v12412_v29 = vld [vmem:[#allocation24_spill] sm:$0xff] }
 0x53b   : > { %8370 = vmatprep.mubr.msk.f32.mxu1 %vm2977_vm4, %v10513_v3  ;;  %v12413_v3 = vld [vmem:[#allocation25_spill] sm:$0xff] }
 0x53e   : > { %8371 = vmatmul.mubr.msk.f32.gmra.mrb[14].mxu1 %vm2977_vm4, %v10519_v13  ;;  %v12414_v13 = vld [vmem:[#allocation26_spill] sm:$0xff] }
 0x53f   : > { %8373 = vmatprep.mubr.msk.f32.mxu1 %vm2977_vm4, %v10521_v11  ;;  %v12415_v11 = vld [vmem:[#allocation27_spill] sm:$0xff] }
 0x542   : > { %8374 = vmatmul.mubr.msk.f32.gmra.mrb[16].mxu1 %vm2977_vm4, %v10527_v25  ;;  %v12416_v25 = vld [vmem:[#allocation28_spill] sm:$0xff] }
 0x543   : > { %8376 = vmatprep.mubr.msk.f32.mxu1 %vm2977_vm4, %v10529_v23  ;;  %v12417_v23 = vld [vmem:[#allocation29_spill] sm:$0xff] }
 0x546   : > { %8377 = vmatmul.mubr.msk.f32.gmra.mrb[18].mxu1 %vm2977_vm4, %v10535_v38  ;;  %v12418_v38 = vld [vmem:[#allocation32_spill] sm:$0xff] }
 0x547   : > { %8379 = vmatprep.mubr.msk.f32.mxu1 %vm2977_vm4, %v10537_v35  ;;  %v12419_v35 = vld [vmem:[#allocation37_spill] sm:$0xff] }
 0x54a   : > { %8380 = vmatmul.mubr.msk.f32.gmra.mrb[20].mxu1 %vm2977_vm4, %v10543_v1  ;;  %v12420_v1 = vld [vmem:[#allocation40_spill] sm:$0xff] }
 0x54b   : > { %8382 = vmatprep.mubr.msk.f32.mxu1 %vm2977_vm4, %v10545_v54  ;;  %v12421_v54 = vld [vmem:[#allocation41_spill] sm:$0xff] }
 0x54e   : > { %8383 = vmatmul.mubr.msk.f32.gmra.mrb[22].mxu1 %vm2977_vm4, %v10551_v41  ;;  %v12422_v41 = vld [vmem:[#allocation42_spill] sm:$0xff] }
 0x54f   : > { %8385 = vmatprep.mubr.msk.f32.mxu1 %vm2977_vm4, %v10553_v2  ;;  %v12423_v2 = vld [vmem:[#allocation43_spill] sm:$0xff] }
 0x552   : > { %8386 = vmatmul.mubr.msk.f32.gmra.mrb[24].mxu1 %vm2977_vm4, %v12400_v52 }
 0x553   : > { %8388 = vmatprep.mubr.msk.f32.mxu1 %vm2977_vm4, %v12401_v0 }
 0x556   : > { %8389 = vmatmul.mubr.msk.f32.gmra.mrb[26].mxu1 %vm2977_vm4, %v12402_v57 }
 0x557   : > { %8391 = vmatprep.mubr.msk.f32.mxu1 %vm2977_vm4, %v11130_v30 }
 0x55a   : > { %8392 = vmatmul.mubr.msk.f32.gmra.mrb[28].mxu1 %vm2977_vm4, %v11137_v58 }
 0x55b   : > { %8394 = vmatprep.mubr.msk.f32.mxu1 %vm2977_vm4, %v12401_v0 }
 0x55e   : > { %8395 = vmatmul.mubr.msk.f32.gmra.mrb[30].mxu1 %vm2977_vm4, %v12402_v57 }
 0x55f   : > { %8399 = vmatprep.mubr.msk.f32.mxu1 %vm2977_vm4, %v12403_v61 }
 0x562   : > { %8400 = vmatmul.mubr.msk.f32.vlgmr.msra.gmra.mrb[0].mxu1 %vm2977_vm4, %v12404_v51 }
 0x563   : > { %8402 = vmatprep.mubr.msk.f32.mxu1 %vm2977_vm4, %v12405_v40 }
 0x566   : > { %8403 = vmatmul.mubr.msk.f32.gmra.mrb[2].mxu1 %vm2977_vm4, %v12406_v47 }
 0x567   : > { %8405 = vmatprep.mubr.msk.f32.mxu1 %vm2977_vm4, %v12407_v62 }
 0x56a   : > { %8406 = vmatmul.mubr.msk.f32.gmra.mrb[4].mxu1 %vm2977_vm4, %v12408_v34 }
 0x56b   : > { %8408 = vmatprep.mubr.msk.f32.mxu1 %vm2977_vm4, %v12409_v45 }
 0x56e   : > { %8409 = vmatmul.mubr.msk.f32.gmra.mrb[6].mxu1 %vm2977_vm4, %v12410_v44 }
 0x56f   : > { %8411 = vmatprep.mubr.msk.f32.mxu1 %vm2977_vm4, %v12411_v37 }
 0x572   : > { %8412 = vmatmul.mubr.msk.f32.gmra.mrb[8].mxu1 %vm2977_vm4, %v12412_v29 }
 0x573   : > { %8414 = vmatprep.mubr.msk.f32.mxu1 %vm2977_vm4, %v12413_v3 }
 0x576   : > { %8415 = vmatmul.mubr.msk.f32.gmra.mrb[10].mxu1 %vm2977_vm4, %v12414_v13 }
 0x577   : > { %8417 = vmatprep.mubr.msk.f32.mxu1 %vm2977_vm4, %v12415_v11 }
 0x57a   : > { %8418 = vmatmul.mubr.msk.f32.gmra.mrb[12].mxu1 %vm2977_vm4, %v12416_v25 }
 0x57b   : > { %8420 = vmatprep.mubr.msk.f32.mxu1 %vm2977_vm4, %v12417_v23 }
 0x57e   : > { %8421 = vmatmul.mubr.msk.f32.gmra.mrb[14].mxu1 %vm2977_vm4, %v12383_v22 }
 0x57f   : > { %8423 = vmatprep.mubr.msk.f32.mxu1 %vm2977_vm4, %v12418_v38 }
 0x582   : > { %8424 = vmatmul.mubr.msk.f32.gmra.mrb[16].mxu1 %vm2977_vm4, %v12385_v4 }
 0x583   : > { %8426 = vmatprep.mubr.msk.f32.mxu1 %vm2977_vm4, %v12386_v43  ;;  %v12424_v43 = vld [vmem:[#allocation44_spill] sm:$0xff] }
 0x586   : > { %8427 = vmatmul.mubr.msk.f32.gmra.mrb[18].mxu1 %vm2977_vm4, %v12419_v35 }
 0x587   : > { %8429 = vmatprep.mubr.msk.f32.mxu1 %vm2977_vm4, %v12388_v60 }
 0x58a   : > { %8430 = vmatmul.mubr.msk.f32.gmra.mrb[20].mxu1 %vm2977_vm4, %v12420_v1 }
 0x58b   : > { %8432 = vmatprep.mubr.msk.f32.mxu1 %vm2977_vm4, %v12421_v54 }
 0x58e   : > { %8433 = vmatmul.mubr.msk.f32.gmra.mrb[22].mxu1 %vm2977_vm4, %v11042_v18 }
 0x58f   : > { %8435 = vmatprep.mubr.msk.f32.mxu1 %vm2977_vm4, %v12422_v41 }
 0x592   : > { %8436 = vmatmul.mubr.msk.f32.gmra.mrb[24].mxu1 %vm2977_vm4, %v12423_v2 }
 0x593   : > { %8438 = vmatprep.mubr.msk.f32.mxu1 %vm2977_vm4, %v11064_v53 }
 0x596   : > { %8439 = vmatmul.mubr.msk.f32.gmra.mrb[26].mxu1 %vm2977_vm4, %v12424_v43 }
 0x597   : > { %8441 = vmatprep.mubr.msk.f32.mxu1 %vm2977_vm4, %v11296_v50 }
 0x59a   : > { %8442 = vmatmul.mubr.msk.f32.gmra.mrb[28].mxu1 %vm2977_vm4, %v11303_v6 }
 0x59b   : > { %8444 = vmatprep.mubr.msk.f32.mxu1 %vm2977_vm4, %v11064_v53 }
 0x59e   : > { %8445 = vmatmul.mubr.msk.f32.gmra.mrb[30].mxu1 %vm2977_vm4, %v12424_v43 }
 0x635   : > { %v11502_v5 = vpop.f32.mrb[0].mxu1 }
 0x636   : > { %v5978_v10 = vsel %vm459_vm1, %v11502_v5, 0.0  ;;  %v6047_v31 = vmul.f32 %v11502_v5, %v11502_v5  ;;  %v11508_v14 = vpop.f32.mrb[1].mxu1 }
 0x637   : > { %v5977_v16 = vsel %vm459_vm1, %v11508_v14, 0.0  ;;  %v6046_v17 = vmul.f32 %v11508_v14, %v11508_v14 }
 0x638   : > { %v6079_v21 = vsel %vm459_vm1, %v6047_v31, 0.0  ;;  %v5979_v26 = vadd.f32 %v5978_v10, %v5977_v16 }
 0x639   : > { %v6078_v28 = vsel %vm459_vm1, %v6046_v17, 0.0  ;;  %v11516_v63 = vpop.f32.mrb[2].mxu1 }
 0x63a   : > { %v6080_v27 = vadd.f32 %v6079_v21, %v6078_v28  ;;  %v11518_v46 = vpop.f32.mrb[3].mxu1  ;;  %v6049_v19 = vmul.f32 %v11516_v63, %v11516_v63  ;;  %v5982_v56 = vsel %vm459_vm1, %v11516_v63, 0.0 }
 0x63b   : > { %v5980_v33 = vsel %vm459_vm1, %v11518_v46, 0.0  ;;  %v6048_v12 = vmul.f32 %v11518_v46, %v11518_v46 }
 0x63c   : > { %v5981_v15 = vadd.f32 %v5980_v33, %v5979_v26  ;;  %v6083_v30 = vsel %vm459_vm1, %v6049_v19, 0.0 }
 0x63d   : > { %v6081_v6 = vsel %vm459_vm1, %v6048_v12, 0.0  ;;  %v11529_v18 = vpop.f32.mrb[4].mxu1 }
 0x63e   : > { %v6082_v9 = vadd.f32 %v6081_v6, %v6080_v27  ;;  %v11531_v53 = vpop.f32.mrb[5].mxu1  ;;  %v5983_v4 = vadd.f32 %v5982_v56, %v5981_v15  ;;  %v6051_v55 = vmul.f32 %v11529_v18, %v11529_v18  ;;  %v5986_v36 = vsel %vm459_vm1, %v11529_v18, 0.0 }
 0x63f   : > { %v5984_v32 = vsel %vm459_vm1, %v11531_v53, 0.0  ;;  %v6050_v58 = vmul.f32 %v11531_v53, %v11531_v53 }
 0x640   : > { %v5985_v7 = vadd.f32 %v5984_v32, %v5983_v4  ;;  %v6084_v59 = vadd.f32 %v6083_v30, %v6082_v9  ;;  %v6087_v20 = vsel %vm459_vm1, %v6051_v55, 0.0 }
 0x641   : > { %v6085_v49 = vsel %vm459_vm1, %v6050_v58, 0.0  ;;  %v11543_v60 = vpop.f32.mrb[6].mxu1 }
 0x642   : > { %v6086_v50 = vadd.f32 %v6085_v49, %v6084_v59  ;;  %v11545_v22 = vpop.f32.mrb[7].mxu1  ;;  %v5987_v39 = vadd.f32 %v5986_v36, %v5985_v7  ;;  %v6053_v48 = vmul.f32 %v11543_v60, %v11543_v60  ;;  %v5990_v0 = vsel %vm459_vm1, %v11543_v60, 0.0 }
 0x643   : > { %v5988_v42 = vsel %vm459_vm1, %v11545_v22, 0.0  ;;  %v6052_v24 = vmul.f32 %v11545_v22, %v11545_v22 }
 0x644   : > { %v5989_v8 = vadd.f32 %v5988_v42, %v5987_v39  ;;  %v6088_v52 = vadd.f32 %v6087_v20, %v6086_v50  ;;  %v6091_v62 = vsel %vm459_vm1, %v6053_v48, 0.0 }
 0x645   : > { %v6089_v57 = vsel %vm459_vm1, %v6052_v24, 0.0  ;;  %v11557_v61 = vpop.f32.mrb[8].mxu1 }
 0x646   : > { %v6090_v51 = vadd.f32 %v6089_v57, %v6088_v52  ;;  %v11559_v40 = vpop.f32.mrb[9].mxu1  ;;  %v5991_v47 = vadd.f32 %v5990_v0, %v5989_v8  ;;  %v6055_v34 = vmul.f32 %v11557_v61, %v11557_v61  ;;  %v5994_v3 = vsel %vm459_vm1, %v11557_v61, 0.0 }
 0x647   : > { %v5992_v45 = vsel %vm459_vm1, %v11559_v40, 0.0  ;;  %v6054_v44 = vmul.f32 %v11559_v40, %v11559_v40 }
 0x648   : > { %v5993_v37 = vadd.f32 %v5992_v45, %v5991_v47  ;;  %v6092_v29 = vadd.f32 %v6091_v62, %v6090_v51  ;;  %v6095_v35 = vsel %vm459_vm1, %v6055_v34, 0.0 }
 0x649   : > { %v6093_v13 = vsel %vm459_vm1, %v6054_v44, 0.0  ;;  %v11571_v11 = vpop.f32.mrb[10].mxu1 }
 0x64a   : > { %v6094_v25 = vadd.f32 %v6093_v13, %v6092_v29  ;;  %v11573_v23 = vpop.f32.mrb[11].mxu1  ;;  %v5995_v38 = vadd.f32 %v5994_v3, %v5993_v37  ;;  %v6057_v1 = vmul.f32 %v11571_v11, %v11571_v11  ;;  %v5998_v10 = vsel %vm459_vm1, %v11571_v11, 0.0 }
 0x64b   : > { %v5996_v54 = vsel %vm459_vm1, %v11573_v23, 0.0  ;;  %v6056_v41 = vmul.f32 %v11573_v23, %v11573_v23 }
 0x64c   : > { %v5997_v2 = vadd.f32 %v5996_v54, %v5995_v38  ;;  %v6096_v43 = vadd.f32 %v6095_v35, %v6094_v25  ;;  %v6099_v28 = vsel %vm459_vm1, %v6057_v1, 0.0 }
 0x64d   : > { %v6097_v31 = vsel %vm459_vm1, %v6056_v41, 0.0  ;;  %v11585_v16 = vpop.f32.mrb[12].mxu1 }
 0x64e   : > { %v6098_v17 = vadd.f32 %v6097_v31, %v6096_v43  ;;  %v11587_v21 = vpop.f32.mrb[13].mxu1  ;;  %v5999_v26 = vadd.f32 %v5998_v10, %v5997_v2  ;;  %v6059_v27 = vmul.f32 %v11585_v16, %v11585_v16  ;;  %v6002_v56 = vsel %vm459_vm1, %v11585_v16, 0.0 }
 0x64f   : > { %v6000_v19 = vsel %vm459_vm1, %v11587_v21, 0.0  ;;  %v6058_v33 = vmul.f32 %v11587_v21, %v11587_v21 }
 0x650   : > { %v6001_v12 = vadd.f32 %v6000_v19, %v5999_v26  ;;  %v6100_v15 = vadd.f32 %v6099_v28, %v6098_v17  ;;  %v6103_v32 = vsel %vm459_vm1, %v6059_v27, 0.0 }
 0x651   : > { %v6101_v6 = vsel %vm459_vm1, %v6058_v33, 0.0  ;;  %v11599_v9 = vpop.f32.mrb[14].mxu1 }
 0x652   : > { %v6102_v4 = vadd.f32 %v6101_v6, %v6100_v15  ;;  %v11601_v30 = vpop.f32.mrb[15].mxu1  ;;  %v6003_v55 = vadd.f32 %v6002_v56, %v6001_v12  ;;  %v6061_v58 = vmul.f32 %v11599_v9, %v11599_v9  ;;  %v6006_v50 = vsel %vm459_vm1, %v11599_v9, 0.0 }
 0x653   : > { %v6004_v7 = vsel %vm459_vm1, %v11601_v30, 0.0  ;;  %v6060_v59 = vmul.f32 %v11601_v30, %v11601_v30 }
 0x654   : > { %v6005_v36 = vadd.f32 %v6004_v7, %v6003_v55  ;;  %v6104_v49 = vadd.f32 %v6103_v32, %v6102_v4  ;;  %v6107_v8 = vsel %vm459_vm1, %v6061_v58, 0.0 }
 0x655   : > { %v6105_v39 = vsel %vm459_vm1, %v6060_v59, 0.0  ;;  %v11613_v20 = vpop.f32.mrb[16].mxu1 }
 0x656   : > { %v6106_v48 = vadd.f32 %v6105_v39, %v6104_v49  ;;  %v11615_v42 = vpop.f32.mrb[17].mxu1  ;;  %v6007_v24 = vadd.f32 %v6006_v50, %v6005_v36  ;;  %v6063_v52 = vmul.f32 %v11613_v20, %v11613_v20  ;;  %v6010_v62 = vsel %vm459_vm1, %v11613_v20, 0.0 }
 0x657   : > { %v6008_v0 = vsel %vm459_vm1, %v11615_v42, 0.0  ;;  %v6062_v57 = vmul.f32 %v11615_v42, %v11615_v42 }
 0x658   : > { %v6009_v51 = vadd.f32 %v6008_v0, %v6007_v24  ;;  %v6108_v47 = vadd.f32 %v6107_v8, %v6106_v48  ;;  %v6111_v3 = vsel %vm459_vm1, %v6063_v52, 0.0 }
 0x659   : > { %v6109_v34 = vsel %vm459_vm1, %v6062_v57, 0.0  ;;  %v11627_v45 = vpop.f32.mrb[18].mxu1 }
 0x65a   : > { %v6110_v44 = vadd.f32 %v6109_v34, %v6108_v47  ;;  %v11629_v37 = vpop.f32.mrb[19].mxu1  ;;  %v6011_v29 = vadd.f32 %v6010_v62, %v6009_v51  ;;  %v6065_v13 = vmul.f32 %v11627_v45, %v11627_v45  ;;  %v6014_v54 = vsel %vm459_vm1, %v11627_v45, 0.0 }
 0x65b   : > { %v6012_v25 = vsel %vm459_vm1, %v11629_v37, 0.0  ;;  %v6064_v38 = vmul.f32 %v11629_v37, %v11629_v37 }
 0x65c   : > { %v6013_v35 = vadd.f32 %v6012_v25, %v6011_v29  ;;  %v6112_v1 = vadd.f32 %v6111_v3, %v6110_v44  ;;  %v6115_v17 = vsel %vm459_vm1, %v6065_v13, 0.0 }
 0x65d   : > { %v6113_v41 = vsel %vm459_vm1, %v6064_v38, 0.0  ;;  %v11641_v2 = vpop.f32.mrb[20].mxu1 }
 0x65e   : > { %v6114_v43 = vadd.f32 %v6113_v41, %v6112_v1  ;;  %v11643_v10 = vpop.f32.mrb[21].mxu1  ;;  %v6015_v31 = vadd.f32 %v6014_v54, %v6013_v35  ;;  %v6067_v26 = vmul.f32 %v11641_v2, %v11641_v2  ;;  %v6018_v12 = vsel %vm459_vm1, %v11641_v2, 0.0 }
 0x65f   : > { %v6016_v28 = vsel %vm459_vm1, %v11643_v10, 0.0  ;;  %v6066_v27 = vmul.f32 %v11643_v10, %v11643_v10 }
 0x660   : > { %v6017_v19 = vadd.f32 %v6016_v28, %v6015_v31  ;;  %v6116_v33 = vadd.f32 %v6115_v17, %v6114_v43  ;;  %v6119_v32 = vsel %vm459_vm1, %v6067_v26, 0.0 }
 0x661   : > { %v6117_v15 = vsel %vm459_vm1, %v6066_v27, 0.0  ;;  %v11655_v56 = vpop.f32.mrb[22].mxu1 }
 0x662   : > { %v6118_v6 = vadd.f32 %v6117_v15, %v6116_v33  ;;  %v11657_v4 = vpop.f32.mrb[23].mxu1  ;;  %v6019_v55 = vadd.f32 %v6018_v12, %v6017_v19  ;;  %v6069_v58 = vmul.f32 %v11655_v56, %v11655_v56  ;;  %v6022_v50 = vsel %vm459_vm1, %v11655_v56, 0.0 }
 0x663   : > { %v6020_v7 = vsel %vm459_vm1, %v11657_v4, 0.0  ;;  %v6068_v59 = vmul.f32 %v11657_v4, %v11657_v4 }
 0x664   : > { %v6021_v36 = vadd.f32 %v6020_v7, %v6019_v55  ;;  %v6120_v49 = vadd.f32 %v6119_v32, %v6118_v6  ;;  %v6123_v0 = vsel %vm459_vm1, %v6069_v58, 0.0 }
 0x665   : > { %v6121_v39 = vsel %vm459_vm1, %v6068_v59, 0.0  ;;  %v11669_v48 = vpop.f32.mrb[24].mxu1 }
 0x666   : > { %v6122_v24 = vadd.f32 %v6121_v39, %v6120_v49  ;;  %v11671_v8 = vpop.f32.mrb[25].mxu1  ;;  %v6023_v52 = vadd.f32 %v6022_v50, %v6021_v36  ;;  %v6071_v57 = vmul.f32 %v11669_v48, %v11669_v48  ;;  %v6026_v44 = vsel %vm459_vm1, %v11669_v48, 0.0 }
 0x667   : > { %v6024_v51 = vsel %vm459_vm1, %v11671_v8, 0.0  ;;  %v6070_v47 = vmul.f32 %v11671_v8, %v11671_v8 }
 0x668   : > { %v6025_v62 = vadd.f32 %v6024_v51, %v6023_v52  ;;  %v6124_v34 = vadd.f32 %v6123_v0, %v6122_v24  ;;  %v6127_v35 = vsel %vm459_vm1, %v6071_v57, 0.0 }
 0x669   : > { %v6125_v29 = vsel %vm459_vm1, %v6070_v47, 0.0  ;;  %v11683_v3 = vpop.f32.mrb[26].mxu1 }
 0x66a   : > { %v6126_v13 = vadd.f32 %v6125_v29, %v6124_v34  ;;  %v11685_v25 = vpop.f32.mrb[27].mxu1  ;;  %v6027_v38 = vadd.f32 %v6026_v44, %v6025_v62  ;;  %v6073_v1 = vmul.f32 %v11683_v3, %v11683_v3  ;;  %v6030_v17 = vsel %vm459_vm1, %v11683_v3, 0.0 }
 0x66b   : > { %v6028_v54 = vsel %vm459_vm1, %v11685_v25, 0.0  ;;  %v6072_v41 = vmul.f32 %v11685_v25, %v11685_v25 }
 0x66c   : > { %v6029_v43 = vadd.f32 %v6028_v54, %v6027_v38  ;;  %v6128_v31 = vadd.f32 %v6127_v35, %v6126_v13  ;;  %v6131_v12 = vsel %vm459_vm1, %v6073_v1, 0.0 }
 0x66d   : > { %v6129_v26 = vsel %vm459_vm1, %v6072_v41, 0.0  ;;  %v11697_v28 = vpop.f32.mrb[28].mxu1 }
 0x66e   : > { %v6130_v27 = vadd.f32 %v6129_v26, %v6128_v31  ;;  %v11699_v19 = vpop.f32.mrb[29].mxu1  ;;  %v6031_v33 = vadd.f32 %v6030_v17, %v6029_v43  ;;  %v6075_v15 = vmul.f32 %v11697_v28, %v11697_v28  ;;  %v6034_v7 = vsel %vm459_vm1, %v11697_v28, 0.0 }
 0x66f   : > { %v6032_v6 = vsel %vm459_vm1, %v11699_v19, 0.0  ;;  %v6074_v55 = vmul.f32 %v11699_v19, %v11699_v19 }
 0x670   : > { %v6033_v32 = vadd.f32 %v6032_v6, %v6031_v33  ;;  %v6132_v58 = vadd.f32 %v6131_v12, %v6130_v27  ;;  %v6135_v24 = vsel %vm459_vm1, %v6075_v15, 0.0 }
 0x671   : > { %v6133_v59 = vsel %vm459_vm1, %v6074_v55, 0.0  ;;  %v11711_v36 = vpop.f32.mrb[30].mxu1 }
 0x672   : > { %v6134_v49 = vadd.f32 %v6133_v59, %v6132_v58  ;;  %v11713_v50 = vpop.f32.mrb[31].mxu1  ;;  %v6035_v39 = vadd.f32 %v6034_v7, %v6033_v32  ;;  %v6077_v52 = vmul.f32 %v11711_v36, %v11711_v36  ;;  %v6038_v62 = vsel %vm459_vm1, %v11711_v36, 0.0 }
 0x673   : > { %v6036_v0 = vsel %vm459_vm1, %v11713_v50, 0.0  ;;  %v6076_v57 = vmul.f32 %v11713_v50, %v11713_v50 }
 0x674   : > { %v6037_v51 = vadd.f32 %v6036_v0, %v6035_v39  ;;  %v6136_v47 = vadd.f32 %v6135_v24, %v6134_v49  ;;  %v6139_v13 = vsel %vm459_vm1, %v6077_v52, 0.0 }
 0x675   : > { %v6137_v34 = vsel %vm459_vm1, %v6076_v57, 0.0 }
 0x676   : > { %v6039_v44 = vadd.f32 %v6038_v62, %v6037_v51  ;;  %v6138_v29 = vadd.f32 %v6137_v34, %v6136_v47 }
 0x678   : > { %v6040_v38 = vrot.slane %v6039_v44, 4  ;;  %v6140_v35 = vadd.f32 %v6139_v13, %v6138_v29 }
 0x67a   : > { %v6041_v1 = vadd.f32 %v6040_v38, %v6039_v44  ;;  %v6141_v54 = vrot.slane %v6140_v35, 4 }
 0x67c   : > { %v6042_v41 = vrot.slane %v6041_v1, 2  ;;  %v6142_v43 = vadd.f32 %v6141_v54, %v6140_v35 }
 0x67e   : > { %v6043_v31 = vadd.f32 %v6042_v41, %v6041_v1  ;;  %v6143_v17 = vrot.slane %v6142_v43, 2 }
 0x680   : > { %v6044_v26 = vrot.slane %v6043_v31, 1  ;;  %v6144_v27 = vadd.f32 %v6143_v17, %v6142_v43 }
 0x682   : > { %v6045_v33 = vadd.f32 %v6044_v26, %v6043_v31  ;;  %v6145_v12 = vrot.slane %v6144_v27, 1 }
 0x684   : > { %v6146_v15 = vadd.f32 %v6145_v12, %v6144_v27  ;;  %v6147_v6 = vmul.f32 0.00390625, %v6045_v33 }
 0x686   : > { %v6148_v55 = vmul.f32 0.00390625, %v6146_v15  ;;  %v6149_v32 = vmul.f32 %v6147_v6, %v6147_v6  ;;  %v6154_v49 = vsub.f32 0.0, %v6147_v6 }
 0x688   : > { %v6150_v58 = vsub.f32 %v6148_v55, %v6149_v32 }
 0x68a   : > { %v6151_v7 = vmax.f32 %v6150_v58, 0.0 }
 0x68c   : > { %v6152_v59 = vadd.f32 1e-05, %v6151_v7 }
 0x68e   : > { %8969 = vrsqrt.f32 %v6152_v59 }
 0x698   : > { %v8970_v39 = vpop.eup %8969 }
 0x699   : > { %v11726_v24 = vmul.f32 %v8970_v39, %v6154_v49  ;;  %v6156_v52 = vmul.f32 %v8970_v39, %v11508_v14  ;;  %v6157_v0 = vmul.f32 %v8970_v39, %v11502_v5  ;;  %v6158_v57 = vmul.f32 %v8970_v39, %v11518_v46 }
 0x69a   : > { %v6159_v51 = vmul.f32 %v8970_v39, %v11516_v63  ;;  %v6160_v47 = vmul.f32 %v8970_v39, %v11531_v53  ;;  %v6161_v62 = vmul.f32 %v8970_v39, %v11529_v18  ;;  %v6162_v34 = vmul.f32 %v8970_v39, %v11545_v22 }
 0x69b   : > { %v6163_v44 = vmul.f32 %v8970_v39, %v11543_v60  ;;  %v6164_v29 = vmul.f32 %v8970_v39, %v11559_v40  ;;  %v6165_v13 = vmul.f32 %v8970_v39, %v11557_v61  ;;  %v6166_v14 = vmul.f32 %v8970_v39, %v11573_v23 }
 0x69c   : > { %v6167_v5 = vmul.f32 %v8970_v39, %v11571_v11  ;;  %v6168_v46 = vmul.f32 %v8970_v39, %v11587_v21  ;;  %v6169_v63 = vmul.f32 %v8970_v39, %v11585_v16  ;;  %v6170_v53 = vmul.f32 %v8970_v39, %v11601_v30 }
 0x69d   : > { %v6171_v18 = vmul.f32 %v8970_v39, %v11599_v9  ;;  %v6172_v22 = vmul.f32 %v8970_v39, %v11615_v42  ;;  %v6173_v60 = vmul.f32 %v8970_v39, %v11613_v20  ;;  %v6174_v40 = vmul.f32 %v8970_v39, %v11629_v37 }
 0x69e   : > { %v6175_v61 = vmul.f32 %v8970_v39, %v11627_v45  ;;  %v6176_v23 = vmul.f32 %v8970_v39, %v11643_v10  ;;  %v6177_v11 = vmul.f32 %v8970_v39, %v11641_v2  ;;  %v6178_v21 = vmul.f32 %v8970_v39, %v11657_v4 }
 0x69f   : > { %v6179_v16 = vmul.f32 %v8970_v39, %v11655_v56  ;;  %v6180_v30 = vmul.f32 %v8970_v39, %v11671_v8  ;;  %v6181_v9 = vmul.f32 %v8970_v39, %v11669_v48  ;;  %v6182_v42 = vmul.f32 %v8970_v39, %v11685_v25 }
 0x6a0   : > { %v6183_v20 = vmul.f32 %v8970_v39, %v11683_v3  ;;  %v6184_v37 = vmul.f32 %v8970_v39, %v11699_v19  ;;  %v6185_v45 = vmul.f32 %v8970_v39, %v11697_v28  ;;  %v6186_v10 = vmul.f32 %v8970_v39, %v11713_v50 }
 0x6a1   : > { %v6187_v2 = vmul.f32 %v8970_v39, %v11711_v36  ;;  %v6188_v4 = vadd.f32 %v6156_v52, %v11726_v24  ;;  %v6189_v56 = vadd.f32 %v6157_v0, %v11726_v24  ;;  %v6190_v8 = vadd.f32 %v6158_v57, %v11726_v24  ;;  %v8971_v0 = vld [vmem:[%s9061_s24] sm:$0xff] }
 0x6a2   : > { %v6191_v48 = vadd.f32 %v6159_v51, %v11726_v24  ;;  %v6192_v25 = vadd.f32 %v6160_v47, %v11726_v24  ;;  %v6193_v3 = vadd.f32 %v6161_v62, %v11726_v24  ;;  %v6194_v19 = vadd.f32 %v6162_v34, %v11726_v24  ;;  %v8972_v51 = vld [vmem:[%s9061_s24 + $0x8] sm:$0xff]  ;;  %v8973_v62 = vld [vmem:[%s9061_s24 + $0x10] sm:$0xff] }
 0x6a3   : > { %v6195_v28 = vadd.f32 %v6163_v44, %v11726_v24  ;;  %v6196_v50 = vadd.f32 %v6164_v29, %v11726_v24  ;;  %v6197_v36 = vadd.f32 %v6165_v13, %v11726_v24  ;;  %v6198_v38 = vadd.f32 %v6166_v14, %v11726_v24  ;;  %v8974_v44 = vld [vmem:[%s9061_s24 + $0x18] sm:$0xff]  ;;  %v8975_v13 = vld [vmem:[%s9061_s24 + $0x20] sm:$0xff] }
 0x6a4   : > { %v6199_v35 = vadd.f32 %v6167_v5, %v11726_v24  ;;  %v6200_v1 = vadd.f32 %v6168_v46, %v11726_v24  ;;  %v6201_v54 = vadd.f32 %v6169_v63, %v11726_v24  ;;  %v6202_v41 = vadd.f32 %v6170_v53, %v11726_v24  ;;  %v8976_v5 = vld [vmem:[%s9061_s24 + $0x28] sm:$0xff]  ;;  %v8977_v46 = vld [vmem:[%s9061_s24 + $0x30] sm:$0xff]  ;;  %v8978_v53 = vld [vmem:[%s9061_s24 + $0x38] sm:$0xff] }
 0x6a5   : > { %v6203_v43 = vadd.f32 %v6171_v18, %v11726_v24  ;;  %v6204_v31 = vadd.f32 %v6172_v22, %v11726_v24  ;;  %v6205_v17 = vadd.f32 %v6173_v60, %v11726_v24  ;;  %v6206_v26 = vadd.f32 %v6174_v40, %v11726_v24  ;;  %v8979_v22 = vld [vmem:[%s9061_s24 + $0x40] sm:$0xff]  ;;  %v8980_v40 = vld [vmem:[%s9061_s24 + $0x48] sm:$0xff] }
 0x6a6   : > { %v11780_v27 = vadd.f32 %v6175_v61, %v11726_v24  ;;  %v11783_v33 = vadd.f32 %v6176_v23, %v11726_v24  ;;  %v11786_v12 = vadd.f32 %v6177_v11, %v11726_v24  ;;  %v11789_v15 = vadd.f32 %v6178_v21, %v11726_v24  ;;  %v8981_v23 = vld [vmem:[%s9061_s24 + $0x50] sm:$0xff]  ;;  %v8982_v21 = vld [vmem:[%s9061_s24 + $0x58] sm:$0xff] }
 0x6a7   : > { %v11792_v6 = vadd.f32 %v6179_v16, %v11726_v24  ;;  %v11795_v55 = vadd.f32 %v6180_v30, %v11726_v24  ;;  %v11798_v32 = vadd.f32 %v6181_v9, %v11726_v24  ;;  %v11801_v58 = vadd.f32 %v6182_v42, %v11726_v24  ;;  %v8983_v30 = vld [vmem:[%s9061_s24 + $0x60] sm:$0xff]  ;;  %v8984_v42 = vld [vmem:[%s9061_s24 + $0x68] sm:$0xff] }
 0x6a8   : > { %v11811_v7 = vadd.f32 %v6183_v20, %v11726_v24  ;;  %v11814_v59 = vadd.f32 %v6184_v37, %v11726_v24  ;;  %v11817_v49 = vadd.f32 %v6185_v45, %v11726_v24  ;;  %v11820_v39 = vadd.f32 %v6186_v10, %v11726_v24  ;;  %v8985_v37 = vld [vmem:[%s9061_s24 + $0x70] sm:$0xff]  ;;  %v8986_v10 = vld [vmem:[%s9061_s24 + $0x78] sm:$0xff] }
 0x6a9   : > { %v11823_v52 = vadd.f32 %v6187_v2, %v11726_v24  ;;  %v6220_v57 = vadd.f32 %v8971_v0, %v6188_v4  ;;  %v6221_v47 = vadd.f32 %v8972_v51, %v6189_v56  ;;  %v6222_v34 = vadd.f32 %v8973_v62, %v6190_v8  ;;  %v8987_v4 = vld [vmem:[%s9061_s24 + $0x80] sm:$0xff]  ;;  %v8988_v8 = vld [vmem:[%s9061_s24 + $0x88] sm:$0xff] }
 0x6aa   : > { %v6223_v29 = vadd.f32 %v8974_v44, %v6191_v48  ;;  %v6224_v14 = vadd.f32 %v8975_v13, %v6192_v25  ;;  %v6225_v24 = vadd.f32 %v8976_v5, %v6193_v3  ;;  %v6226_v63 = vadd.f32 %v8977_v46, %v6194_v19  ;;  %v8989_v25 = vld [vmem:[%s9061_s24 + $0x90] sm:$0xff]  ;;  %v8990_v19 = vld [vmem:[%s9061_s24 + $0x98] sm:$0xff] }
 0x6ab   : > { %v6227_v18 = vadd.f32 %v8978_v53, %v6195_v28  ;;  %v6228_v60 = vadd.f32 %v8979_v22, %v6196_v50  ;;  %v6229_v61 = vadd.f32 %v8980_v40, %v6197_v36  ;;  %v6230_v11 = vadd.f32 %v8981_v23, %v6198_v38  ;;  %6252 = vst.msk [vmem:[%s11808_s17] sm:$0xff] %vm459_vm1, %v6220_v57  ;;  %v8991_v50 = vld [vmem:[%s9061_s24 + $0xa0] sm:$0xff]  ;;  %v8992_v38 = vld [vmem:[%s9061_s24 + $0xa8] sm:$0xff]  ;;  %v9001_v57 = vld [vmem:[%s9061_s24 + $0xf0] sm:$0xff] }
 0x6ac   : > { %6253 = vst.msk [vmem:[%s11808_s17 + $0x8] sm:$0xff] %vm459_vm1, %v6221_v47  ;;  %6254 = vst.msk [vmem:[%s11808_s17 + $0x10] sm:$0xff] %vm459_vm1, %v6222_v34  ;;  %v6231_v16 = vadd.f32 %v8982_v21, %v6199_v35  ;;  %v6232_v9 = vadd.f32 %v8983_v30, %v6200_v1  ;;  %v6233_v20 = vadd.f32 %v8984_v42, %v6201_v54  ;;  %v8993_v1 = vld [vmem:[%s9061_s24 + $0xb0] sm:$0xff] }
 0x6ad   : > { %v6234_v45 = vadd.f32 %v8985_v37, %v6202_v41  ;;  %6255 = vst.msk [vmem:[%s11808_s17 + $0x18] sm:$0xff] %vm459_vm1, %v6223_v29  ;;  %6256 = vst.msk [vmem:[%s11808_s17 + $0x20] sm:$0xff] %vm459_vm1, %v6224_v14  ;;  %v6235_v2 = vadd.f32 %v8986_v10, %v6203_v43  ;;  %v6236_v56 = vadd.f32 %v8987_v4, %v6204_v31  ;;  %v8994_v41 = vld [vmem:[%s9061_s24 + $0xb8] sm:$0xff]  ;;  %v8995_v31 = vld [vmem:[%s9061_s24 + $0xc0] sm:$0xff] }
 0x6ae   : > { %6257 = vst.msk [vmem:[%s11808_s17 + $0x28] sm:$0xff] %vm459_vm1, %v6225_v24  ;;  %6258 = vst.msk [vmem:[%s11808_s17 + $0x30] sm:$0xff] %vm459_vm1, %v6226_v63  ;;  %v6237_v48 = vadd.f32 %v8988_v8, %v6205_v17  ;;  %v6238_v3 = vadd.f32 %v8989_v25, %v6206_v26  ;;  %v6239_v28 = vadd.f32 %v8990_v19, %v11780_v27  ;;  %v8996_v26 = vld [vmem:[%s9061_s24 + $0xc8] sm:$0xff] }
 0x6af   : > { %6259 = vst.msk [vmem:[%s11808_s17 + $0x38] sm:$0xff] %vm459_vm1, %v6227_v18  ;;  %6260 = vst.msk [vmem:[%s11808_s17 + $0x40] sm:$0xff] %vm459_vm1, %v6228_v60  ;;  %v6240_v36 = vadd.f32 %v8991_v50, %v11783_v33  ;;  %v6241_v35 = vadd.f32 %v8992_v38, %v11786_v12  ;;  %v6242_v54 = vadd.f32 %v8993_v1, %v11789_v15  ;;  %v8997_v33 = vld [vmem:[%s9061_s24 + $0xd0] sm:$0xff]  ;;  %v8998_v15 = vld [vmem:[%s9061_s24 + $0xd8] sm:$0xff] }
 0x6b0   : > { %6261 = vst.msk [vmem:[%s11808_s17 + $0x48] sm:$0xff] %vm459_vm1, %v6229_v61  ;;  %6262 = vst.msk [vmem:[%s11808_s17 + $0x50] sm:$0xff] %vm459_vm1, %v6230_v11  ;;  %v6243_v43 = vadd.f32 %v8994_v41, %v11792_v6  ;;  %v6244_v17 = vadd.f32 %v8995_v31, %v11795_v55  ;;  %v6245_v27 = vadd.f32 %v8996_v26, %v11798_v32  ;;  %v8999_v55 = vld [vmem:[%s9061_s24 + $0xe0] sm:$0xff] }
 0x6b1   : > { %6263 = vst.msk [vmem:[%s11808_s17 + $0x58] sm:$0xff] %vm459_vm1, %v6231_v16  ;;  %6264 = vst.msk [vmem:[%s11808_s17 + $0x60] sm:$0xff] %vm459_vm1, %v6232_v9  ;;  %v6246_v12 = vadd.f32 %v8997_v33, %v11801_v58  ;;  %v6247_v6 = vadd.f32 %v8998_v15, %v11811_v7  ;;  %v6248_v32 = vadd.f32 %v8999_v55, %v11814_v59  ;;  %v9000_v58 = vld [vmem:[%s9061_s24 + $0xe8] sm:$0xff]  ;;  %v9002_v7 = vld [vmem:[%s9061_s24 + $0xf8] sm:$0xff] }
 0x6b2   : > { %6265 = vst.msk [vmem:[%s11808_s17 + $0x68] sm:$0xff] %vm459_vm1, %v6233_v20  ;;  %6266 = vst.msk [vmem:[%s11808_s17 + $0x70] sm:$0xff] %vm459_vm1, %v6234_v45  ;;  %v6249_v0 = vadd.f32 %v9000_v58, %v11817_v49  ;;  %v6250_v51 = vadd.f32 %v9001_v57, %v11820_v39  ;;  %v6251_v59 = vadd.f32 %v9002_v7, %v11823_v52 }
 0x6b3   : > { %6267 = vst.msk [vmem:[%s11808_s17 + $0x78] sm:$0xff] %vm459_vm1, %v6235_v2  ;;  %6268 = vst.msk [vmem:[%s11808_s17 + $0x80] sm:$0xff] %vm459_vm1, %v6236_v56 }
 0x6b4   : > { %6269 = vst.msk [vmem:[%s11808_s17 + $0x88] sm:$0xff] %vm459_vm1, %v6237_v48  ;;  %6270 = vst.msk [vmem:[%s11808_s17 + $0x90] sm:$0xff] %vm459_vm1, %v6238_v3 }
 0x6b5   : > { %6271 = vst.msk [vmem:[%s11808_s17 + $0x98] sm:$0xff] %vm459_vm1, %v6239_v28  ;;  %6272 = vst.msk [vmem:[%s11808_s17 + $0xa0] sm:$0xff] %vm459_vm1, %v6240_v36 }
 0x6b6   : > { %6273 = vst.msk [vmem:[%s11808_s17 + $0xa8] sm:$0xff] %vm459_vm1, %v6241_v35  ;;  %6274 = vst.msk [vmem:[%s11808_s17 + $0xb0] sm:$0xff] %vm459_vm1, %v6242_v54 }
 0x6b7   : > { %6275 = vst.msk [vmem:[%s11808_s17 + $0xb8] sm:$0xff] %vm459_vm1, %v6243_v43  ;;  %6276 = vst.msk [vmem:[%s11808_s17 + $0xc0] sm:$0xff] %vm459_vm1, %v6244_v17 }
 0x6b8   : > { %6277 = vst.msk [vmem:[%s11808_s17 + $0xc8] sm:$0xff] %vm459_vm1, %v6245_v27  ;;  %6278 = vst.msk [vmem:[%s11808_s17 + $0xd0] sm:$0xff] %vm459_vm1, %v6246_v12 }
 0x6b9   : > { %6279 = vst.msk [vmem:[%s11808_s17 + $0xd8] sm:$0xff] %vm459_vm1, %v6247_v6  ;;  %6280 = vst.msk [vmem:[%s11808_s17 + $0xe0] sm:$0xff] %vm459_vm1, %v6248_v32 }
 0x6ba   : > { %6281 = vst.msk [vmem:[%s11808_s17 + $0xe8] sm:$0xff] %vm459_vm1, %v6249_v0  ;;  %6282 = vst.msk [vmem:[%s11808_s17 + $0xf0] sm:$0xff] %vm459_vm1, %v6250_v51 }
 0x6bb   : > { %6283 = vst.msk [vmem:[%s11808_s17 + $0xf8] sm:$0xff] %vm459_vm1, %v6251_v59 }
 0x6bc PF: > { %s14_s15 = sadd.s32 1, %s9009_s15  }
 0x6bd   : > { %p11_p4 = scmp.ge.s32.totalorder %s14_s15, 4  }
 0x6bf   :  { %13 = sbr.rel (!%p11_p4) target bundleno = 1 (0x1), region = 82 }

</bundles_post_ra>
